<compile_context>
chip_gen: v6e
topology: v6e:2x2x1
jax: 0.10.0
libtpu: 0.0.40
codegen_flags: <defaults>
</compile_context>

<pallas_src>
import functools
import math

import jax
import jax.numpy as jnp
from jax.experimental import pallas as pl
from jax.experimental.pallas import tpu as pltpu

# ----------------------------- model config ---------------------------------
B = 2          # batch
T = 8          # block_size / seq len
C = 32         # n_embd
H = 4          # n_head
N_LAYER = 2    # n_layer (small for the demo)
LN_EPS = 1e-5

# nn.GELU() in the reference is erf-exact; the tanh approximation routes
# through the EUP slot (per perf review).  Set False for bit-parity.
GELU_APPROX = True


# ----------------------------- kernel helpers --------------------------------
def _normalize(v):
    """LayerNorm normalize-only step (affine folded into downstream weights).
    One-pass statistics: the two reductions are independent."""
    mu = jnp.mean(v, axis=-1, keepdims=True)
    ex2 = jnp.mean(v * v, axis=-1, keepdims=True)
    var = ex2 - mu * mu
    return (v - mu) * jax.lax.rsqrt(var + LN_EPS)


# ----------------------------- fused kernel ----------------------------------
def stack_kernel(x_ref, neg_ref,
                 wqkv_ref, bq_ref, wproj_ref, wfc1_ref, wfc2_ref,
                 whead_ref, bias_ref,
                 o_ref,
                 *, n_layer, n_head, batch, seq):
    """Entire Stack forward: n_layer STBlocks + ln_f + head, fully fused.

    wqkv_ref  : [n_layer*3*n_head, C, dh]  per-head q/k/v weights (LN1 affine
                and 1/sqrt(dh) already folded in; q entries first, then k, v)
    bq_ref    : [n_layer*n_head, 1, dh]    per-head query bias (folded, scaled)
    wproj_ref : [n_layer*n_head, dh, C]    per-head rows of the out projection
    wfc1_ref  : [n_layer, C, 4C]           LN2 affine folded in
    wfc2_ref  : [n_layer, 4C, C]
    whead_ref : [C, C]                     ln_f affine folded in
    bias_ref  : [n_layer+1, 3, 4C]  rows: b_fc1 | b_proj(:C) | b_fc2(:C);
                final entry holds the folded head bias in the b_proj slot.
    """
    x = x_ref[...]                    # [B*T, C]
    neg = neg_ref[...]                # [B, T, T] additive key mask (0 / -1e9)
    c = x.shape[-1]
    dh = c // n_head
    bt = batch * seq

    for l in range(n_layer):          # static unroll; weights stay VMEM-resident
        bias = bias_ref[l]            # [3, 4C]
        b_fc1 = bias[0:1, :]          # [1, 4C]
        b_proj = bias[1:2, 0:c]       # [1, C]  (includes folded value bias)
        b_fc2 = bias[2:3, 0:c]        # [1, C]

        # --- attention (pre-LN affine + attention scale folded into weights) ---
        a = _normalize(x)             # [B*T, C]
        x = x + b_proj
        for h in range(n_head):       # H=4 static; no lane slicing, no concat
            qi = (l * 3 + 0) * n_head + h
            ki = (l * 3 + 1) * n_head + h
            vi = (l * 3 + 2) * n_head + h
            qh = (jnp.dot(a, wqkv_ref[qi], preferred_element_type=jnp.float32)
                  + bq_ref[l * n_head + h]).reshape(batch, seq, dh)
            kh = jnp.dot(a, wqkv_ref[ki],
                         preferred_element_type=jnp.float32).reshape(batch, seq, dh)
            vh = jnp.dot(a, wqkv_ref[vi],
                         preferred_element_type=jnp.float32).reshape(batch, seq, dh)
            s = jnp.einsum('bqd,bkd->bqk', qh, kh,
                           preferred_element_type=jnp.float32)
            s = s + neg                                   # mask padded keys
            s = s - jnp.max(s, axis=-1, keepdims=True)
            p = jnp.exp(s)
            p = p * pl.reciprocal(jnp.sum(p, axis=-1, keepdims=True), approx=True)
            oh = jnp.einsum('bqk,bkd->bqd', p, vh,
                            preferred_element_type=jnp.float32)
            # per-head slice of the output projection, accumulated into residual
            x = x + jnp.dot(oh.reshape(bt, dh), wproj_ref[l * n_head + h],
                            preferred_element_type=jnp.float32)

        # --- MLP (pre-LN affine folded into wfc1 / b_fc1) ---
        a2 = _normalize(x)
        h1 = jnp.dot(a2, wfc1_ref[l], preferred_element_type=jnp.float32) + b_fc1
        h1 = jax.nn.gelu(h1, approximate=GELU_APPROX)
        x = x + jnp.dot(h1, wfc2_ref[l], preferred_element_type=jnp.float32) + b_fc2

    # --- ln_f + head (ln_f affine folded into whead / final bias slot) ---
    a = _normalize(x)
    # Output last dim C=32 (<128 lanes) -> masked store; total output is 2 KB,
    # a lane-dense relayout would cost more than it saves at this size.
    o_ref[...] = (jnp.dot(a, whead_ref[...], preferred_element_type=jnp.float32)
                  + bias_ref[n_layer][1:2, 0:c])


# ----------------------------- wrapper ----------------------------------------
def stack_forward(x, mask, packed):
    """x: [B, T, C] float32, mask: [B, T] bool/int -> (logits [B,T,C], mask bool)"""
    b, t, c = x.shape
    mask_b = mask.astype(bool)
    # additive key-side mask, pre-broadcast to [B, T, T] host-side (padded keys -1e9)
    neg = jnp.broadcast_to(
        (1.0 - mask_b.astype(jnp.float32))[:, None, :] * (-1e9), (b, t, t))
    inputs = [x.reshape(b * t, c), neg,
              packed['w_qkv_h'], packed['b_q_h'], packed['w_proj_h'],
              packed['w_fc1'], packed['w_fc2'],
              packed['w_head'], packed['bias']]
    out = pl.pallas_call(
        functools.partial(stack_kernel, n_layer=N_LAYER, n_head=H,
                          batch=b, seq=t),
        # gridless: whole arrays resident in VMEM, no per-step overhead,
        # no double buffering, no dimension_semantics needed.
        in_specs=[pl.BlockSpec(memory_space=pltpu.MemorySpace.VMEM)
                  for _ in inputs],
        out_specs=pl.BlockSpec(memory_space=pltpu.MemorySpace.VMEM),
        out_shape=jax.ShapeDtypeStruct((b * t, c), jnp.float32),
    )(*inputs)
    # cat_down == 1, slice_up == 1 -> no rearranges; dropout identity (eval).
    return out.reshape(b, t, c), mask_b


# ----------------------------- parameters -------------------------------------
def init_params(key):
    """Mirrors Stack._init_weights: Linear.weight ~ N(0, 0.02), bias = 0,
       LayerNorm weight = 1, bias = 0.  Stored in [in, out] (JAX) convention."""
    def normal(k, shape):
        return 0.02 * jax.random.normal(k, shape, jnp.float32)

    keys = jax.random.split(key, 4 * N_LAYER + 1)
    layers = []
    for l in range(N_LAYER):
        layers.append(dict(
            ln1_w=jnp.ones((C,), jnp.float32), ln1_b=jnp.zeros((C,), jnp.float32),
            w_qkv=normal(keys[4 * l + 0], (C, 3 * C)),
            b_qkv=jnp.zeros((3 * C,), jnp.float32),
            w_proj=normal(keys[4 * l + 1], (C, C)),
            b_proj=jnp.zeros((C,), jnp.float32),
            ln2_w=jnp.ones((C,), jnp.float32), ln2_b=jnp.zeros((C,), jnp.float32),
            w_fc1=normal(keys[4 * l + 2], (C, 4 * C)),
            b_fc1=jnp.zeros((4 * C,), jnp.float32),
            w_fc2=normal(keys[4 * l + 3], (4 * C, C)),
            b_fc2=jnp.zeros((C,), jnp.float32)))
    return dict(layers=layers,
                lnf_w=jnp.ones((C,), jnp.float32),
                lnf_b=jnp.zeros((C,), jnp.float32),
                w_head=normal(keys[-1], (C, C)))       # Linear(C, C, bias=False)


def pack_params(p):
    """Host-side (free) parameter folding + packing:
       - LN affine folded into the following matmul: LN(x)@W+b ==
         norm(x)@(diag(w_ln)W) + (b_ln@W + b)
       - 1/sqrt(dh) folded into the q weights/bias
       - key bias dropped (softmax-invariant); value bias folded into b_proj
       - qkv / proj weights pre-split per head so the kernel never lane-slices.
    """
    dh = C // H
    inv = 1.0 / math.sqrt(dh)
    wqkv_h, bq_h, wproj_h, wfc1, wfc2, bias_rows = [], [], [], [], [], []
    for lp in p['layers']:
        w_qkv = lp['ln1_w'][:, None] * lp['w_qkv']              # [C, 3C]
        b_qkv = lp['ln1_b'] @ lp['w_qkv'] + lp['b_qkv']         # [3C]
        wq, wk, wv = w_qkv[:, :C] * inv, w_qkv[:, C:2 * C], w_qkv[:, 2 * C:]
        bq, bv = b_qkv[:C] * inv, b_qkv[2 * C:]
        b_proj = bv @ lp['w_proj'] + lp['b_proj']               # value-bias fold
        for w in (wq, wk, wv):                                  # q-heads, k-heads, v-heads
            for h in range(H):
                wqkv_h.append(w[:, h * dh:(h + 1) * dh])
        for h in range(H):
            bq_h.append(bq[h * dh:(h + 1) * dh][None, :])
            wproj_h.append(lp['w_proj'][h * dh:(h + 1) * dh, :])
        wfc1.append(lp['ln2_w'][:, None] * lp['w_fc1'])
        wfc2.append(lp['w_fc2'])
        b_fc1 = lp['ln2_b'] @ lp['w_fc1'] + lp['b_fc1']
        row = jnp.zeros((3, 4 * C), jnp.float32)
        row = row.at[0, :].set(b_fc1)
        row = row.at[1, :C].set(b_proj)
        row = row.at[2, :C].set(lp['b_fc2'])
        bias_rows.append(row)
    # ln_f affine folded into the (bias-free) head
    w_head = p['lnf_w'][:, None] * p['w_head']
    b_head = p['lnf_b'] @ p['w_head']
    bias_rows.append(jnp.zeros((3, 4 * C), jnp.float32).at[1, :C].set(b_head))
    return dict(
        w_qkv_h=jnp.stack(wqkv_h),      # [N_LAYER*3*H, C, dh]
        b_q_h=jnp.stack(bq_h),          # [N_LAYER*H, 1, dh]
        w_proj_h=jnp.stack(wproj_h),    # [N_LAYER*H, dh, C]
        w_fc1=jnp.stack(wfc1),          # [N_LAYER, C, 4C]
        w_fc2=jnp.stack(wfc2),          # [N_LAYER, 4C, C]
        w_head=w_head,                  # [C, C]
        bias=jnp.stack(bias_rows))      # [N_LAYER+1, 3, 4C]


# ----------------------------- main --------------------------------------------
if __name__ == "__main__":
    key = jax.random.PRNGKey(0)
    key, kx = jax.random.split(key)
    x = jax.random.normal(kx, (B, T, C), jnp.float32)

    # valid mask: last two tokens of batch element 1 are padding
    mask = jnp.ones((B, T), jnp.int32).at[1, T - 2:].set(0)

    params = init_params(key)
    packed = pack_params(params)

    logits, out_mask = stack_forward(x, mask, packed)
    logits = jax.block_until_ready(logits)

    assert logits.shape == (B, T, C) and logits.dtype == jnp.float32
    assert out_mask.shape == (B, T) and out_mask.dtype == jnp.bool_
    assert bool(jnp.all(jnp.isfinite(logits)))
    print("KERNEL_OK")
</pallas_src>

<mosaic_0001>
module attributes {stable_mosaic.version = 11 : i64} {
  func.func @stack_kernel(%arg0: memref<16x32xf32, #tpu.memory_space<vmem>>, %arg1: memref<2x8x8xf32, #tpu.memory_space<vmem>>, %arg2: memref<24x32x8xf32, #tpu.memory_space<vmem>>, %arg3: memref<8x1x8xf32, #tpu.memory_space<vmem>>, %arg4: memref<8x8x32xf32, #tpu.memory_space<vmem>>, %arg5: memref<2x32x128xf32, #tpu.memory_space<vmem>>, %arg6: memref<2x128x32xf32, #tpu.memory_space<vmem>>, %arg7: memref<32x32xf32, #tpu.memory_space<vmem>>, %arg8: memref<3x3x128xf32, #tpu.memory_space<vmem>>, %arg9: memref<16x32xf32, #tpu.memory_space<vmem>>) attributes {dimension_semantics = [], scalar_prefetch = 0 : i64, scratch_operands = 0 : i64, tpu.core_type = #tpu.core_type<tc>} {
    %c0 = arith.constant 0 : index
    %c0_0 = arith.constant 0 : index
    %0 = vector.load %arg0[%c0, %c0_0] : memref<16x32xf32, #tpu.memory_space<vmem>>, vector<16x32xf32>
    %c0_1 = arith.constant 0 : index
    %c0_2 = arith.constant 0 : index
    %c0_3 = arith.constant 0 : index
    %1 = vector.load %arg1[%c0_1, %c0_2, %c0_3] : memref<2x8x8xf32, #tpu.memory_space<vmem>>, vector<2x8x8xf32>
    %c0_4 = arith.constant 0 : index
    %c0_5 = arith.constant 0 : index
    %c0_6 = arith.constant 0 : index
    %2 = vector.load %arg8[%c0_4, %c0_5, %c0_6] : memref<3x3x128xf32, #tpu.memory_space<vmem>>, vector<1x3x128xf32>
    %3 = vector.shape_cast %2 : vector<1x3x128xf32> to vector<3x128xf32>
    %4 = vector.extract_strided_slice %3 {offsets = [0, 0], sizes = [1, 128], strides = [1, 1]} : vector<3x128xf32> to vector<1x128xf32>
    %5 = vector.extract_strided_slice %3 {offsets = [1, 0], sizes = [1, 32], strides = [1, 1]} : vector<3x128xf32> to vector<1x32xf32>
    %6 = vector.extract_strided_slice %3 {offsets = [2, 0], sizes = [1, 32], strides = [1, 1]} : vector<3x128xf32> to vector<1x32xf32>
    %cst = arith.constant dense<0.000000e+00> : vector<16xf32>
    %7 = vector.multi_reduction <add>, %0, %cst [1] : vector<16x32xf32> to vector<16xf32>
    %8 = vector.shape_cast %7 : vector<16xf32> to vector<16x1xf32>
    %cst_7 = arith.constant 3.200000e+01 : f32
    %9 = vector.broadcast %cst_7 : f32 to vector<16x1xf32>
    %10 = arith.divf %8, %9 : vector<16x1xf32>
    %11 = arith.mulf %0, %0 : vector<16x32xf32>
    %cst_8 = arith.constant dense<0.000000e+00> : vector<16xf32>
    %12 = vector.multi_reduction <add>, %11, %cst_8 [1] : vector<16x32xf32> to vector<16xf32>
    %13 = vector.shape_cast %12 : vector<16xf32> to vector<16x1xf32>
    %cst_9 = arith.constant 3.200000e+01 : f32
    %14 = vector.broadcast %cst_9 : f32 to vector<16x1xf32>
    %15 = arith.divf %13, %14 : vector<16x1xf32>
    %16 = arith.mulf %10, %10 : vector<16x1xf32>
    %17 = arith.subf %15, %16 : vector<16x1xf32>
    %18 = vector.broadcast %10 : vector<16x1xf32> to vector<16x32xf32>
    %19 = arith.subf %0, %18 : vector<16x32xf32>
    %cst_10 = arith.constant 9.99999974E-6 : f32
    %20 = vector.broadcast %cst_10 : f32 to vector<16x1xf32>
    %21 = arith.addf %17, %20 : vector<16x1xf32>
    %22 = math.rsqrt %21 : vector<16x1xf32>
    %23 = vector.broadcast %22 : vector<16x1xf32> to vector<16x32xf32>
    %24 = arith.mulf %19, %23 : vector<16x32xf32>
    %25 = vector.broadcast %5 : vector<1x32xf32> to vector<16x32xf32>
    %26 = arith.addf %0, %25 : vector<16x32xf32>
    %c0_11 = arith.constant 0 : index
    %c0_12 = arith.constant 0 : index
    %c0_13 = arith.constant 0 : index
    %27 = vector.load %arg2[%c0_11, %c0_12, %c0_13] : memref<24x32x8xf32, #tpu.memory_space<vmem>>, vector<1x32x8xf32>
    %28 = vector.shape_cast %27 : vector<1x32x8xf32> to vector<32x8xf32>
    %cst_14 = arith.constant dense<0.000000e+00> : vector<16x8xf32>
    %29 = tpu.matmul %24, %28, %cst_14 {dimension_numbers = #tpu.dot_dimension_numbers<[1], [0], [0], [1], [0, 0, 1, 1], [], []>} : vector<16x32xf32>, vector<32x8xf32>, vector<16x8xf32> -> vector<16x8xf32>
    %c0_15 = arith.constant 0 : index
    %c0_16 = arith.constant 0 : index
    %c0_17 = arith.constant 0 : index
    %30 = vector.load %arg3[%c0_15, %c0_16, %c0_17] : memref<8x1x8xf32, #tpu.memory_space<vmem>>, vector<1x1x8xf32>
    %31 = vector.shape_cast %30 : vector<1x1x8xf32> to vector<1x8xf32>
    %32 = vector.broadcast %31 : vector<1x8xf32> to vector<16x8xf32>
    %33 = arith.addf %29, %32 : vector<16x8xf32>
    %34 = vector.shape_cast %33 : vector<16x8xf32> to vector<2x8x8xf32>
    %c4 = arith.constant 4 : index
    %c0_18 = arith.constant 0 : index
    %c0_19 = arith.constant 0 : index
    %35 = vector.load %arg2[%c4, %c0_18, %c0_19] : memref<24x32x8xf32, #tpu.memory_space<vmem>>, vector<1x32x8xf32>
    %36 = vector.shape_cast %35 : vector<1x32x8xf32> to vector<32x8xf32>
    %cst_20 = arith.constant dense<0.000000e+00> : vector<16x8xf32>
    %37 = tpu.matmul %24, %36, %cst_20 {dimension_numbers = #tpu.dot_dimension_numbers<[1], [0], [0], [1], [0, 0, 1, 1], [], []>} : vector<16x32xf32>, vector<32x8xf32>, vector<16x8xf32> -> vector<16x8xf32>
    %38 = vector.shape_cast %37 : vector<16x8xf32> to vector<2x8x8xf32>
    %c8 = arith.constant 8 : index
    %c0_21 = arith.constant 0 : index
    %c0_22 = arith.constant 0 : index
    %39 = vector.load %arg2[%c8, %c0_21, %c0_22] : memref<24x32x8xf32, #tpu.memory_space<vmem>>, vector<1x32x8xf32>
    %40 = vector.shape_cast %39 : vector<1x32x8xf32> to vector<32x8xf32>
    %cst_23 = arith.constant dense<0.000000e+00> : vector<16x8xf32>
    %41 = tpu.matmul %24, %40, %cst_23 {dimension_numbers = #tpu.dot_dimension_numbers<[1], [0], [0], [1], [0, 0, 1, 1], [], []>} : vector<16x32xf32>, vector<32x8xf32>, vector<16x8xf32> -> vector<16x8xf32>
    %42 = vector.shape_cast %41 : vector<16x8xf32> to vector<2x8x8xf32>
    "tpu.trace_start"() <{level = 10 : i32, message = "bqd,bkd->bqk"}> : () -> ()
    %cst_24 = arith.constant dense<0.000000e+00> : vector<2x8x8xf32>
    %43 = tpu.matmul %34, %38, %cst_24 {dimension_numbers = #tpu.dot_dimension_numbers<[2], [2], [1], [1], [0, 0, 0, 1, 1, 1], [0], [0]>} : vector<2x8x8xf32>, vector<2x8x8xf32>, vector<2x8x8xf32> -> vector<2x8x8xf32>
    "tpu.trace_stop"() : () -> ()
    %44 = arith.addf %43, %1 : vector<2x8x8xf32>
    %cst_25 = arith.constant dense<0xFF800000> : vector<2x8xf32>
    %45 = vector.multi_reduction <maximumf>, %44, %cst_25 [2] : vector<2x8x8xf32> to vector<2x8xf32>
    %46 = vector.shape_cast %45 : vector<2x8xf32> to vector<2x8x1xf32>
    %47 = vector.broadcast %46 : vector<2x8x1xf32> to vector<2x8x8xf32>
    %48 = arith.subf %44, %47 : vector<2x8x8xf32>
    %49 = math.exp %48 : vector<2x8x8xf32>
    %cst_26 = arith.constant dense<0.000000e+00> : vector<2x8xf32>
    %50 = vector.multi_reduction <add>, %49, %cst_26 [2] : vector<2x8x8xf32> to vector<2x8xf32>
    %51 = vector.shape_cast %50 : vector<2x8xf32> to vector<2x8x1xf32>
    %52 = tpu.reciprocal %51 {approx = true} : vector<2x8x1xf32> -> vector<2x8x1xf32>
    %53 = vector.broadcast %52 : vector<2x8x1xf32> to vector<2x8x8xf32>
    %54 = arith.mulf %49, %53 : vector<2x8x8xf32>
    "tpu.trace_start"() <{level = 10 : i32, message = "bqk,bkd->bqd"}> : () -> ()
    %cst_27 = arith.constant dense<0.000000e+00> : vector<2x8x8xf32>
    %55 = tpu.matmul %54, %42, %cst_27 {dimension_numbers = #tpu.dot_dimension_numbers<[2], [1], [1], [2], [0, 0, 0, 1, 1, 2], [0], [0]>} : vector<2x8x8xf32>, vector<2x8x8xf32>, vector<2x8x8xf32> -> vector<2x8x8xf32>
    "tpu.trace_stop"() : () -> ()
    %56 = vector.shape_cast %55 : vector<2x8x8xf32> to vector<16x8xf32>
    %c0_28 = arith.constant 0 : index
    %c0_29 = arith.constant 0 : index
    %c0_30 = arith.constant 0 : index
    %57 = vector.load %arg4[%c0_28, %c0_29, %c0_30] : memref<8x8x32xf32, #tpu.memory_space<vmem>>, vector<1x8x32xf32>
    %58 = vector.shape_cast %57 : vector<1x8x32xf32> to vector<8x32xf32>
    %cst_31 = arith.constant dense<0.000000e+00> : vector<16x32xf32>
    %59 = tpu.matmul %56, %58, %cst_31 {dimension_numbers = #tpu.dot_dimension_numbers<[1], [0], [0], [1], [0, 0, 1, 1], [], []>} : vector<16x8xf32>, vector<8x32xf32>, vector<16x32xf32> -> vector<16x32xf32>
    %60 = arith.addf %26, %59 : vector<16x32xf32>
    %c1 = arith.constant 1 : index
    %c0_32 = arith.constant 0 : index
    %c0_33 = arith.constant 0 : index
    %61 = vector.load %arg2[%c1, %c0_32, %c0_33] : memref<24x32x8xf32, #tpu.memory_space<vmem>>, vector<1x32x8xf32>
    %62 = vector.shape_cast %61 : vector<1x32x8xf32> to vector<32x8xf32>
    %cst_34 = arith.constant dense<0.000000e+00> : vector<16x8xf32>
    %63 = tpu.matmul %24, %62, %cst_34 {dimension_numbers = #tpu.dot_dimension_numbers<[1], [0], [0], [1], [0, 0, 1, 1], [], []>} : vector<16x32xf32>, vector<32x8xf32>, vector<16x8xf32> -> vector<16x8xf32>
    %c1_35 = arith.constant 1 : index
    %c0_36 = arith.constant 0 : index
    %c0_37 = arith.constant 0 : index
    %64 = vector.load %arg3[%c1_35, %c0_36, %c0_37] : memref<8x1x8xf32, #tpu.memory_space<vmem>>, vector<1x1x8xf32>
    %65 = vector.shape_cast %64 : vector<1x1x8xf32> to vector<1x8xf32>
    %66 = vector.broadcast %65 : vector<1x8xf32> to vector<16x8xf32>
    %67 = arith.addf %63, %66 : vector<16x8xf32>
    %68 = vector.shape_cast %67 : vector<16x8xf32> to vector<2x8x8xf32>
    %c5 = arith.constant 5 : index
    %c0_38 = arith.constant 0 : index
    %c0_39 = arith.constant 0 : index
    %69 = vector.load %arg2[%c5, %c0_38, %c0_39] : memref<24x32x8xf32, #tpu.memory_space<vmem>>, vector<1x32x8xf32>
    %70 = vector.shape_cast %69 : vector<1x32x8xf32> to vector<32x8xf32>
    %cst_40 = arith.constant dense<0.000000e+00> : vector<16x8xf32>
    %71 = tpu.matmul %24, %70, %cst_40 {dimension_numbers = #tpu.dot_dimension_numbers<[1], [0], [0], [1], [0, 0, 1, 1], [], []>} : vector<16x32xf32>, vector<32x8xf32>, vector<16x8xf32> -> vector<16x8xf32>
    %72 = vector.shape_cast %71 : vector<16x8xf32> to vector<2x8x8xf32>
    %c9 = arith.constant 9 : index
    %c0_41 = arith.constant 0 : index
    %c0_42 = arith.constant 0 : index
    %73 = vector.load %arg2[%c9, %c0_41, %c0_42] : memref<24x32x8xf32, #tpu.memory_space<vmem>>, vector<1x32x8xf32>
    %74 = vector.shape_cast %73 : vector<1x32x8xf32> to vector<32x8xf32>
    %cst_43 = arith.constant dense<0.000000e+00> : vector<16x8xf32>
    %75 = tpu.matmul %24, %74, %cst_43 {dimension_numbers = #tpu.dot_dimension_numbers<[1], [0], [0], [1], [0, 0, 1, 1], [], []>} : vector<16x32xf32>, vector<32x8xf32>, vector<16x8xf32> -> vector<16x8xf32>
    %76 = vector.shape_cast %75 : vector<16x8xf32> to vector<2x8x8xf32>
    "tpu.trace_start"() <{level = 10 : i32, message = "bqd,bkd->bqk"}> : () -> ()
    %cst_44 = arith.constant dense<0.000000e+00> : vector<2x8x8xf32>
    %77 = tpu.matmul %68, %72, %cst_44 {dimension_numbers = #tpu.dot_dimension_numbers<[2], [2], [1], [1], [0, 0, 0, 1, 1, 1], [0], [0]>} : vector<2x8x8xf32>, vector<2x8x8xf32>, vector<2x8x8xf32> -> vector<2x8x8xf32>
    "tpu.trace_stop"() : () -> ()
    %78 = arith.addf %77, %1 : vector<2x8x8xf32>
    %cst_45 = arith.constant dense<0xFF800000> : vector<2x8xf32>
    %79 = vector.multi_reduction <maximumf>, %78, %cst_45 [2] : vector<2x8x8xf32> to vector<2x8xf32>
    %80 = vector.shape_cast %79 : vector<2x8xf32> to vector<2x8x1xf32>
    %81 = vector.broadcast %80 : vector<2x8x1xf32> to vector<2x8x8xf32>
    %82 = arith.subf %78, %81 : vector<2x8x8xf32>
    %83 = math.exp %82 : vector<2x8x8xf32>
    %cst_46 = arith.constant dense<0.000000e+00> : vector<2x8xf32>
    %84 = vector.multi_reduction <add>, %83, %cst_46 [2] : vector<2x8x8xf32> to vector<2x8xf32>
    %85 = vector.shape_cast %84 : vector<2x8xf32> to vector<2x8x1xf32>
    %86 = tpu.reciprocal %85 {approx = true} : vector<2x8x1xf32> -> vector<2x8x1xf32>
    %87 = vector.broadcast %86 : vector<2x8x1xf32> to vector<2x8x8xf32>
    %88 = arith.mulf %83, %87 : vector<2x8x8xf32>
    "tpu.trace_start"() <{level = 10 : i32, message = "bqk,bkd->bqd"}> : () -> ()
    %cst_47 = arith.constant dense<0.000000e+00> : vector<2x8x8xf32>
    %89 = tpu.matmul %88, %76, %cst_47 {dimension_numbers = #tpu.dot_dimension_numbers<[2], [1], [1], [2], [0, 0, 0, 1, 1, 2], [0], [0]>} : vector<2x8x8xf32>, vector<2x8x8xf32>, vector<2x8x8xf32> -> vector<2x8x8xf32>
    "tpu.trace_stop"() : () -> ()
    %90 = vector.shape_cast %89 : vector<2x8x8xf32> to vector<16x8xf32>
    %c1_48 = arith.constant 1 : index
    %c0_49 = arith.constant 0 : index
    %c0_50 = arith.constant 0 : index
    %91 = vector.load %arg4[%c1_48, %c0_49, %c0_50] : memref<8x8x32xf32, #tpu.memory_space<vmem>>, vector<1x8x32xf32>
    %92 = vector.shape_cast %91 : vector<1x8x32xf32> to vector<8x32xf32>
    %cst_51 = arith.constant dense<0.000000e+00> : vector<16x32xf32>
    %93 = tpu.matmul %90, %92, %cst_51 {dimension_numbers = #tpu.dot_dimension_numbers<[1], [0], [0], [1], [0, 0, 1, 1], [], []>} : vector<16x8xf32>, vector<8x32xf32>, vector<16x32xf32> -> vector<16x32xf32>
    %94 = arith.addf %60, %93 : vector<16x32xf32>
    %c2 = arith.constant 2 : index
    %c0_52 = arith.constant 0 : index
    %c0_53 = arith.constant 0 : index
    %95 = vector.load %arg2[%c2, %c0_52, %c0_53] : memref<24x32x8xf32, #tpu.memory_space<vmem>>, vector<1x32x8xf32>
    %96 = vector.shape_cast %95 : vector<1x32x8xf32> to vector<32x8xf32>
    %cst_54 = arith.constant dense<0.000000e+00> : vector<16x8xf32>
    %97 = tpu.matmul %24, %96, %cst_54 {dimension_numbers = #tpu.dot_dimension_numbers<[1], [0], [0], [1], [0, 0, 1, 1], [], []>} : vector<16x32xf32>, vector<32x8xf32>, vector<16x8xf32> -> vector<16x8xf32>
    %c2_55 = arith.constant 2 : index
    %c0_56 = arith.constant 0 : index
    %c0_57 = arith.constant 0 : index
    %98 = vector.load %arg3[%c2_55, %c0_56, %c0_57] : memref<8x1x8xf32, #tpu.memory_space<vmem>>, vector<1x1x8xf32>
    %99 = vector.shape_cast %98 : vector<1x1x8xf32> to vector<1x8xf32>
    %100 = vector.broadcast %99 : vector<1x8xf32> to vector<16x8xf32>
    %101 = arith.addf %97, %100 : vector<16x8xf32>
    %102 = vector.shape_cast %101 : vector<16x8xf32> to vector<2x8x8xf32>
    %c6 = arith.constant 6 : index
    %c0_58 = arith.constant 0 : index
    %c0_59 = arith.constant 0 : index
    %103 = vector.load %arg2[%c6, %c0_58, %c0_59] : memref<24x32x8xf32, #tpu.memory_space<vmem>>, vector<1x32x8xf32>
    %104 = vector.shape_cast %103 : vector<1x32x8xf32> to vector<32x8xf32>
    %cst_60 = arith.constant dense<0.000000e+00> : vector<16x8xf32>
    %105 = tpu.matmul %24, %104, %cst_60 {dimension_numbers = #tpu.dot_dimension_numbers<[1], [0], [0], [1], [0, 0, 1, 1], [], []>} : vector<16x32xf32>, vector<32x8xf32>, vector<16x8xf32> -> vector<16x8xf32>
    %106 = vector.shape_cast %105 : vector<16x8xf32> to vector<2x8x8xf32>
    %c10 = arith.constant 10 : index
    %c0_61 = arith.constant 0 : index
    %c0_62 = arith.constant 0 : index
    %107 = vector.load %arg2[%c10, %c0_61, %c0_62] : memref<24x32x8xf32, #tpu.memory_space<vmem>>, vector<1x32x8xf32>
    %108 = vector.shape_cast %107 : vector<1x32x8xf32> to vector<32x8xf32>
    %cst_63 = arith.constant dense<0.000000e+00> : vector<16x8xf32>
    %109 = tpu.matmul %24, %108, %cst_63 {dimension_numbers = #tpu.dot_dimension_numbers<[1], [0], [0], [1], [0, 0, 1, 1], [], []>} : vector<16x32xf32>, vector<32x8xf32>, vector<16x8xf32> -> vector<16x8xf32>
    %110 = vector.shape_cast %109 : vector<16x8xf32> to vector<2x8x8xf32>
    "tpu.trace_start"() <{level = 10 : i32, message = "bqd,bkd->bqk"}> : () -> ()
    %cst_64 = arith.constant dense<0.000000e+00> : vector<2x8x8xf32>
    %111 = tpu.matmul %102, %106, %cst_64 {dimension_numbers = #tpu.dot_dimension_numbers<[2], [2], [1], [1], [0, 0, 0, 1, 1, 1], [0], [0]>} : vector<2x8x8xf32>, vector<2x8x8xf32>, vector<2x8x8xf32> -> vector<2x8x8xf32>
    "tpu.trace_stop"() : () -> ()
    %112 = arith.addf %111, %1 : vector<2x8x8xf32>
    %cst_65 = arith.constant dense<0xFF800000> : vector<2x8xf32>
    %113 = vector.multi_reduction <maximumf>, %112, %cst_65 [2] : vector<2x8x8xf32> to vector<2x8xf32>
    %114 = vector.shape_cast %113 : vector<2x8xf32> to vector<2x8x1xf32>
    %115 = vector.broadcast %114 : vector<2x8x1xf32> to vector<2x8x8xf32>
    %116 = arith.subf %112, %115 : vector<2x8x8xf32>
    %117 = math.exp %116 : vector<2x8x8xf32>
    %cst_66 = arith.constant dense<0.000000e+00> : vector<2x8xf32>
    %118 = vector.multi_reduction <add>, %117, %cst_66 [2] : vector<2x8x8xf32> to vector<2x8xf32>
    %119 = vector.shape_cast %118 : vector<2x8xf32> to vector<2x8x1xf32>
    %120 = tpu.reciprocal %119 {approx = true} : vector<2x8x1xf32> -> vector<2x8x1xf32>
    %121 = vector.broadcast %120 : vector<2x8x1xf32> to vector<2x8x8xf32>
    %122 = arith.mulf %117, %121 : vector<2x8x8xf32>
    "tpu.trace_start"() <{level = 10 : i32, message = "bqk,bkd->bqd"}> : () -> ()
    %cst_67 = arith.constant dense<0.000000e+00> : vector<2x8x8xf32>
    %123 = tpu.matmul %122, %110, %cst_67 {dimension_numbers = #tpu.dot_dimension_numbers<[2], [1], [1], [2], [0, 0, 0, 1, 1, 2], [0], [0]>} : vector<2x8x8xf32>, vector<2x8x8xf32>, vector<2x8x8xf32> -> vector<2x8x8xf32>
    "tpu.trace_stop"() : () -> ()
    %124 = vector.shape_cast %123 : vector<2x8x8xf32> to vector<16x8xf32>
    %c2_68 = arith.constant 2 : index
    %c0_69 = arith.constant 0 : index
    %c0_70 = arith.constant 0 : index
    %125 = vector.load %arg4[%c2_68, %c0_69, %c0_70] : memref<8x8x32xf32, #tpu.memory_space<vmem>>, vector<1x8x32xf32>
    %126 = vector.shape_cast %125 : vector<1x8x32xf32> to vector<8x32xf32>
    %cst_71 = arith.constant dense<0.000000e+00> : vector<16x32xf32>
    %127 = tpu.matmul %124, %126, %cst_71 {dimension_numbers = #tpu.dot_dimension_numbers<[1], [0], [0], [1], [0, 0, 1, 1], [], []>} : vector<16x8xf32>, vector<8x32xf32>, vector<16x32xf32> -> vector<16x32xf32>
    %128 = arith.addf %94, %127 : vector<16x32xf32>
    %c3 = arith.constant 3 : index
    %c0_72 = arith.constant 0 : index
    %c0_73 = arith.constant 0 : index
    %129 = vector.load %arg2[%c3, %c0_72, %c0_73] : memref<24x32x8xf32, #tpu.memory_space<vmem>>, vector<1x32x8xf32>
    %130 = vector.shape_cast %129 : vector<1x32x8xf32> to vector<32x8xf32>
    %cst_74 = arith.constant dense<0.000000e+00> : vector<16x8xf32>
    %131 = tpu.matmul %24, %130, %cst_74 {dimension_numbers = #tpu.dot_dimension_numbers<[1], [0], [0], [1], [0, 0, 1, 1], [], []>} : vector<16x32xf32>, vector<32x8xf32>, vector<16x8xf32> -> vector<16x8xf32>
    %c3_75 = arith.constant 3 : index
    %c0_76 = arith.constant 0 : index
    %c0_77 = arith.constant 0 : index
    %132 = vector.load %arg3[%c3_75, %c0_76, %c0_77] : memref<8x1x8xf32, #tpu.memory_space<vmem>>, vector<1x1x8xf32>
    %133 = vector.shape_cast %132 : vector<1x1x8xf32> to vector<1x8xf32>
    %134 = vector.broadcast %133 : vector<1x8xf32> to vector<16x8xf32>
    %135 = arith.addf %131, %134 : vector<16x8xf32>
    %136 = vector.shape_cast %135 : vector<16x8xf32> to vector<2x8x8xf32>
    %c7 = arith.constant 7 : index
    %c0_78 = arith.constant 0 : index
    %c0_79 = arith.constant 0 : index
    %137 = vector.load %arg2[%c7, %c0_78, %c0_79] : memref<24x32x8xf32, #tpu.memory_space<vmem>>, vector<1x32x8xf32>
    %138 = vector.shape_cast %137 : vector<1x32x8xf32> to vector<32x8xf32>
    %cst_80 = arith.constant dense<0.000000e+00> : vector<16x8xf32>
    %139 = tpu.matmul %24, %138, %cst_80 {dimension_numbers = #tpu.dot_dimension_numbers<[1], [0], [0], [1], [0, 0, 1, 1], [], []>} : vector<16x32xf32>, vector<32x8xf32>, vector<16x8xf32> -> vector<16x8xf32>
    %140 = vector.shape_cast %139 : vector<16x8xf32> to vector<2x8x8xf32>
    %c11 = arith.constant 11 : index
    %c0_81 = arith.constant 0 : index
    %c0_82 = arith.constant 0 : index
    %141 = vector.load %arg2[%c11, %c0_81, %c0_82] : memref<24x32x8xf32, #tpu.memory_space<vmem>>, vector<1x32x8xf32>
    %142 = vector.shape_cast %141 : vector<1x32x8xf32> to vector<32x8xf32>
    %cst_83 = arith.constant dense<0.000000e+00> : vector<16x8xf32>
    %143 = tpu.matmul %24, %142, %cst_83 {dimension_numbers = #tpu.dot_dimension_numbers<[1], [0], [0], [1], [0, 0, 1, 1], [], []>} : vector<16x32xf32>, vector<32x8xf32>, vector<16x8xf32> -> vector<16x8xf32>
    %144 = vector.shape_cast %143 : vector<16x8xf32> to vector<2x8x8xf32>
    "tpu.trace_start"() <{level = 10 : i32, message = "bqd,bkd->bqk"}> : () -> ()
    %cst_84 = arith.constant dense<0.000000e+00> : vector<2x8x8xf32>
    %145 = tpu.matmul %136, %140, %cst_84 {dimension_numbers = #tpu.dot_dimension_numbers<[2], [2], [1], [1], [0, 0, 0, 1, 1, 1], [0], [0]>} : vector<2x8x8xf32>, vector<2x8x8xf32>, vector<2x8x8xf32> -> vector<2x8x8xf32>
    "tpu.trace_stop"() : () -> ()
    %146 = arith.addf %145, %1 : vector<2x8x8xf32>
    %cst_85 = arith.constant dense<0xFF800000> : vector<2x8xf32>
    %147 = vector.multi_reduction <maximumf>, %146, %cst_85 [2] : vector<2x8x8xf32> to vector<2x8xf32>
    %148 = vector.shape_cast %147 : vector<2x8xf32> to vector<2x8x1xf32>
    %149 = vector.broadcast %148 : vector<2x8x1xf32> to vector<2x8x8xf32>
    %150 = arith.subf %146, %149 : vector<2x8x8xf32>
    %151 = math.exp %150 : vector<2x8x8xf32>
    %cst_86 = arith.constant dense<0.000000e+00> : vector<2x8xf32>
    %152 = vector.multi_reduction <add>, %151, %cst_86 [2] : vector<2x8x8xf32> to vector<2x8xf32>
    %153 = vector.shape_cast %152 : vector<2x8xf32> to vector<2x8x1xf32>
    %154 = tpu.reciprocal %153 {approx = true} : vector<2x8x1xf32> -> vector<2x8x1xf32>
    %155 = vector.broadcast %154 : vector<2x8x1xf32> to vector<2x8x8xf32>
    %156 = arith.mulf %151, %155 : vector<2x8x8xf32>
    "tpu.trace_start"() <{level = 10 : i32, message = "bqk,bkd->bqd"}> : () -> ()
    %cst_87 = arith.constant dense<0.000000e+00> : vector<2x8x8xf32>
    %157 = tpu.matmul %156, %144, %cst_87 {dimension_numbers = #tpu.dot_dimension_numbers<[2], [1], [1], [2], [0, 0, 0, 1, 1, 2], [0], [0]>} : vector<2x8x8xf32>, vector<2x8x8xf32>, vector<2x8x8xf32> -> vector<2x8x8xf32>
    "tpu.trace_stop"() : () -> ()
    %158 = vector.shape_cast %157 : vector<2x8x8xf32> to vector<16x8xf32>
    %c3_88 = arith.constant 3 : index
    %c0_89 = arith.constant 0 : index
    %c0_90 = arith.constant 0 : index
    %159 = vector.load %arg4[%c3_88, %c0_89, %c0_90] : memref<8x8x32xf32, #tpu.memory_space<vmem>>, vector<1x8x32xf32>
    %160 = vector.shape_cast %159 : vector<1x8x32xf32> to vector<8x32xf32>
    %cst_91 = arith.constant dense<0.000000e+00> : vector<16x32xf32>
    %161 = tpu.matmul %158, %160, %cst_91 {dimension_numbers = #tpu.dot_dimension_numbers<[1], [0], [0], [1], [0, 0, 1, 1], [], []>} : vector<16x8xf32>, vector<8x32xf32>, vector<16x32xf32> -> vector<16x32xf32>
    %162 = arith.addf %128, %161 : vector<16x32xf32>
    %cst_92 = arith.constant dense<0.000000e+00> : vector<16xf32>
    %163 = vector.multi_reduction <add>, %162, %cst_92 [1] : vector<16x32xf32> to vector<16xf32>
    %164 = vector.shape_cast %163 : vector<16xf32> to vector<16x1xf32>
    %cst_93 = arith.constant 3.200000e+01 : f32
    %165 = vector.broadcast %cst_93 : f32 to vector<16x1xf32>
    %166 = arith.divf %164, %165 : vector<16x1xf32>
    %167 = arith.mulf %162, %162 : vector<16x32xf32>
    %cst_94 = arith.constant dense<0.000000e+00> : vector<16xf32>
    %168 = vector.multi_reduction <add>, %167, %cst_94 [1] : vector<16x32xf32> to vector<16xf32>
    %169 = vector.shape_cast %168 : vector<16xf32> to vector<16x1xf32>
    %cst_95 = arith.constant 3.200000e+01 : f32
    %170 = vector.broadcast %cst_95 : f32 to vector<16x1xf32>
    %171 = arith.divf %169, %170 : vector<16x1xf32>
    %172 = arith.mulf %166, %166 : vector<16x1xf32>
    %173 = arith.subf %171, %172 : vector<16x1xf32>
    %174 = vector.broadcast %166 : vector<16x1xf32> to vector<16x32xf32>
    %175 = arith.subf %162, %174 : vector<16x32xf32>
    %cst_96 = arith.constant 9.99999974E-6 : f32
    %176 = vector.broadcast %cst_96 : f32 to vector<16x1xf32>
    %177 = arith.addf %173, %176 : vector<16x1xf32>
    %178 = math.rsqrt %177 : vector<16x1xf32>
    %179 = vector.broadcast %178 : vector<16x1xf32> to vector<16x32xf32>
    %180 = arith.mulf %175, %179 : vector<16x32xf32>
    %c0_97 = arith.constant 0 : index
    %c0_98 = arith.constant 0 : index
    %c0_99 = arith.constant 0 : index
    %181 = vector.load %arg5[%c0_97, %c0_98, %c0_99] : memref<2x32x128xf32, #tpu.memory_space<vmem>>, vector<1x32x128xf32>
    %182 = vector.shape_cast %181 : vector<1x32x128xf32> to vector<32x128xf32>
    %cst_100 = arith.constant dense<0.000000e+00> : vector<16x128xf32>
    %183 = tpu.matmul %180, %182, %cst_100 {dimension_numbers = #tpu.dot_dimension_numbers<[1], [0], [0], [1], [0, 0, 1, 1], [], []>} : vector<16x32xf32>, vector<32x128xf32>, vector<16x128xf32> -> vector<16x128xf32>
    %184 = vector.broadcast %4 : vector<1x128xf32> to vector<16x128xf32>
    %185 = arith.addf %183, %184 : vector<16x128xf32>
    %186 = arith.mulf %185, %185 : vector<16x128xf32>
    %187 = arith.mulf %185, %186 : vector<16x128xf32>
    %cst_101 = arith.constant 4.471500e-02 : f32
    %188 = vector.broadcast %cst_101 : f32 to vector<16x128xf32>
    %189 = arith.mulf %188, %187 : vector<16x128xf32>
    %190 = arith.addf %185, %189 : vector<16x128xf32>
    %cst_102 = arith.constant 0.797884583 : f32
    %191 = vector.broadcast %cst_102 : f32 to vector<16x128xf32>
    %192 = arith.mulf %191, %190 : vector<16x128xf32>
    %193 = math.tanh %192 : vector<16x128xf32>
    %cst_103 = arith.constant 1.000000e+00 : f32
    %194 = vector.broadcast %cst_103 : f32 to vector<16x128xf32>
    %195 = arith.addf %194, %193 : vector<16x128xf32>
    %cst_104 = arith.constant 5.000000e-01 : f32
    %196 = vector.broadcast %cst_104 : f32 to vector<16x128xf32>
    %197 = arith.mulf %196, %195 : vector<16x128xf32>
    %198 = arith.mulf %185, %197 : vector<16x128xf32>
    %c0_105 = arith.constant 0 : index
    %c0_106 = arith.constant 0 : index
    %c0_107 = arith.constant 0 : index
    %199 = vector.load %arg6[%c0_105, %c0_106, %c0_107] : memref<2x128x32xf32, #tpu.memory_space<vmem>>, vector<1x128x32xf32>
    %200 = vector.shape_cast %199 : vector<1x128x32xf32> to vector<128x32xf32>
    %cst_108 = arith.constant dense<0.000000e+00> : vector<16x32xf32>
    %201 = tpu.matmul %198, %200, %cst_108 {dimension_numbers = #tpu.dot_dimension_numbers<[1], [0], [0], [1], [0, 0, 1, 1], [], []>} : vector<16x128xf32>, vector<128x32xf32>, vector<16x32xf32> -> vector<16x32xf32>
    %202 = arith.addf %162, %201 : vector<16x32xf32>
    %203 = vector.broadcast %6 : vector<1x32xf32> to vector<16x32xf32>
    %204 = arith.addf %202, %203 : vector<16x32xf32>
    %c1_109 = arith.constant 1 : index
    %c0_110 = arith.constant 0 : index
    %c0_111 = arith.constant 0 : index
    %205 = vector.load %arg8[%c1_109, %c0_110, %c0_111] : memref<3x3x128xf32, #tpu.memory_space<vmem>>, vector<1x3x128xf32>
    %206 = vector.shape_cast %205 : vector<1x3x128xf32> to vector<3x128xf32>
    %207 = vector.extract_strided_slice %206 {offsets = [0, 0], sizes = [1, 128], strides = [1, 1]} : vector<3x128xf32> to vector<1x128xf32>
    %208 = vector.extract_strided_slice %206 {offsets = [1, 0], sizes = [1, 32], strides = [1, 1]} : vector<3x128xf32> to vector<1x32xf32>
    %209 = vector.extract_strided_slice %206 {offsets = [2, 0], sizes = [1, 32], strides = [1, 1]} : vector<3x128xf32> to vector<1x32xf32>
    %cst_112 = arith.constant dense<0.000000e+00> : vector<16xf32>
    %210 = vector.multi_reduction <add>, %204, %cst_112 [1] : vector<16x32xf32> to vector<16xf32>
    %211 = vector.shape_cast %210 : vector<16xf32> to vector<16x1xf32>
    %cst_113 = arith.constant 3.200000e+01 : f32
    %212 = vector.broadcast %cst_113 : f32 to vector<16x1xf32>
    %213 = arith.divf %211, %212 : vector<16x1xf32>
    %214 = arith.mulf %204, %204 : vector<16x32xf32>
    %cst_114 = arith.constant dense<0.000000e+00> : vector<16xf32>
    %215 = vector.multi_reduction <add>, %214, %cst_114 [1] : vector<16x32xf32> to vector<16xf32>
    %216 = vector.shape_cast %215 : vector<16xf32> to vector<16x1xf32>
    %cst_115 = arith.constant 3.200000e+01 : f32
    %217 = vector.broadcast %cst_115 : f32 to vector<16x1xf32>
    %218 = arith.divf %216, %217 : vector<16x1xf32>
    %219 = arith.mulf %213, %213 : vector<16x1xf32>
    %220 = arith.subf %218, %219 : vector<16x1xf32>
    %221 = vector.broadcast %213 : vector<16x1xf32> to vector<16x32xf32>
    %222 = arith.subf %204, %221 : vector<16x32xf32>
    %cst_116 = arith.constant 9.99999974E-6 : f32
    %223 = vector.broadcast %cst_116 : f32 to vector<16x1xf32>
    %224 = arith.addf %220, %223 : vector<16x1xf32>
    %225 = math.rsqrt %224 : vector<16x1xf32>
    %226 = vector.broadcast %225 : vector<16x1xf32> to vector<16x32xf32>
    %227 = arith.mulf %222, %226 : vector<16x32xf32>
    %228 = vector.broadcast %208 : vector<1x32xf32> to vector<16x32xf32>
    %229 = arith.addf %204, %228 : vector<16x32xf32>
    %c12 = arith.constant 12 : index
    %c0_117 = arith.constant 0 : index
    %c0_118 = arith.constant 0 : index
    %230 = vector.load %arg2[%c12, %c0_117, %c0_118] : memref<24x32x8xf32, #tpu.memory_space<vmem>>, vector<1x32x8xf32>
    %231 = vector.shape_cast %230 : vector<1x32x8xf32> to vector<32x8xf32>
    %cst_119 = arith.constant dense<0.000000e+00> : vector<16x8xf32>
    %232 = tpu.matmul %227, %231, %cst_119 {dimension_numbers = #tpu.dot_dimension_numbers<[1], [0], [0], [1], [0, 0, 1, 1], [], []>} : vector<16x32xf32>, vector<32x8xf32>, vector<16x8xf32> -> vector<16x8xf32>
    %c4_120 = arith.constant 4 : index
    %c0_121 = arith.constant 0 : index
    %c0_122 = arith.constant 0 : index
    %233 = vector.load %arg3[%c4_120, %c0_121, %c0_122] : memref<8x1x8xf32, #tpu.memory_space<vmem>>, vector<1x1x8xf32>
    %234 = vector.shape_cast %233 : vector<1x1x8xf32> to vector<1x8xf32>
    %235 = vector.broadcast %234 : vector<1x8xf32> to vector<16x8xf32>
    %236 = arith.addf %232, %235 : vector<16x8xf32>
    %237 = vector.shape_cast %236 : vector<16x8xf32> to vector<2x8x8xf32>
    %c16 = arith.constant 16 : index
    %c0_123 = arith.constant 0 : index
    %c0_124 = arith.constant 0 : index
    %238 = vector.load %arg2[%c16, %c0_123, %c0_124] : memref<24x32x8xf32, #tpu.memory_space<vmem>>, vector<1x32x8xf32>
    %239 = vector.shape_cast %238 : vector<1x32x8xf32> to vector<32x8xf32>
    %cst_125 = arith.constant dense<0.000000e+00> : vector<16x8xf32>
    %240 = tpu.matmul %227, %239, %cst_125 {dimension_numbers = #tpu.dot_dimension_numbers<[1], [0], [0], [1], [0, 0, 1, 1], [], []>} : vector<16x32xf32>, vector<32x8xf32>, vector<16x8xf32> -> vector<16x8xf32>
    %241 = vector.shape_cast %240 : vector<16x8xf32> to vector<2x8x8xf32>
    %c20 = arith.constant 20 : index
    %c0_126 = arith.constant 0 : index
    %c0_127 = arith.constant 0 : index
    %242 = vector.load %arg2[%c20, %c0_126, %c0_127] : memref<24x32x8xf32, #tpu.memory_space<vmem>>, vector<1x32x8xf32>
    %243 = vector.shape_cast %242 : vector<1x32x8xf32> to vector<32x8xf32>
    %cst_128 = arith.constant dense<0.000000e+00> : vector<16x8xf32>
    %244 = tpu.matmul %227, %243, %cst_128 {dimension_numbers = #tpu.dot_dimension_numbers<[1], [0], [0], [1], [0, 0, 1, 1], [], []>} : vector<16x32xf32>, vector<32x8xf32>, vector<16x8xf32> -> vector<16x8xf32>
    %245 = vector.shape_cast %244 : vector<16x8xf32> to vector<2x8x8xf32>
    "tpu.trace_start"() <{level = 10 : i32, message = "bqd,bkd->bqk"}> : () -> ()
    %cst_129 = arith.constant dense<0.000000e+00> : vector<2x8x8xf32>
    %246 = tpu.matmul %237, %241, %cst_129 {dimension_numbers = #tpu.dot_dimension_numbers<[2], [2], [1], [1], [0, 0, 0, 1, 1, 1], [0], [0]>} : vector<2x8x8xf32>, vector<2x8x8xf32>, vector<2x8x8xf32> -> vector<2x8x8xf32>
    "tpu.trace_stop"() : () -> ()
    %247 = arith.addf %246, %1 : vector<2x8x8xf32>
    %cst_130 = arith.constant dense<0xFF800000> : vector<2x8xf32>
    %248 = vector.multi_reduction <maximumf>, %247, %cst_130 [2] : vector<2x8x8xf32> to vector<2x8xf32>
    %249 = vector.shape_cast %248 : vector<2x8xf32> to vector<2x8x1xf32>
    %250 = vector.broadcast %249 : vector<2x8x1xf32> to vector<2x8x8xf32>
    %251 = arith.subf %247, %250 : vector<2x8x8xf32>
    %252 = math.exp %251 : vector<2x8x8xf32>
    %cst_131 = arith.constant dense<0.000000e+00> : vector<2x8xf32>
    %253 = vector.multi_reduction <add>, %252, %cst_131 [2] : vector<2x8x8xf32> to vector<2x8xf32>
    %254 = vector.shape_cast %253 : vector<2x8xf32> to vector<2x8x1xf32>
    %255 = tpu.reciprocal %254 {approx = true} : vector<2x8x1xf32> -> vector<2x8x1xf32>
    %256 = vector.broadcast %255 : vector<2x8x1xf32> to vector<2x8x8xf32>
    %257 = arith.mulf %252, %256 : vector<2x8x8xf32>
    "tpu.trace_start"() <{level = 10 : i32, message = "bqk,bkd->bqd"}> : () -> ()
    %cst_132 = arith.constant dense<0.000000e+00> : vector<2x8x8xf32>
    %258 = tpu.matmul %257, %245, %cst_132 {dimension_numbers = #tpu.dot_dimension_numbers<[2], [1], [1], [2], [0, 0, 0, 1, 1, 2], [0], [0]>} : vector<2x8x8xf32>, vector<2x8x8xf32>, vector<2x8x8xf32> -> vector<2x8x8xf32>
    "tpu.trace_stop"() : () -> ()
    %259 = vector.shape_cast %258 : vector<2x8x8xf32> to vector<16x8xf32>
    %c4_133 = arith.constant 4 : index
    %c0_134 = arith.constant 0 : index
    %c0_135 = arith.constant 0 : index
    %260 = vector.load %arg4[%c4_133, %c0_134, %c0_135] : memref<8x8x32xf32, #tpu.memory_space<vmem>>, vector<1x8x32xf32>
    %261 = vector.shape_cast %260 : vector<1x8x32xf32> to vector<8x32xf32>
    %cst_136 = arith.constant dense<0.000000e+00> : vector<16x32xf32>
    %262 = tpu.matmul %259, %261, %cst_136 {dimension_numbers = #tpu.dot_dimension_numbers<[1], [0], [0], [1], [0, 0, 1, 1], [], []>} : vector<16x8xf32>, vector<8x32xf32>, vector<16x32xf32> -> vector<16x32xf32>
    %263 = arith.addf %229, %262 : vector<16x32xf32>
    %c13 = arith.constant 13 : index
    %c0_137 = arith.constant 0 : index
    %c0_138 = arith.constant 0 : index
    %264 = vector.load %arg2[%c13, %c0_137, %c0_138] : memref<24x32x8xf32, #tpu.memory_space<vmem>>, vector<1x32x8xf32>
    %265 = vector.shape_cast %264 : vector<1x32x8xf32> to vector<32x8xf32>
    %cst_139 = arith.constant dense<0.000000e+00> : vector<16x8xf32>
    %266 = tpu.matmul %227, %265, %cst_139 {dimension_numbers = #tpu.dot_dimension_numbers<[1], [0], [0], [1], [0, 0, 1, 1], [], []>} : vector<16x32xf32>, vector<32x8xf32>, vector<16x8xf32> -> vector<16x8xf32>
    %c5_140 = arith.constant 5 : index
    %c0_141 = arith.constant 0 : index
    %c0_142 = arith.constant 0 : index
    %267 = vector.load %arg3[%c5_140, %c0_141, %c0_142] : memref<8x1x8xf32, #tpu.memory_space<vmem>>, vector<1x1x8xf32>
    %268 = vector.shape_cast %267 : vector<1x1x8xf32> to vector<1x8xf32>
    %269 = vector.broadcast %268 : vector<1x8xf32> to vector<16x8xf32>
    %270 = arith.addf %266, %269 : vector<16x8xf32>
    %271 = vector.shape_cast %270 : vector<16x8xf32> to vector<2x8x8xf32>
    %c17 = arith.constant 17 : index
    %c0_143 = arith.constant 0 : index
    %c0_144 = arith.constant 0 : index
    %272 = vector.load %arg2[%c17, %c0_143, %c0_144] : memref<24x32x8xf32, #tpu.memory_space<vmem>>, vector<1x32x8xf32>
    %273 = vector.shape_cast %272 : vector<1x32x8xf32> to vector<32x8xf32>
    %cst_145 = arith.constant dense<0.000000e+00> : vector<16x8xf32>
    %274 = tpu.matmul %227, %273, %cst_145 {dimension_numbers = #tpu.dot_dimension_numbers<[1], [0], [0], [1], [0, 0, 1, 1], [], []>} : vector<16x32xf32>, vector<32x8xf32>, vector<16x8xf32> -> vector<16x8xf32>
    %275 = vector.shape_cast %274 : vector<16x8xf32> to vector<2x8x8xf32>
    %c21 = arith.constant 21 : index
    %c0_146 = arith.constant 0 : index
    %c0_147 = arith.constant 0 : index
    %276 = vector.load %arg2[%c21, %c0_146, %c0_147] : memref<24x32x8xf32, #tpu.memory_space<vmem>>, vector<1x32x8xf32>
    %277 = vector.shape_cast %276 : vector<1x32x8xf32> to vector<32x8xf32>
    %cst_148 = arith.constant dense<0.000000e+00> : vector<16x8xf32>
    %278 = tpu.matmul %227, %277, %cst_148 {dimension_numbers = #tpu.dot_dimension_numbers<[1], [0], [0], [1], [0, 0, 1, 1], [], []>} : vector<16x32xf32>, vector<32x8xf32>, vector<16x8xf32> -> vector<16x8xf32>
    %279 = vector.shape_cast %278 : vector<16x8xf32> to vector<2x8x8xf32>
    "tpu.trace_start"() <{level = 10 : i32, message = "bqd,bkd->bqk"}> : () -> ()
    %cst_149 = arith.constant dense<0.000000e+00> : vector<2x8x8xf32>
    %280 = tpu.matmul %271, %275, %cst_149 {dimension_numbers = #tpu.dot_dimension_numbers<[2], [2], [1], [1], [0, 0, 0, 1, 1, 1], [0], [0]>} : vector<2x8x8xf32>, vector<2x8x8xf32>, vector<2x8x8xf32> -> vector<2x8x8xf32>
    "tpu.trace_stop"() : () -> ()
    %281 = arith.addf %280, %1 : vector<2x8x8xf32>
    %cst_150 = arith.constant dense<0xFF800000> : vector<2x8xf32>
    %282 = vector.multi_reduction <maximumf>, %281, %cst_150 [2] : vector<2x8x8xf32> to vector<2x8xf32>
    %283 = vector.shape_cast %282 : vector<2x8xf32> to vector<2x8x1xf32>
    %284 = vector.broadcast %283 : vector<2x8x1xf32> to vector<2x8x8xf32>
    %285 = arith.subf %281, %284 : vector<2x8x8xf32>
    %286 = math.exp %285 : vector<2x8x8xf32>
    %cst_151 = arith.constant dense<0.000000e+00> : vector<2x8xf32>
    %287 = vector.multi_reduction <add>, %286, %cst_151 [2] : vector<2x8x8xf32> to vector<2x8xf32>
    %288 = vector.shape_cast %287 : vector<2x8xf32> to vector<2x8x1xf32>
    %289 = tpu.reciprocal %288 {approx = true} : vector<2x8x1xf32> -> vector<2x8x1xf32>
    %290 = vector.broadcast %289 : vector<2x8x1xf32> to vector<2x8x8xf32>
    %291 = arith.mulf %286, %290 : vector<2x8x8xf32>
    "tpu.trace_start"() <{level = 10 : i32, message = "bqk,bkd->bqd"}> : () -> ()
    %cst_152 = arith.constant dense<0.000000e+00> : vector<2x8x8xf32>
    %292 = tpu.matmul %291, %279, %cst_152 {dimension_numbers = #tpu.dot_dimension_numbers<[2], [1], [1], [2], [0, 0, 0, 1, 1, 2], [0], [0]>} : vector<2x8x8xf32>, vector<2x8x8xf32>, vector<2x8x8xf32> -> vector<2x8x8xf32>
    "tpu.trace_stop"() : () -> ()
    %293 = vector.shape_cast %292 : vector<2x8x8xf32> to vector<16x8xf32>
    %c5_153 = arith.constant 5 : index
    %c0_154 = arith.constant 0 : index
    %c0_155 = arith.constant 0 : index
    %294 = vector.load %arg4[%c5_153, %c0_154, %c0_155] : memref<8x8x32xf32, #tpu.memory_space<vmem>>, vector<1x8x32xf32>
    %295 = vector.shape_cast %294 : vector<1x8x32xf32> to vector<8x32xf32>
    %cst_156 = arith.constant dense<0.000000e+00> : vector<16x32xf32>
    %296 = tpu.matmul %293, %295, %cst_156 {dimension_numbers = #tpu.dot_dimension_numbers<[1], [0], [0], [1], [0, 0, 1, 1], [], []>} : vector<16x8xf32>, vector<8x32xf32>, vector<16x32xf32> -> vector<16x32xf32>
    %297 = arith.addf %263, %296 : vector<16x32xf32>
    %c14 = arith.constant 14 : index
    %c0_157 = arith.constant 0 : index
    %c0_158 = arith.constant 0 : index
    %298 = vector.load %arg2[%c14, %c0_157, %c0_158] : memref<24x32x8xf32, #tpu.memory_space<vmem>>, vector<1x32x8xf32>
    %299 = vector.shape_cast %298 : vector<1x32x8xf32> to vector<32x8xf32>
    %cst_159 = arith.constant dense<0.000000e+00> : vector<16x8xf32>
    %300 = tpu.matmul %227, %299, %cst_159 {dimension_numbers = #tpu.dot_dimension_numbers<[1], [0], [0], [1], [0, 0, 1, 1], [], []>} : vector<16x32xf32>, vector<32x8xf32>, vector<16x8xf32> -> vector<16x8xf32>
    %c6_160 = arith.constant 6 : index
    %c0_161 = arith.constant 0 : index
    %c0_162 = arith.constant 0 : index
    %301 = vector.load %arg3[%c6_160, %c0_161, %c0_162] : memref<8x1x8xf32, #tpu.memory_space<vmem>>, vector<1x1x8xf32>
    %302 = vector.shape_cast %301 : vector<1x1x8xf32> to vector<1x8xf32>
    %303 = vector.broadcast %302 : vector<1x8xf32> to vector<16x8xf32>
    %304 = arith.addf %300, %303 : vector<16x8xf32>
    %305 = vector.shape_cast %304 : vector<16x8xf32> to vector<2x8x8xf32>
    %c18 = arith.constant 18 : index
    %c0_163 = arith.constant 0 : index
    %c0_164 = arith.constant 0 : index
    %306 = vector.load %arg2[%c18, %c0_163, %c0_164] : memref<24x32x8xf32, #tpu.memory_space<vmem>>, vector<1x32x8xf32>
    %307 = vector.shape_cast %306 : vector<1x32x8xf32> to vector<32x8xf32>
    %cst_165 = arith.constant dense<0.000000e+00> : vector<16x8xf32>
    %308 = tpu.matmul %227, %307, %cst_165 {dimension_numbers = #tpu.dot_dimension_numbers<[1], [0], [0], [1], [0, 0, 1, 1], [], []>} : vector<16x32xf32>, vector<32x8xf32>, vector<16x8xf32> -> vector<16x8xf32>
    %309 = vector.shape_cast %308 : vector<16x8xf32> to vector<2x8x8xf32>
    %c22 = arith.constant 22 : index
    %c0_166 = arith.constant 0 : index
    %c0_167 = arith.constant 0 : index
    %310 = vector.load %arg2[%c22, %c0_166, %c0_167] : memref<24x32x8xf32, #tpu.memory_space<vmem>>, vector<1x32x8xf32>
    %311 = vector.shape_cast %310 : vector<1x32x8xf32> to vector<32x8xf32>
    %cst_168 = arith.constant dense<0.000000e+00> : vector<16x8xf32>
    %312 = tpu.matmul %227, %311, %cst_168 {dimension_numbers = #tpu.dot_dimension_numbers<[1], [0], [0], [1], [0, 0, 1, 1], [], []>} : vector<16x32xf32>, vector<32x8xf32>, vector<16x8xf32> -> vector<16x8xf32>
    %313 = vector.shape_cast %312 : vector<16x8xf32> to vector<2x8x8xf32>
    "tpu.trace_start"() <{level = 10 : i32, message = "bqd,bkd->bqk"}> : () -> ()
    %cst_169 = arith.constant dense<0.000000e+00> : vector<2x8x8xf32>
    %314 = tpu.matmul %305, %309, %cst_169 {dimension_numbers = #tpu.dot_dimension_numbers<[2], [2], [1], [1], [0, 0, 0, 1, 1, 1], [0], [0]>} : vector<2x8x8xf32>, vector<2x8x8xf32>, vector<2x8x8xf32> -> vector<2x8x8xf32>
    "tpu.trace_stop"() : () -> ()
    %315 = arith.addf %314, %1 : vector<2x8x8xf32>
    %cst_170 = arith.constant dense<0xFF800000> : vector<2x8xf32>
    %316 = vector.multi_reduction <maximumf>, %315, %cst_170 [2] : vector<2x8x8xf32> to vector<2x8xf32>
    %317 = vector.shape_cast %316 : vector<2x8xf32> to vector<2x8x1xf32>
    %318 = vector.broadcast %317 : vector<2x8x1xf32> to vector<2x8x8xf32>
    %319 = arith.subf %315, %318 : vector<2x8x8xf32>
    %320 = math.exp %319 : vector<2x8x8xf32>
    %cst_171 = arith.constant dense<0.000000e+00> : vector<2x8xf32>
    %321 = vector.multi_reduction <add>, %320, %cst_171 [2] : vector<2x8x8xf32> to vector<2x8xf32>
    %322 = vector.shape_cast %321 : vector<2x8xf32> to vector<2x8x1xf32>
    %323 = tpu.reciprocal %322 {approx = true} : vector<2x8x1xf32> -> vector<2x8x1xf32>
    %324 = vector.broadcast %323 : vector<2x8x1xf32> to vector<2x8x8xf32>
    %325 = arith.mulf %320, %324 : vector<2x8x8xf32>
    "tpu.trace_start"() <{level = 10 : i32, message = "bqk,bkd->bqd"}> : () -> ()
    %cst_172 = arith.constant dense<0.000000e+00> : vector<2x8x8xf32>
    %326 = tpu.matmul %325, %313, %cst_172 {dimension_numbers = #tpu.dot_dimension_numbers<[2], [1], [1], [2], [0, 0, 0, 1, 1, 2], [0], [0]>} : vector<2x8x8xf32>, vector<2x8x8xf32>, vector<2x8x8xf32> -> vector<2x8x8xf32>
    "tpu.trace_stop"() : () -> ()
    %327 = vector.shape_cast %326 : vector<2x8x8xf32> to vector<16x8xf32>
    %c6_173 = arith.constant 6 : index
    %c0_174 = arith.constant 0 : index
    %c0_175 = arith.constant 0 : index
    %328 = vector.load %arg4[%c6_173, %c0_174, %c0_175] : memref<8x8x32xf32, #tpu.memory_space<vmem>>, vector<1x8x32xf32>
    %329 = vector.shape_cast %328 : vector<1x8x32xf32> to vector<8x32xf32>
    %cst_176 = arith.constant dense<0.000000e+00> : vector<16x32xf32>
    %330 = tpu.matmul %327, %329, %cst_176 {dimension_numbers = #tpu.dot_dimension_numbers<[1], [0], [0], [1], [0, 0, 1, 1], [], []>} : vector<16x8xf32>, vector<8x32xf32>, vector<16x32xf32> -> vector<16x32xf32>
    %331 = arith.addf %297, %330 : vector<16x32xf32>
    %c15 = arith.constant 15 : index
    %c0_177 = arith.constant 0 : index
    %c0_178 = arith.constant 0 : index
    %332 = vector.load %arg2[%c15, %c0_177, %c0_178] : memref<24x32x8xf32, #tpu.memory_space<vmem>>, vector<1x32x8xf32>
    %333 = vector.shape_cast %332 : vector<1x32x8xf32> to vector<32x8xf32>
    %cst_179 = arith.constant dense<0.000000e+00> : vector<16x8xf32>
    %334 = tpu.matmul %227, %333, %cst_179 {dimension_numbers = #tpu.dot_dimension_numbers<[1], [0], [0], [1], [0, 0, 1, 1], [], []>} : vector<16x32xf32>, vector<32x8xf32>, vector<16x8xf32> -> vector<16x8xf32>
    %c7_180 = arith.constant 7 : index
    %c0_181 = arith.constant 0 : index
    %c0_182 = arith.constant 0 : index
    %335 = vector.load %arg3[%c7_180, %c0_181, %c0_182] : memref<8x1x8xf32, #tpu.memory_space<vmem>>, vector<1x1x8xf32>
    %336 = vector.shape_cast %335 : vector<1x1x8xf32> to vector<1x8xf32>
    %337 = vector.broadcast %336 : vector<1x8xf32> to vector<16x8xf32>
    %338 = arith.addf %334, %337 : vector<16x8xf32>
    %339 = vector.shape_cast %338 : vector<16x8xf32> to vector<2x8x8xf32>
    %c19 = arith.constant 19 : index
    %c0_183 = arith.constant 0 : index
    %c0_184 = arith.constant 0 : index
    %340 = vector.load %arg2[%c19, %c0_183, %c0_184] : memref<24x32x8xf32, #tpu.memory_space<vmem>>, vector<1x32x8xf32>
    %341 = vector.shape_cast %340 : vector<1x32x8xf32> to vector<32x8xf32>
    %cst_185 = arith.constant dense<0.000000e+00> : vector<16x8xf32>
    %342 = tpu.matmul %227, %341, %cst_185 {dimension_numbers = #tpu.dot_dimension_numbers<[1], [0], [0], [1], [0, 0, 1, 1], [], []>} : vector<16x32xf32>, vector<32x8xf32>, vector<16x8xf32> -> vector<16x8xf32>
    %343 = vector.shape_cast %342 : vector<16x8xf32> to vector<2x8x8xf32>
    %c23 = arith.constant 23 : index
    %c0_186 = arith.constant 0 : index
    %c0_187 = arith.constant 0 : index
    %344 = vector.load %arg2[%c23, %c0_186, %c0_187] : memref<24x32x8xf32, #tpu.memory_space<vmem>>, vector<1x32x8xf32>
    %345 = vector.shape_cast %344 : vector<1x32x8xf32> to vector<32x8xf32>
    %cst_188 = arith.constant dense<0.000000e+00> : vector<16x8xf32>
    %346 = tpu.matmul %227, %345, %cst_188 {dimension_numbers = #tpu.dot_dimension_numbers<[1], [0], [0], [1], [0, 0, 1, 1], [], []>} : vector<16x32xf32>, vector<32x8xf32>, vector<16x8xf32> -> vector<16x8xf32>
    %347 = vector.shape_cast %346 : vector<16x8xf32> to vector<2x8x8xf32>
    "tpu.trace_start"() <{level = 10 : i32, message = "bqd,bkd->bqk"}> : () -> ()
    %cst_189 = arith.constant dense<0.000000e+00> : vector<2x8x8xf32>
    %348 = tpu.matmul %339, %343, %cst_189 {dimension_numbers = #tpu.dot_dimension_numbers<[2], [2], [1], [1], [0, 0, 0, 1, 1, 1], [0], [0]>} : vector<2x8x8xf32>, vector<2x8x8xf32>, vector<2x8x8xf32> -> vector<2x8x8xf32>
    "tpu.trace_stop"() : () -> ()
    %349 = arith.addf %348, %1 : vector<2x8x8xf32>
    %cst_190 = arith.constant dense<0xFF800000> : vector<2x8xf32>
    %350 = vector.multi_reduction <maximumf>, %349, %cst_190 [2] : vector<2x8x8xf32> to vector<2x8xf32>
    %351 = vector.shape_cast %350 : vector<2x8xf32> to vector<2x8x1xf32>
    %352 = vector.broadcast %351 : vector<2x8x1xf32> to vector<2x8x8xf32>
    %353 = arith.subf %349, %352 : vector<2x8x8xf32>
    %354 = math.exp %353 : vector<2x8x8xf32>
    %cst_191 = arith.constant dense<0.000000e+00> : vector<2x8xf32>
    %355 = vector.multi_reduction <add>, %354, %cst_191 [2] : vector<2x8x8xf32> to vector<2x8xf32>
    %356 = vector.shape_cast %355 : vector<2x8xf32> to vector<2x8x1xf32>
    %357 = tpu.reciprocal %356 {approx = true} : vector<2x8x1xf32> -> vector<2x8x1xf32>
    %358 = vector.broadcast %357 : vector<2x8x1xf32> to vector<2x8x8xf32>
    %359 = arith.mulf %354, %358 : vector<2x8x8xf32>
    "tpu.trace_start"() <{level = 10 : i32, message = "bqk,bkd->bqd"}> : () -> ()
    %cst_192 = arith.constant dense<0.000000e+00> : vector<2x8x8xf32>
    %360 = tpu.matmul %359, %347, %cst_192 {dimension_numbers = #tpu.dot_dimension_numbers<[2], [1], [1], [2], [0, 0, 0, 1, 1, 2], [0], [0]>} : vector<2x8x8xf32>, vector<2x8x8xf32>, vector<2x8x8xf32> -> vector<2x8x8xf32>
    "tpu.trace_stop"() : () -> ()
    %361 = vector.shape_cast %360 : vector<2x8x8xf32> to vector<16x8xf32>
    %c7_193 = arith.constant 7 : index
    %c0_194 = arith.constant 0 : index
    %c0_195 = arith.constant 0 : index
    %362 = vector.load %arg4[%c7_193, %c0_194, %c0_195] : memref<8x8x32xf32, #tpu.memory_space<vmem>>, vector<1x8x32xf32>
    %363 = vector.shape_cast %362 : vector<1x8x32xf32> to vector<8x32xf32>
    %cst_196 = arith.constant dense<0.000000e+00> : vector<16x32xf32>
    %364 = tpu.matmul %361, %363, %cst_196 {dimension_numbers = #tpu.dot_dimension_numbers<[1], [0], [0], [1], [0, 0, 1, 1], [], []>} : vector<16x8xf32>, vector<8x32xf32>, vector<16x32xf32> -> vector<16x32xf32>
    %365 = arith.addf %331, %364 : vector<16x32xf32>
    %cst_197 = arith.constant dense<0.000000e+00> : vector<16xf32>
    %366 = vector.multi_reduction <add>, %365, %cst_197 [1] : vector<16x32xf32> to vector<16xf32>
    %367 = vector.shape_cast %366 : vector<16xf32> to vector<16x1xf32>
    %cst_198 = arith.constant 3.200000e+01 : f32
    %368 = vector.broadcast %cst_198 : f32 to vector<16x1xf32>
    %369 = arith.divf %367, %368 : vector<16x1xf32>
    %370 = arith.mulf %365, %365 : vector<16x32xf32>
    %cst_199 = arith.constant dense<0.000000e+00> : vector<16xf32>
    %371 = vector.multi_reduction <add>, %370, %cst_199 [1] : vector<16x32xf32> to vector<16xf32>
    %372 = vector.shape_cast %371 : vector<16xf32> to vector<16x1xf32>
    %cst_200 = arith.constant 3.200000e+01 : f32
    %373 = vector.broadcast %cst_200 : f32 to vector<16x1xf32>
    %374 = arith.divf %372, %373 : vector<16x1xf32>
    %375 = arith.mulf %369, %369 : vector<16x1xf32>
    %376 = arith.subf %374, %375 : vector<16x1xf32>
    %377 = vector.broadcast %369 : vector<16x1xf32> to vector<16x32xf32>
    %378 = arith.subf %365, %377 : vector<16x32xf32>
    %cst_201 = arith.constant 9.99999974E-6 : f32
    %379 = vector.broadcast %cst_201 : f32 to vector<16x1xf32>
    %380 = arith.addf %376, %379 : vector<16x1xf32>
    %381 = math.rsqrt %380 : vector<16x1xf32>
    %382 = vector.broadcast %381 : vector<16x1xf32> to vector<16x32xf32>
    %383 = arith.mulf %378, %382 : vector<16x32xf32>
    %c1_202 = arith.constant 1 : index
    %c0_203 = arith.constant 0 : index
    %c0_204 = arith.constant 0 : index
    %384 = vector.load %arg5[%c1_202, %c0_203, %c0_204] : memref<2x32x128xf32, #tpu.memory_space<vmem>>, vector<1x32x128xf32>
    %385 = vector.shape_cast %384 : vector<1x32x128xf32> to vector<32x128xf32>
    %cst_205 = arith.constant dense<0.000000e+00> : vector<16x128xf32>
    %386 = tpu.matmul %383, %385, %cst_205 {dimension_numbers = #tpu.dot_dimension_numbers<[1], [0], [0], [1], [0, 0, 1, 1], [], []>} : vector<16x32xf32>, vector<32x128xf32>, vector<16x128xf32> -> vector<16x128xf32>
    %387 = vector.broadcast %207 : vector<1x128xf32> to vector<16x128xf32>
    %388 = arith.addf %386, %387 : vector<16x128xf32>
    %389 = arith.mulf %388, %388 : vector<16x128xf32>
    %390 = arith.mulf %388, %389 : vector<16x128xf32>
    %cst_206 = arith.constant 4.471500e-02 : f32
    %391 = vector.broadcast %cst_206 : f32 to vector<16x128xf32>
    %392 = arith.mulf %391, %390 : vector<16x128xf32>
    %393 = arith.addf %388, %392 : vector<16x128xf32>
    %cst_207 = arith.constant 0.797884583 : f32
    %394 = vector.broadcast %cst_207 : f32 to vector<16x128xf32>
    %395 = arith.mulf %394, %393 : vector<16x128xf32>
    %396 = math.tanh %395 : vector<16x128xf32>
    %cst_208 = arith.constant 1.000000e+00 : f32
    %397 = vector.broadcast %cst_208 : f32 to vector<16x128xf32>
    %398 = arith.addf %397, %396 : vector<16x128xf32>
    %cst_209 = arith.constant 5.000000e-01 : f32
    %399 = vector.broadcast %cst_209 : f32 to vector<16x128xf32>
    %400 = arith.mulf %399, %398 : vector<16x128xf32>
    %401 = arith.mulf %388, %400 : vector<16x128xf32>
    %c1_210 = arith.constant 1 : index
    %c0_211 = arith.constant 0 : index
    %c0_212 = arith.constant 0 : index
    %402 = vector.load %arg6[%c1_210, %c0_211, %c0_212] : memref<2x128x32xf32, #tpu.memory_space<vmem>>, vector<1x128x32xf32>
    %403 = vector.shape_cast %402 : vector<1x128x32xf32> to vector<128x32xf32>
    %cst_213 = arith.constant dense<0.000000e+00> : vector<16x32xf32>
    %404 = tpu.matmul %401, %403, %cst_213 {dimension_numbers = #tpu.dot_dimension_numbers<[1], [0], [0], [1], [0, 0, 1, 1], [], []>} : vector<16x128xf32>, vector<128x32xf32>, vector<16x32xf32> -> vector<16x32xf32>
    %405 = arith.addf %365, %404 : vector<16x32xf32>
    %406 = vector.broadcast %209 : vector<1x32xf32> to vector<16x32xf32>
    %407 = arith.addf %405, %406 : vector<16x32xf32>
    %cst_214 = arith.constant dense<0.000000e+00> : vector<16xf32>
    %408 = vector.multi_reduction <add>, %407, %cst_214 [1] : vector<16x32xf32> to vector<16xf32>
    %409 = vector.shape_cast %408 : vector<16xf32> to vector<16x1xf32>
    %cst_215 = arith.constant 3.200000e+01 : f32
    %410 = vector.broadcast %cst_215 : f32 to vector<16x1xf32>
    %411 = arith.divf %409, %410 : vector<16x1xf32>
    %412 = arith.mulf %407, %407 : vector<16x32xf32>
    %cst_216 = arith.constant dense<0.000000e+00> : vector<16xf32>
    %413 = vector.multi_reduction <add>, %412, %cst_216 [1] : vector<16x32xf32> to vector<16xf32>
    %414 = vector.shape_cast %413 : vector<16xf32> to vector<16x1xf32>
    %cst_217 = arith.constant 3.200000e+01 : f32
    %415 = vector.broadcast %cst_217 : f32 to vector<16x1xf32>
    %416 = arith.divf %414, %415 : vector<16x1xf32>
    %417 = arith.mulf %411, %411 : vector<16x1xf32>
    %418 = arith.subf %416, %417 : vector<16x1xf32>
    %419 = vector.broadcast %411 : vector<16x1xf32> to vector<16x32xf32>
    %420 = arith.subf %407, %419 : vector<16x32xf32>
    %cst_218 = arith.constant 9.99999974E-6 : f32
    %421 = vector.broadcast %cst_218 : f32 to vector<16x1xf32>
    %422 = arith.addf %418, %421 : vector<16x1xf32>
    %423 = math.rsqrt %422 : vector<16x1xf32>
    %424 = vector.broadcast %423 : vector<16x1xf32> to vector<16x32xf32>
    %425 = arith.mulf %420, %424 : vector<16x32xf32>
    %c0_219 = arith.constant 0 : index
    %c0_220 = arith.constant 0 : index
    %426 = vector.load %arg7[%c0_219, %c0_220] : memref<32x32xf32, #tpu.memory_space<vmem>>, vector<32x32xf32>
    %cst_221 = arith.constant dense<0.000000e+00> : vector<16x32xf32>
    %427 = tpu.matmul %425, %426, %cst_221 {dimension_numbers = #tpu.dot_dimension_numbers<[1], [0], [0], [1], [0, 0, 1, 1], [], []>} : vector<16x32xf32>, vector<32x32xf32>, vector<16x32xf32> -> vector<16x32xf32>
    %c2_222 = arith.constant 2 : index
    %c0_223 = arith.constant 0 : index
    %c0_224 = arith.constant 0 : index
    %428 = vector.load %arg8[%c2_222, %c0_223, %c0_224] : memref<3x3x128xf32, #tpu.memory_space<vmem>>, vector<1x3x128xf32>
    %429 = vector.shape_cast %428 : vector<1x3x128xf32> to vector<3x128xf32>
    %430 = vector.extract_strided_slice %429 {offsets = [1, 0], sizes = [1, 32], strides = [1, 1]} : vector<3x128xf32> to vector<1x32xf32>
    %431 = vector.broadcast %430 : vector<1x32xf32> to vector<16x32xf32>
    %432 = arith.addf %427, %431 : vector<16x32xf32>
    %c0_225 = arith.constant 0 : index
    %c0_226 = arith.constant 0 : index
    %433 = vector.load %arg9[%c0_225, %c0_226] : memref<16x32xf32, #tpu.memory_space<vmem>>, vector<16x32xf32>
    tpu.vector_store %arg9[%c0_225, %c0_226], %432 {strides = array<i32>} : memref<16x32xf32, #tpu.memory_space<vmem>>, vector<16x32xf32>,
    return
  }
}

</mosaic_0001>

<bundles_post_ra>
// kernel: tpu_custom_call.1
= control target key start
LH: loop header
LB: loop body
LE: loop exit
PB: predicated region body
PF: predicated region fallthrough
CT: control target
= control target key end

     0   :  { %vm38_vm0 = vcmask 261120   ;;  %s8198_s0 = inlined_call_operand.vmem [shape: f32[16,32], index: 0, kind: input, shape index: {}]   ;;  %s8199_s1 = inlined_call_operand.vmem [shape: f32[2,8,8], index: 1, kind: input, shape index: {}]   ;;  %s8200_s2 = inlined_call_operand.vmem [shape: f32[24,32,8], index: 2, kind: input, shape index: {}]   ;;  %s8201_s3 = inlined_call_operand.vmem [shape: f32[8,1,8], index: 3, kind: input, shape index: {}]   ;;  %s8202_s4 = inlined_call_operand.vmem [shape: f32[8,8,32], index: 4, kind: input, shape index: {}]   ;;  %s8203_s5 = inlined_call_operand.vmem [shape: f32[2,32,128], index: 5, kind: input, shape index: {}]   ;;  %s8204_s6 = inlined_call_operand.vmem [shape: f32[2,128,32], index: 6, kind: input, shape index: {}]   ;;  %s8205_s7 = inlined_call_operand.vmem [shape: f32[32,32], index: 7, kind: input, shape index: {}]   ;;  %s8206_s8 = inlined_call_operand.vmem [shape: f32[3,3,128], index: 8, kind: input, shape index: {}]   ;;  %s8207_s9 = inlined_call_operand.hbm [shape: f32[16,32], index: 9, kind: output, shape index: {}]  }
   0x1   :  { %v7247_v0 = vld [vmem:[%s8198_s0] sm:$0xff]  ;;  %v7252_v1 = vld [vmem:[%s8198_s0 + $0x8] sm:$0xff] }
   0x2   :  { %14 = vsyncpa [#allocation3], 0  ;;  %v39_v2 = vsel %vm38_vm0, %v7247_v0, 0.0  ;;  %v48_v3 = vmul.f32 %v7247_v0, %v7247_v0  ;;  %v49_v4 = vmul.f32 %v7252_v1, %v7252_v1  ;;  %v42_v6 = vsel %vm38_vm0, %v7252_v1, 0.0  ;;  %v79_v8 = vld [vmem:[%s8200_s2 + $0x18] sm:$0xff]  ;;  %v78_v9 = vld [vmem:[%s8200_s2 + $0x10] sm:$0xff] }
   0x3   :  { %40 = vadd.xlane.f32.xlu0 %v39_v2  ;;  %6501 = vmatprep.subr.mxu0 %v79_v8  ;;  %v77_v10 = vld [vmem:[%s8200_s2 + $0x8] sm:$0xff]  ;;  %v76_v11 = vld [vmem:[%s8200_s2] sm:$0xff]  ;;  %v5967_v12 = vld [vmem:[%s8200_s2 + $0x98] sm:$0xff]  ;;  %v7189_v40 = vmov 0.0   ;;  %vm7190_vm1 = vmmov 0   ;;  %vm328_vm2 = vcmask 64512  }
   0x4   :  { %v50_v5 = vsel %vm38_vm0, %v48_v3, 0.0  ;;  %v53_v7 = vsel %vm38_vm0, %v49_v4, 0.0  ;;  %6502 = vmatpush3.msra.mxu0 %v79_v8  ;;  %v5966_v33 = vld [vmem:[%s8200_s2 + $0x90] sm:$0xff]  ;;  %v5965_v34 = vld [vmem:[%s8200_s2 + $0x88] sm:$0xff]  ;;  %v5964_v35 = vld [vmem:[%s8200_s2 + $0x80] sm:$0xff]  ;;  %6534 = vmatprep.subr.mxu1 %v7189_v40  ;;  %s7191_s14 = smov [#allocation2]  }
   0x5   :  { %51 = vadd.xlane.f32.xlu1 %v50_v5  ;;  %6503 = vmatprep.subr.mxu0 %v78_v9  ;;  %v5973_v36 = vld [vmem:[%s8200_s2 + $0x118] sm:$0xff]  ;;  %v5972_v37 = vld [vmem:[%s8200_s2 + $0x110] sm:$0xff]  ;;  %v5971_v38 = vld [vmem:[%s8200_s2 + $0x108] sm:$0xff]  ;;  %s5950_s15 = sshll.u32 %s7191_s14, 4  ;;  %s5951_s15 = int_to_ptr.vmem [resolvable:$true] %s5950_s15 }
   0x6   :  { %6504 = vmatpush3.msra.mxu0 %v78_v9  ;;  %v5970_v39 = vld [vmem:[%s8200_s2 + $0x100] sm:$0xff]  ;;  %6536 = vmatprep.mubr.msk.f32.mxu1 %vm7190_vm1, %v7189_v40  ;;  %v7346_v54 = vld [vmem:[%s8199_s1 + $0x8] sm:$0xff]  ;;  %v5987_v8 = vld [vmem:[%s8200_s2 + $0x38] sm:$0xff]  ;;  %p7172_p1 = scmp.lt.s32.totalorder %s5951_s15, %s5951_s15 }
   0x7   :  { %43 = vadd.xlane.f32.xlu0 %v42_v6  ;;  %6505 = vmatprep.subr.mxu0 %v77_v10  ;;  %v5961_v45 = vld [vmem:[%s8201_s3] ss:$0 sm:$0xff] }
   0x8   :  { %6506 = vmatpush3.msra.mxu0 %v77_v10  ;;  %v7340_v50 = vld [vmem:[%s8199_s1] sm:$0xff] }
   0x9   :  { %54 = vadd.xlane.f32.xlu1 %v53_v7  ;;  %6507 = vmatprep.subr.mxu0 %v76_v11 }
   0xa   :  { %6508 = vmatpush3.msra.mxu0 %v76_v11 }
   0xb   :  { %6512 = vmatprep.subr.mxu0 %v5967_v12 }
  0x8c   :  { %v41_v13 = vpop.xlane.xlu0 %40 }
  0x8d   :  { %v46_v14 = vmul.f32 0.03125, %v41_v13 }
  0x8e   :  { %v52_v15 = vpop.xlane.xlu1 %51 }
  0x8f   :  { %v58_v16 = vmul.f32 %v46_v14, %v46_v14  ;;  %v56_v17 = vmul.f32 0.03125, %v52_v15  ;;  %v62_v27 = vsub.f32 %v7247_v0, %v46_v14  ;;  %v5986_v15 = vld [vmem:[%s8200_s2 + $0x30] sm:$0xff] }
  0x90   :  { %v44_v18 = vpop.xlane.xlu0 %43 }
  0x91   :  { %v60_v19 = vsub.f32 %v56_v17, %v58_v16  ;;  %v47_v20 = vmul.f32 0.03125, %v44_v18  ;;  %v5985_v16 = vld [vmem:[%s8200_s2 + $0x28] sm:$0xff]  ;;  %v5984_v17 = vld [vmem:[%s8200_s2 + $0x20] sm:$0xff]  ;;  %v6001_v18 = vld [vmem:[%s8200_s2 + $0x138] sm:$0xff] }
  0x92   :  { %v55_v21 = vpop.xlane.xlu1 %54 }
  0x93   :  { %v64_v22 = vadd.f32 1e-05, %v60_v19  ;;  %v59_v23 = vmul.f32 %v47_v20, %v47_v20  ;;  %v57_v24 = vmul.f32 0.03125, %v55_v21  ;;  %v63_v30 = vsub.f32 %v7252_v1, %v47_v20  ;;  %v6000_v19 = vld [vmem:[%s8200_s2 + $0x130] sm:$0xff]  ;;  %v5999_v20 = vld [vmem:[%s8200_s2 + $0x128] sm:$0xff]  ;;  %v5998_v21 = vld [vmem:[%s8200_s2 + $0x120] sm:$0xff] }
  0x95   :  { %7073 = vrsqrt.f32 %v64_v22  ;;  %v61_v25 = vsub.f32 %v57_v24, %v59_v23  ;;  %v649_v22 = vld [vmem:[%s8202_s4] sm:$0xff]  ;;  %v5995_v23 = vld [vmem:[%s8200_s2 + $0xb8] sm:$0xff] }
  0x97   :  { %v65_v26 = vadd.f32 1e-05, %v61_v25 }
  0x99   :  { %7075 = vrsqrt.f32 %v65_v26 }
  0xa2   :  { %v7074_v28 = vpop.eup %7073 }
  0xa3   :  { %v7280_v29 = vmul.f32 %v7074_v28, %v62_v27  ;;  %v5994_v27 = vld [vmem:[%s8200_s2 + $0xb0] sm:$0xff] }
  0xa5   :  { %6509 = vmatprep.mubr.msk.f32.mxu0 %vm38_vm0, %v7280_v29 }
  0xa6   :  { %v7076_v31 = vpop.eup %7075 }
  0xa7   :  { %v7285_v32 = vmul.f32 %v7076_v31, %v63_v30  ;;  %v5993_v30 = vld [vmem:[%s8200_s2 + $0xa8] sm:$0xff]  ;;  %v5992_v31 = vld [vmem:[%s8200_s2 + $0xa0] sm:$0xff] }
  0xa9   :  { %6510 = vmatmul.mubr.msk.f32.vlgmr.msra.gmra.mxu0 %vm38_vm0, %v7285_v32 }
  0xaa   :  { %6513 = vmatpush3.msra.mxu0 %v5967_v12  ;;  %6520 = vmatprep.mubr.msk.f32.mxu0 %vm38_vm0, %v7280_v29 }
  0xab   :  { %6514 = vmatprep.subr.mxu0 %v5966_v33 }
  0xac   :  { %6515 = vmatpush3.msra.mxu0 %v5966_v33 }
  0xad   :  { %6516 = vmatprep.subr.mxu0 %v5965_v34 }
  0xae   :  { %6517 = vmatpush3.msra.mxu0 %v5965_v34 }
  0xaf   :  { %6518 = vmatprep.subr.mxu0 %v5964_v35 }
  0xb0   :  { %6519 = vmatpush3.msra.mxu0 %v5964_v35 }
  0xb1   :  { %6521 = vmatmul.mubr.msk.f32.vlgmr.msra.gmra.mxu0 %vm38_vm0, %v7285_v32  ;;  %6523 = vmatprep.subr.mxu0 %v5973_v36 }
  0xb2   :  { %6524 = vmatpush3.msra.mxu0 %v5973_v36  ;;  %6531 = vmatprep.mubr.msk.f32.mxu0 %vm38_vm0, %v7280_v29 }
  0xb3   :  { %6525 = vmatprep.subr.mxu0 %v5972_v37 }
  0xb4   :  { %6526 = vmatpush3.msra.mxu0 %v5972_v37 }
  0xb5   :  { %6527 = vmatprep.subr.mxu0 %v5971_v38 }
  0xb6   :  { %6528 = vmatpush3.msra.mxu0 %v5971_v38 }
  0xb7   :  { %6529 = vmatprep.subr.mxu0 %v5970_v39 }
  0xb8   :  { %6530 = vmatpush3.msra.mxu0 %v5970_v39 }
  0xb9   :  { %6532 = vmatmul.mubr.msk.f32.vlgmr.msra.gmra.mxu0 %vm38_vm0, %v7285_v32  ;;  %6544 = vmatprep.subr.mxu0 %v7189_v40 }
  0xba   :  { %6546 = vmatprep.mubr.msk.f32.mxu0 %vm7190_vm1, %v7189_v40 }
 0x169   :  { %v6511_v41 = vpop.f32.mrf.mxu0 }
 0x16a   :  { %v165_v47 = vadd.f32 %v6511_v41, %v5961_v45 }
 0x16b   :  { %v159_v42 = vpop.f32.mrf.mxu0 }
 0x16c   :  { %v160_v46 = vadd.f32 %v5961_v45, %v159_v42  ;;  %v5989_v42 = vld [vmem:[%s8201_s3 + $0x1] ss:$0 sm:$0xff] }
 0x171   :  { %v6522_v43 = vpop.f32.mrf.mxu0 }
 0x173   :  { %v239_v44 = vpop.f32.mrf.mxu0 }
 0x174   :  { %6535 = vmatpush3.xpose.msk.msra.mxu1 %vm328_vm2, %v239_v44 }
 0x175   :  { %6539 = vmatprep.subr.mxu1 %v7189_v40 }
 0x177   :  { %6537 = vmatmul.mubr.msk.f32.vlgmr.msra.gmra.mxu1 %vm328_vm2, %v160_v46 }
 0x178   :  { %6540 = vmatpush3.xpose.msk.msra.mxu1 %vm328_vm2, %v6522_v43  ;;  %6541 = vmatprep.mubr.msk.f32.mxu1 %vm7190_vm1, %v7189_v40 }
 0x179   :  { %v6533_v48 = vpop.f32.mrf.mxu0  ;;  %6549 = vmatprep.subr.mxu1 %v7189_v40 }
 0x17b   :  { %v319_v49 = vpop.f32.mrf.mxu0  ;;  %6542 = vmatmul.mubr.msk.f32.vlgmr.msra.gmra.mxu1 %vm328_vm2, %v165_v47 }
 0x17c   :  { %6545 = vmatpush3.msra.mxu0 %v319_v49  ;;  %6550 = vmatpush3.msra.mxu1 %v6533_v48 }
 0x17d   :  { %6551 = vmatprep.mubr.msk.f32.mxu1 %vm7190_vm1, %v7189_v40  ;;  %6559 = vmatprep.subr.mxu1 %v5987_v8 }
 0x17e   :  { %6554 = vmatprep.subr.mxu0 %v649_v22 }
 0x237   :  { %v401_v51 = vpop.f32.mrf.mxu1 }
 0x238   :  { %v402_v52 = vadd.f32 %v401_v51, %v7340_v50 }
 0x239   :  { %v6538_v53 = vpop.f32.mrf.mxu1 }
 0x23a   :  { %v481_v55 = vsel %vm328_vm2, %v402_v52, -inf }
 0x23b   :  { %482 = vmax.xlane.f32.xlu0 %v481_v55  ;;  %v477_v56 = vpop.f32.mrf.mxu1 }
 0x23c   :  { %v478_v57 = vadd.f32 %v477_v56, %v7346_v54 }
 0x23d   :  { %v6543_v58 = vpop.f32.mrf.mxu1 }
 0x23e   :  { %v484_v59 = vsel %vm328_vm2, %v478_v57, -inf }
 0x23f   :  { %485 = vmax.xlane.f32.xlu1 %v484_v59 }
 0x2c4   :  { %v483_v60 = vpop.xlane.xlu0 %482 }
 0x2c5   :  { %v487_v61 = vsub.f32 %v402_v52, %v483_v60 }
 0x2c7   :  { %v489_v62 = vmul.f32 1.442695, %v487_v61 }
 0x2c8   :  { %v486_v63 = vpop.xlane.xlu1 %485 }
 0x2c9   :  { %7077 = vpow2.f32 %v489_v62  ;;  %v488_v2 = vsub.f32 %v478_v57, %v486_v63 }
 0x2cb   :  { %v491_v3 = vmul.f32 1.442695, %v488_v2 }
 0x2cd   :  { %7079 = vpow2.f32 %v491_v3  ;;  %v6016_v3 = vld [vmem:[%s8200_s2 + $0x58] sm:$0xff] }
 0x2d6   :  { %v7078_v4 = vpop.eup %7077 }
 0x2d7   :  { %v493_v5 = vsel %vm328_vm2, %v7078_v4, 0.0 }
 0x2d8   :  { %494 = vadd.xlane.f32.xlu0 %v493_v5 }
 0x2da   :  { %v7080_v6 = vpop.eup %7079 }
 0x2db   :  { %v496_v7 = vsel %vm328_vm2, %v7080_v6, 0.0 }
 0x2dc   :  { %497 = vadd.xlane.f32.xlu1 %v496_v7 }
 0x361   :  { %v495_v9 = vpop.xlane.xlu0 %494 }
 0x362   :  { %7081 = vrcp.f32 %v495_v9 }
 0x365   :  { %v498_v10 = vpop.xlane.xlu1 %497 }
 0x366   :  { %7083 = vrcp.f32 %v498_v10  ;;  %v6015_v10 = vld [vmem:[%s8200_s2 + $0x50] sm:$0xff] }
 0x36f   :  { %v7082_v11 = vpop.eup %7081 }
 0x370   :  { %v501_v12 = vmul.f32 %v7082_v11, %v7078_v4  ;;  %v6014_v11 = vld [vmem:[%s8200_s2 + $0x48] sm:$0xff] }
 0x372   :  { %6547 = vmatmul.mubr.msk.f32.vlgmr.msra.gmra.mxu0 %vm328_vm2, %v501_v12  ;;  %v6013_v12 = vld [vmem:[%s8200_s2 + $0x40] sm:$0xff] }
 0x373   :  { %v7084_v13 = vpop.eup %7083  ;;  %6555 = vmatpush3.msra.mxu0 %v649_v22  ;;  %v6023_v22 = vld [vmem:[%s8200_s2 + $0xd0] sm:$0xff] }
 0x374   :  { %v502_v14 = vmul.f32 %v7084_v13, %v7080_v6  ;;  %6570 = vmatprep.subr.mxu0 %v5995_v23  ;;  %v6030_v13 = vld [vmem:[%s8200_s2 + $0x158] sm:$0xff] }
 0x376   :  { %6552 = vmatmul.mubr.msk.f32.vlgmr.msra.gmra.mxu1 %vm328_vm2, %v502_v14  ;;  %v6029_v14 = vld [vmem:[%s8200_s2 + $0x150] sm:$0xff] }
 0x377   :  { %6560 = vmatpush3.msra.mxu1 %v5987_v8  ;;  %6567 = vmatprep.mubr.msk.f32.mxu1 %vm38_vm0, %v7280_v29 }
 0x378   :  { %6561 = vmatprep.subr.mxu1 %v5986_v15 }
 0x379   :  { %6562 = vmatpush3.msra.mxu1 %v5986_v15  ;;  %v6028_v15 = vld [vmem:[%s8200_s2 + $0x148] sm:$0xff] }
 0x37a   :  { %6563 = vmatprep.subr.mxu1 %v5985_v16 }
 0x37b   :  { %6564 = vmatpush3.msra.mxu1 %v5985_v16  ;;  %v6027_v16 = vld [vmem:[%s8200_s2 + $0x140] sm:$0xff] }
 0x37c   :  { %6565 = vmatprep.subr.mxu1 %v5984_v17 }
 0x37d   :  { %6566 = vmatpush3.msra.mxu1 %v5984_v17  ;;  %v6010_v17 = vld [vmem:[%s8202_s4 + $0x8] sm:$0xff] }
 0x37e   :  { %6568 = vmatmul.mubr.msk.f32.vlgmr.msra.gmra.mxu1 %vm38_vm0, %v7285_v32  ;;  %6581 = vmatprep.subr.mxu1 %v6001_v18 }
 0x37f   :  { %6582 = vmatpush3.msra.mxu1 %v6001_v18  ;;  %6589 = vmatprep.mubr.msk.f32.mxu1 %vm38_vm0, %v7280_v29  ;;  %v6024_v18 = vld [vmem:[%s8200_s2 + $0xd8] sm:$0xff] }
 0x380   :  { %6583 = vmatprep.subr.mxu1 %v6000_v19 }
 0x381   :  { %6584 = vmatpush3.msra.mxu1 %v6000_v19 }
 0x382   :  { %6585 = vmatprep.subr.mxu1 %v5999_v20 }
 0x383   :  { %6586 = vmatpush3.msra.mxu1 %v5999_v20 }
 0x384   :  { %6587 = vmatprep.subr.mxu1 %v5998_v21 }
 0x385   :  { %6588 = vmatpush3.msra.mxu1 %v5998_v21 }
 0x386   :  { %6590 = vmatmul.mubr.msk.f32.vlgmr.msra.gmra.mxu1 %vm38_vm0, %v7285_v32  ;;  %6602 = vmatprep.subr.mxu1 %v7189_v40 }
 0x387   :  { %6604 = vmatprep.mubr.msk.f32.mxu1 %vm7190_vm1, %v7189_v40 }
 0x432   :  { %v572_v24 = vpop.f32.mrf.mxu0 }
 0x433   :  { %6556 = vmatprep.mubr.msk.f32.mxu0 %vm328_vm2, %v572_v24  ;;  %v6022_v24 = vld [vmem:[%s8200_s2 + $0xc8] sm:$0xff] }
 0x434   :  { %v6548_v25 = vpop.f32.mrf.mxu0 }
 0x435   :  { %v6021_v25 = vld [vmem:[%s8200_s2 + $0xc0] sm:$0xff] }
 0x436   :  { %v645_v26 = vpop.f32.mrf.mxu1 }
 0x437   :  { %6557 = vmatmul.mubr.msk.f32.vlgmr.msra.gmra.mxu0 %vm328_vm2, %v645_v26 }
 0x438   :  { %6571 = vmatpush3.msra.mxu0 %v5995_v23  ;;  %v6553_v28 = vpop.f32.mrf.mxu1  ;;  %6578 = vmatprep.mubr.msk.f32.mxu0 %vm38_vm0, %v7280_v29 }
 0x439   :  { %6572 = vmatprep.subr.mxu0 %v5994_v27 }
 0x43a   :  { %6573 = vmatpush3.msra.mxu0 %v5994_v27 }
 0x43b   :  { %6574 = vmatprep.subr.mxu0 %v5993_v30 }
 0x43c   :  { %6575 = vmatpush3.msra.mxu0 %v5993_v30 }
 0x43d   :  { %6576 = vmatprep.subr.mxu0 %v5992_v31 }
 0x43e   :  { %6577 = vmatpush3.msra.mxu0 %v5992_v31  ;;  %v6569_v33 = vpop.f32.mrf.mxu1  ;;  %v70_v31 = vlaneseq }
 0x43f   :  { %6579 = vmatmul.mubr.msk.f32.vlgmr.msra.gmra.mxu0 %vm38_vm0, %v7285_v32  ;;  %6592 = vmatprep.subr.mxu0 %v7189_v40  ;;  %v818_v44 = vadd.f32 %v6569_v33, %v5989_v42 }
 0x440   :  { %6594 = vmatprep.mubr.msk.f32.mxu0 %vm7190_vm1, %v7189_v40  ;;  %v812_v34 = vpop.f32.mrf.mxu1  ;;  %v7498_v33 = vshrl.u32 %v70_v31, 7 }
 0x441   :  { %v813_v43 = vadd.f32 %v5989_v42, %v812_v34 }
 0x442   :  { %v7501_v34 = vsub.s32 1, %v7498_v33 }
 0x446   :  { %v6591_v35 = vpop.f32.mrf.mxu1 }
 0x448   :  { %v972_v36 = vpop.f32.mrf.mxu1 }
 0x449   :  { %6603 = vmatpush3.msra.mxu1 %v972_v36 }
 0x44a   :  { %6612 = vmatprep.subr.mxu1 %v6010_v17 }
 0x4f7   :  { %v7414_v37 = vpop.f32.mrf.mxu0 }
 0x4f9   :  { %v7416_v38 = vpop.f32.mrf.mxu0 }
 0x4ff   :  { %v6580_v39 = vpop.f32.mrf.mxu0 }
 0x501   :  { %v892_v41 = vpop.f32.mrf.mxu0 }
 0x502   :  { %6593 = vmatpush3.xpose.msk.msra.mxu0 %vm328_vm2, %v892_v41 }
 0x503   :  { %6597 = vmatprep.subr.mxu0 %v7189_v40 }
 0x505   :  { %6595 = vmatmul.mubr.msk.f32.vlgmr.msra.gmra.mxu0 %vm328_vm2, %v813_v43 }
 0x506   :  { %6598 = vmatpush3.xpose.msk.msra.mxu0 %vm328_vm2, %v6580_v39  ;;  %6599 = vmatprep.mubr.msk.f32.mxu0 %vm7190_vm1, %v7189_v40 }
 0x507   :  { %6607 = vmatprep.subr.mxu0 %v7189_v40 }
 0x509   :  { %6600 = vmatmul.mubr.msk.f32.vlgmr.msra.gmra.mxu0 %vm328_vm2, %v818_v44 }
 0x50a   :  { %6608 = vmatpush3.msra.mxu0 %v6591_v35  ;;  %6609 = vmatprep.mubr.msk.f32.mxu0 %vm7190_vm1, %v7189_v40  ;;  %v7506_v35 = vld [vmem:[%s8206_s8] sm:$0x7] }
 0x50b   :  { %6617 = vmatprep.subr.mxu0 %v6016_v3  ;;  %v73_v36 = vrot.slane %v7506_v35, %v7501_v34 }
 0x50d   :  { %v75_v39 = vadd.f32 %v73_v36, %v7252_v1  ;;  %v74_v41 = vadd.f32 %v73_v36, %v7247_v0 }
 0x50f   :  { %v732_v42 = vadd.f32 %v7414_v37, %v75_v39  ;;  %v731_v44 = vadd.f32 %v7416_v38, %v74_v41 }
 0x5c5   :  { %v1053_v45 = vpop.f32.mrf.mxu0 }
 0x5c6   :  { %v1054_v46 = vadd.f32 %v1053_v45, %v7340_v50 }
 0x5c7   :  { %v6596_v47 = vpop.f32.mrf.mxu0 }
 0x5c8   :  { %v1133_v48 = vsel %vm328_vm2, %v1054_v46, -inf }
 0x5c9   :  { %1134 = vmax.xlane.f32.xlu0 %v1133_v48  ;;  %v1129_v49 = vpop.f32.mrf.mxu0 }
 0x5ca   :  { %v1130_v51 = vadd.f32 %v1129_v49, %v7346_v54 }
 0x5cb   :  { %v6601_v52 = vpop.f32.mrf.mxu0 }
 0x5cc   :  { %v1136_v53 = vsel %vm328_vm2, %v1130_v51, -inf }
 0x5cd   :  { %1137 = vmax.xlane.f32.xlu1 %v1136_v53 }
 0x652   :  { %v1135_v55 = vpop.xlane.xlu0 %1134 }
 0x653   :  { %v1139_v56 = vsub.f32 %v1054_v46, %v1135_v55 }
 0x655   :  { %v1141_v57 = vmul.f32 1.442695, %v1139_v56 }
 0x656   :  { %v1138_v58 = vpop.xlane.xlu1 %1137 }
 0x657   :  { %7085 = vpow2.f32 %v1141_v57  ;;  %v1140_v59 = vsub.f32 %v1130_v51, %v1138_v58  ;;  %v6018_v51 = vld [vmem:[%s8201_s3 + $0x2] ss:$0 sm:$0xff] }
 0x659   :  { %v1143_v60 = vmul.f32 1.442695, %v1140_v59 }
 0x65b   :  { %7087 = vpow2.f32 %v1143_v60 }
 0x664   :  { %v7086_v61 = vpop.eup %7085 }
 0x665   :  { %v1145_v62 = vsel %vm328_vm2, %v7086_v61, 0.0 }
 0x666   :  { %1146 = vadd.xlane.f32.xlu0 %v1145_v62 }
 0x668   :  { %v7088_v63 = vpop.eup %7087 }
 0x669   :  { %v1148_v2 = vsel %vm328_vm2, %v7088_v63, 0.0 }
 0x66a   :  { %1149 = vadd.xlane.f32.xlu1 %v1148_v2 }
 0x6ef   :  { %v1147_v4 = vpop.xlane.xlu0 %1146 }
 0x6f0   :  { %7089 = vrcp.f32 %v1147_v4 }
 0x6f3   :  { %v1150_v5 = vpop.xlane.xlu1 %1149 }
 0x6f4   :  { %7091 = vrcp.f32 %v1150_v5 }
 0x6fd   :  { %v7090_v6 = vpop.eup %7089 }
 0x6fe   :  { %v1153_v7 = vmul.f32 %v7090_v6, %v7086_v61 }
 0x700   :  { %6605 = vmatmul.mubr.msk.f32.vlgmr.msra.gmra.mxu1 %vm328_vm2, %v1153_v7  ;;  %v6045_v7 = vld [vmem:[%s8200_s2 + $0x78] sm:$0xff] }
 0x701   :  { %v7092_v8 = vpop.eup %7091  ;;  %6613 = vmatpush3.msra.mxu1 %v6010_v17  ;;  %v6059_v17 = vld [vmem:[%s8200_s2 + $0x178] sm:$0xff] }
 0x702   :  { %v1154_v9 = vmul.f32 %v7092_v8, %v7088_v63  ;;  %6628 = vmatprep.subr.mxu1 %v6024_v18 }
 0x704   :  { %6610 = vmatmul.mubr.msk.f32.vlgmr.msra.gmra.mxu0 %vm328_vm2, %v1154_v9 }
 0x705   :  { %6618 = vmatpush3.msra.mxu0 %v6016_v3  ;;  %6625 = vmatprep.mubr.msk.f32.mxu0 %vm38_vm0, %v7280_v29 }
 0x706   :  { %6619 = vmatprep.subr.mxu0 %v6015_v10 }
 0x707   :  { %6620 = vmatpush3.msra.mxu0 %v6015_v10 }
 0x708   :  { %6621 = vmatprep.subr.mxu0 %v6014_v11 }
 0x709   :  { %6622 = vmatpush3.msra.mxu0 %v6014_v11 }
 0x70a   :  { %6623 = vmatprep.subr.mxu0 %v6013_v12 }
 0x70b   :  { %6624 = vmatpush3.msra.mxu0 %v6013_v12 }
 0x70c   :  { %6626 = vmatmul.mubr.msk.f32.vlgmr.msra.gmra.mxu0 %vm38_vm0, %v7285_v32  ;;  %6639 = vmatprep.subr.mxu0 %v6030_v13 }
 0x70d   :  { %6640 = vmatpush3.msra.mxu0 %v6030_v13  ;;  %6647 = vmatprep.mubr.msk.f32.mxu0 %vm38_vm0, %v7280_v29 }
 0x70e   :  { %6641 = vmatprep.subr.mxu0 %v6029_v14 }
 0x70f   :  { %6642 = vmatpush3.msra.mxu0 %v6029_v14  ;;  %v6044_v14 = vld [vmem:[%s8200_s2 + $0x70] sm:$0xff] }
 0x710   :  { %6643 = vmatprep.subr.mxu0 %v6028_v15 }
 0x711   :  { %6644 = vmatpush3.msra.mxu0 %v6028_v15  ;;  %v6043_v15 = vld [vmem:[%s8200_s2 + $0x68] sm:$0xff] }
 0x712   :  { %6645 = vmatprep.subr.mxu0 %v6027_v16 }
 0x713   :  { %6646 = vmatpush3.msra.mxu0 %v6027_v16  ;;  %v6042_v16 = vld [vmem:[%s8200_s2 + $0x60] sm:$0xff] }
 0x714   :  { %6648 = vmatmul.mubr.msk.f32.vlgmr.msra.gmra.mxu0 %vm38_vm0, %v7285_v32  ;;  %6660 = vmatprep.subr.mxu0 %v7189_v40 }
 0x715   :  { %6662 = vmatprep.mubr.msk.f32.mxu0 %vm7190_vm1, %v7189_v40 }
 0x7c0   :  { %v1224_v19 = vpop.f32.mrf.mxu1 }
 0x7c1   :  { %6614 = vmatprep.mubr.msk.f32.mxu1 %vm328_vm2, %v1224_v19  ;;  %v6057_v19 = vld [vmem:[%s8200_s2 + $0x168] sm:$0xff] }
 0x7c2   :  { %v6606_v20 = vpop.f32.mrf.mxu1 }
 0x7c3   :  { %v6056_v20 = vld [vmem:[%s8200_s2 + $0x160] sm:$0xff] }
 0x7c4   :  { %v1297_v21 = vpop.f32.mrf.mxu0 }
 0x7c5   :  { %6615 = vmatmul.mubr.msk.f32.vlgmr.msra.gmra.mxu1 %vm328_vm2, %v1297_v21  ;;  %v6039_v21 = vld [vmem:[%s8202_s4 + $0x10] sm:$0xff] }
 0x7c6   :  { %6629 = vmatpush3.msra.mxu1 %v6024_v18  ;;  %v6611_v23 = vpop.f32.mrf.mxu0  ;;  %6636 = vmatprep.mubr.msk.f32.mxu1 %vm38_vm0, %v7280_v29  ;;  %v6058_v18 = vld [vmem:[%s8200_s2 + $0x170] sm:$0xff] }
 0x7c7   :  { %6630 = vmatprep.subr.mxu1 %v6023_v22 }
 0x7c8   :  { %6631 = vmatpush3.msra.mxu1 %v6023_v22  ;;  %v6053_v22 = vld [vmem:[%s8200_s2 + $0xf8] sm:$0xff] }
 0x7c9   :  { %6632 = vmatprep.subr.mxu1 %v6022_v24 }
 0x7ca   :  { %6633 = vmatpush3.msra.mxu1 %v6022_v24 }
 0x7cb   :  { %6634 = vmatprep.subr.mxu1 %v6021_v25 }
 0x7cc   :  { %6635 = vmatpush3.msra.mxu1 %v6021_v25  ;;  %v6627_v26 = vpop.f32.mrf.mxu0 }
 0x7cd   :  { %6637 = vmatmul.mubr.msk.f32.vlgmr.msra.gmra.mxu1 %vm38_vm0, %v7285_v32  ;;  %6650 = vmatprep.subr.mxu1 %v7189_v40  ;;  %v1471_v0 = vadd.f32 %v6627_v26, %v6018_v51  ;;  %v6052_v26 = vld [vmem:[%s8200_s2 + $0xf0] sm:$0xff] }
 0x7ce   :  { %6652 = vmatprep.mubr.msk.f32.mxu1 %vm7190_vm1, %v7189_v40  ;;  %v1465_v27 = vpop.f32.mrf.mxu0 }
 0x7cf   :  { %v1466_v1 = vadd.f32 %v6018_v51, %v1465_v27 }
 0x7d4   :  { %v6649_v28 = vpop.f32.mrf.mxu0 }
 0x7d6   :  { %v1625_v30 = vpop.f32.mrf.mxu0 }
 0x7d7   :  { %6661 = vmatpush3.msra.mxu0 %v1625_v30  ;;  %v6050_v30 = vld [vmem:[%s8200_s2 + $0xe0] sm:$0xff] }
 0x7d8   :  { %6670 = vmatprep.subr.mxu0 %v6039_v21 }
 0x885   :  { %v6616_v43 = vpop.f32.mrf.mxu1 }
 0x886   :  { %v7514_v45 = vadd.f32 %v6616_v43, %v732_v42 }
 0x887   :  { %v1375_v46 = vpop.f32.mrf.mxu1 }
 0x888   :  { %v7516_v47 = vadd.f32 %v1375_v46, %v731_v44 }
 0x88d   :  { %v6638_v48 = vpop.f32.mrf.mxu1 }
 0x88f   :  { %v1545_v49 = vpop.f32.mrf.mxu1 }
 0x890   :  { %6651 = vmatpush3.xpose.msk.msra.mxu1 %vm328_vm2, %v1545_v49 }
 0x891   :  { %6655 = vmatprep.subr.mxu1 %v7189_v40 }
 0x893   :  { %6653 = vmatmul.mubr.msk.f32.vlgmr.msra.gmra.mxu1 %vm328_vm2, %v1466_v1 }
 0x894   :  { %6656 = vmatpush3.xpose.msk.msra.mxu1 %vm328_vm2, %v6638_v48  ;;  %6657 = vmatprep.mubr.msk.f32.mxu1 %vm7190_vm1, %v7189_v40 }
 0x895   :  { %6665 = vmatprep.subr.mxu1 %v7189_v40 }
 0x897   :  { %6658 = vmatmul.mubr.msk.f32.vlgmr.msra.gmra.mxu1 %vm328_vm2, %v1471_v0 }
 0x898   :  { %6666 = vmatpush3.msra.mxu1 %v6649_v28  ;;  %6667 = vmatprep.mubr.msk.f32.mxu1 %vm7190_vm1, %v7189_v40  ;;  %v6051_v28 = vld [vmem:[%s8200_s2 + $0xe8] sm:$0xff] }
 0x899   :  { %6675 = vmatprep.subr.mxu1 %v6045_v7 }
 0x953   :  { %v1706_v37 = vpop.f32.mrf.mxu1 }
 0x954   :  { %v1707_v38 = vadd.f32 %v1706_v37, %v7340_v50 }
 0x955   :  { %v6654_v52 = vpop.f32.mrf.mxu1 }
 0x956   :  { %v1786_v53 = vsel %vm328_vm2, %v1707_v38, -inf }
 0x957   :  { %1787 = vmax.xlane.f32.xlu0 %v1786_v53  ;;  %v1782_v55 = vpop.f32.mrf.mxu1 }
 0x958   :  { %v1783_v56 = vadd.f32 %v1782_v55, %v7346_v54 }
 0x959   :  { %v6659_v57 = vpop.f32.mrf.mxu1 }
 0x95a   :  { %v1789_v58 = vsel %vm328_vm2, %v1783_v56, -inf }
 0x95b   :  { %1790 = vmax.xlane.f32.xlu1 %v1789_v58 }
 0x9e0   :  { %v1788_v59 = vpop.xlane.xlu0 %1787 }
 0x9e1   :  { %v1792_v60 = vsub.f32 %v1707_v38, %v1788_v59 }
 0x9e3   :  { %v1794_v61 = vmul.f32 1.442695, %v1792_v60 }
 0x9e4   :  { %v1791_v62 = vpop.xlane.xlu1 %1790 }
 0x9e5   :  { %7093 = vpow2.f32 %v1794_v61  ;;  %v1793_v63 = vsub.f32 %v1783_v56, %v1791_v62 }
 0x9e7   :  { %v1796_v2 = vmul.f32 1.442695, %v1793_v63 }
 0x9e9   :  { %7095 = vpow2.f32 %v1796_v2 }
 0x9f2   :  { %v7094_v3 = vpop.eup %7093 }
 0x9f3   :  { %v1798_v4 = vsel %vm328_vm2, %v7094_v3, 0.0 }
 0x9f4   :  { %1799 = vadd.xlane.f32.xlu0 %v1798_v4 }
 0x9f6   :  { %v7096_v5 = vpop.eup %7095 }
 0x9f7   :  { %v1801_v6 = vsel %vm328_vm2, %v7096_v5, 0.0 }
 0x9f8   :  { %1802 = vadd.xlane.f32.xlu1 %v1801_v6 }
 0xa7d   :  { %v1800_v8 = vpop.xlane.xlu0 %1799 }
 0xa7e   :  { %7097 = vrcp.f32 %v1800_v8 }
 0xa81   :  { %v1803_v9 = vpop.xlane.xlu1 %1802 }
 0xa82   :  { %7099 = vrcp.f32 %v1803_v9 }
 0xa8b   :  { %v7098_v10 = vpop.eup %7097 }
 0xa8c   :  { %v1806_v11 = vmul.f32 %v7098_v10, %v7094_v3 }
 0xa8e   :  { %6663 = vmatmul.mubr.msk.f32.vlgmr.msra.gmra.mxu0 %vm328_vm2, %v1806_v11 }
 0xa8f   :  { %v7100_v12 = vpop.eup %7099  ;;  %6671 = vmatpush3.msra.mxu0 %v6039_v21 }
 0xa90   :  { %v1807_v13 = vmul.f32 %v7100_v12, %v7096_v5  ;;  %6686 = vmatprep.subr.mxu0 %v6053_v22 }
 0xa92   :  { %6668 = vmatmul.mubr.msk.f32.vlgmr.msra.gmra.mxu1 %vm328_vm2, %v1807_v13 }
 0xa93   :  { %6676 = vmatpush3.msra.mxu1 %v6045_v7  ;;  %6683 = vmatprep.mubr.msk.f32.mxu1 %vm38_vm0, %v7280_v29  ;;  %v6068_v7 = vld [vmem:[%s8202_s4 + $0x18] sm:$0xff] }
 0xa94   :  { %6677 = vmatprep.subr.mxu1 %v6044_v14 }
 0xa95   :  { %6678 = vmatpush3.msra.mxu1 %v6044_v14 }
 0xa96   :  { %6679 = vmatprep.subr.mxu1 %v6043_v15 }
 0xa97   :  { %6680 = vmatpush3.msra.mxu1 %v6043_v15 }
 0xa98   :  { %6681 = vmatprep.subr.mxu1 %v6042_v16 }
 0xa99   :  { %6682 = vmatpush3.msra.mxu1 %v6042_v16 }
 0xa9a   :  { %6684 = vmatmul.mubr.msk.f32.vlgmr.msra.gmra.mxu1 %vm38_vm0, %v7285_v32  ;;  %6697 = vmatprep.subr.mxu1 %v6059_v17 }
 0xa9b   :  { %6698 = vmatpush3.msra.mxu1 %v6059_v17  ;;  %6705 = vmatprep.mubr.msk.f32.mxu1 %vm38_vm0, %v7280_v29 }
 0xa9c   :  { %6699 = vmatprep.subr.mxu1 %v6058_v18 }
 0xa9d   :  { %6700 = vmatpush3.msra.mxu1 %v6058_v18 }
 0xa9e   :  { %6701 = vmatprep.subr.mxu1 %v6057_v19 }
 0xa9f   :  { %6702 = vmatpush3.msra.mxu1 %v6057_v19 }
 0xaa0   :  { %6703 = vmatprep.subr.mxu1 %v6056_v20 }
 0xaa1   :  { %6704 = vmatpush3.msra.mxu1 %v6056_v20 }
 0xaa2   :  { %6706 = vmatmul.mubr.msk.f32.vlgmr.msra.gmra.mxu1 %vm38_vm0, %v7285_v32  ;;  %6718 = vmatprep.subr.mxu1 %v7189_v40 }
 0xaa3   :  { %6720 = vmatprep.mubr.msk.f32.mxu1 %vm7190_vm1, %v7189_v40 }
 0xb4e   :  { %v1877_v23 = vpop.f32.mrf.mxu0 }
 0xb4f   :  { %6672 = vmatprep.mubr.msk.f32.mxu0 %vm328_vm2, %v1877_v23  ;;  %v2724_v23 = vld [vmem:[%s8203_s5 + $0x10] sm:$0xff] }
 0xb50   :  { %v6664_v24 = vpop.f32.mrf.mxu0 }
 0xb51   :  { %v2723_v24 = vld [vmem:[%s8203_s5 + $0x8] sm:$0xff] }
 0xb52   :  { %v1950_v25 = vpop.f32.mrf.mxu1 }
 0xb53   :  { %6673 = vmatmul.mubr.msk.f32.vlgmr.msra.gmra.mxu0 %vm328_vm2, %v1950_v25  ;;  %v2722_v25 = vld [vmem:[%s8203_s5] sm:$0xff] }
 0xb54   :  { %6687 = vmatpush3.msra.mxu0 %v6053_v22  ;;  %v6669_v27 = vpop.f32.mrf.mxu1  ;;  %6694 = vmatprep.mubr.msk.f32.mxu0 %vm38_vm0, %v7280_v29  ;;  %v2725_v22 = vld [vmem:[%s8203_s5 + $0x18] sm:$0xff] }
 0xb55   :  { %6688 = vmatprep.subr.mxu0 %v6052_v26 }
 0xb56   :  { %6689 = vmatpush3.msra.mxu0 %v6052_v26 }
 0xb57   :  { %6690 = vmatprep.subr.mxu0 %v6051_v28 }
 0xb58   :  { %6691 = vmatpush3.msra.mxu0 %v6051_v28 }
 0xb59   :  { %6692 = vmatprep.subr.mxu0 %v6050_v30 }
 0xb5a   :  { %6693 = vmatpush3.msra.mxu0 %v6050_v30  ;;  %v6685_v29 = vpop.f32.mrf.mxu1 }
 0xb5b   :  { %6695 = vmatmul.mubr.msk.f32.vlgmr.msra.gmra.mxu0 %vm38_vm0, %v7285_v32  ;;  %6708 = vmatprep.subr.mxu0 %v7189_v40  ;;  %v6047_v32 = vld [vmem:[%s8201_s3 + $0x3] ss:$0 sm:$0xff] }
 0xb5c   :  { %6710 = vmatprep.mubr.msk.f32.mxu0 %vm7190_vm1, %v7189_v40  ;;  %v2118_v31 = vpop.f32.mrf.mxu1 }
 0xb5d   :  { %v2119_v49 = vadd.f32 %v6047_v32, %v2118_v31 }
 0xb62   :  { %v6707_v36 = vpop.f32.mrf.mxu1 }
 0xb64   :  { %v2278_v39 = vpop.f32.mrf.mxu1 }
 0xb65   :  { %6719 = vmatpush3.msra.mxu1 %v2278_v39 }
 0xb66   :  { %6728 = vmatprep.subr.mxu1 %v6068_v7 }
 0xc13   :  { %v6674_v41 = vpop.f32.mrf.mxu0 }
 0xc14   :  { %v2038_v42 = vadd.f32 %v6674_v41, %v7514_v45  ;;  %v2124_v45 = vadd.f32 %v6685_v29, %v6047_v32 }
 0xc15   :  { %v2028_v43 = vpop.f32.mrf.mxu0 }
 0xc16   :  { %v2037_v44 = vadd.f32 %v2028_v43, %v7516_v47 }
 0xc1b   :  { %v6696_v46 = vpop.f32.mrf.mxu0 }
 0xc1d   :  { %v2198_v48 = vpop.f32.mrf.mxu0 }
 0xc1e   :  { %6709 = vmatpush3.xpose.msk.msra.mxu0 %vm328_vm2, %v2198_v48 }
 0xc1f   :  { %6713 = vmatprep.subr.mxu0 %v7189_v40 }
 0xc21   :  { %6711 = vmatmul.mubr.msk.f32.vlgmr.msra.gmra.mxu0 %vm328_vm2, %v2119_v49 }
 0xc22   :  { %6714 = vmatpush3.xpose.msk.msra.mxu0 %vm328_vm2, %v6696_v46  ;;  %6715 = vmatprep.mubr.msk.f32.mxu0 %vm7190_vm1, %v7189_v40 }
 0xc23   :  { %6723 = vmatprep.subr.mxu0 %v7189_v40 }
 0xc25   :  { %6716 = vmatmul.mubr.msk.f32.vlgmr.msra.gmra.mxu0 %vm328_vm2, %v2124_v45 }
 0xc26   :  { %6724 = vmatpush3.msra.mxu0 %v6707_v36  ;;  %6725 = vmatprep.mubr.msk.f32.mxu0 %vm7190_vm1, %v7189_v40 }
 0xc27   :  { %6733 = vmatprep.subr.mxu0 %v2725_v22 }
 0xce1   :  { %v2359_v47 = vpop.f32.mrf.mxu0 }
 0xce2   :  { %v2360_v51 = vadd.f32 %v2359_v47, %v7340_v50 }
 0xce3   :  { %v6712_v1 = vpop.f32.mrf.mxu0 }
 0xce4   :  { %v2439_v0 = vsel %vm328_vm2, %v2360_v51, -inf }
 0xce5   :  { %2440 = vmax.xlane.f32.xlu0 %v2439_v0  ;;  %v2435_v37 = vpop.f32.mrf.mxu0  ;;  %v2844_v0 = vld [vmem:[%s8204_s6 + $0x78] sm:$0xff] }
 0xce6   :  { %v2436_v38 = vadd.f32 %v2435_v37, %v7346_v54  ;;  %v2843_v37 = vld [vmem:[%s8204_s6 + $0x70] sm:$0xff] }
 0xce7   :  { %v6717_v52 = vpop.f32.mrf.mxu0 }
 0xce8   :  { %v2442_v53 = vsel %vm328_vm2, %v2436_v38, -inf  ;;  %v2841_v52 = vld [vmem:[%s8204_s6 + $0x60] sm:$0xff] }
 0xce9   :  { %2443 = vmax.xlane.f32.xlu1 %v2442_v53  ;;  %v2840_v53 = vld [vmem:[%s8204_s6 + $0x58] sm:$0xff] }
 0xd6e   :  { %v2441_v55 = vpop.xlane.xlu0 %2440 }
 0xd6f   :  { %v2445_v56 = vsub.f32 %v2360_v51, %v2441_v55  ;;  %v2839_v55 = vld [vmem:[%s8204_s6 + $0x50] sm:$0xff] }
 0xd71   :  { %v2447_v57 = vmul.f32 1.442695, %v2445_v56  ;;  %v2838_v56 = vld [vmem:[%s8204_s6 + $0x48] sm:$0xff] }
 0xd72   :  { %v2444_v58 = vpop.xlane.xlu1 %2443 }
 0xd73   :  { %7101 = vpow2.f32 %v2447_v57  ;;  %v2446_v59 = vsub.f32 %v2436_v38, %v2444_v58  ;;  %v2842_v38 = vld [vmem:[%s8204_s6 + $0x68] sm:$0xff]  ;;  %v2837_v57 = vld [vmem:[%s8204_s6 + $0x40] sm:$0xff]  ;;  %v2836_v58 = vld [vmem:[%s8204_s6 + $0x38] sm:$0xff] }
 0xd75   :  { %v2449_v60 = vmul.f32 1.442695, %v2446_v59  ;;  %v2835_v59 = vld [vmem:[%s8204_s6 + $0x30] sm:$0xff] }
 0xd77   :  { %7103 = vpow2.f32 %v2449_v60  ;;  %v2834_v60 = vld [vmem:[%s8204_s6 + $0x28] sm:$0xff] }
 0xd80   :  { %v7102_v50 = vpop.eup %7101 }
 0xd81   :  { %v2451_v61 = vsel %vm328_vm2, %v7102_v50, 0.0 }
 0xd82   :  { %2452 = vadd.xlane.f32.xlu0 %v2451_v61  ;;  %v2832_v61 = vld [vmem:[%s8204_s6 + $0x18] sm:$0xff] }
 0xd84   :  { %v7104_v62 = vpop.eup %7103 }
 0xd85   :  { %v2454_v63 = vsel %vm328_vm2, %v7104_v62, 0.0 }
 0xd86   :  { %2455 = vadd.xlane.f32.xlu1 %v2454_v63  ;;  %v2830_v63 = vld [vmem:[%s8204_s6 + $0x8] sm:$0xff] }
 0xe0b   :  { %v2453_v54 = vpop.xlane.xlu0 %2452 }
 0xe0c   :  { %7105 = vrcp.f32 %v2453_v54  ;;  %v2829_v54 = vld [vmem:[%s8204_s6] sm:$0xff] }
 0xe0f   :  { %v2456_v2 = vpop.xlane.xlu1 %2455 }
 0xe10   :  { %7107 = vrcp.f32 %v2456_v2  ;;  %v2728_v2 = vsub.s32 0, %v7498_v33 }
 0xe19   :  { %v7106_v3 = vpop.eup %7105 }
 0xe1a   :  { %v2459_v4 = vmul.f32 %v7106_v3, %v7102_v50  ;;  %v2833_v50 = vld [vmem:[%s8204_s6 + $0x20] sm:$0xff]  ;;  %v2729_v3 = vrot.slane %v7506_v35, %v2728_v2 }
 0xe1c   :  { %6721 = vmatmul.mubr.msk.f32.vlgmr.msra.gmra.mxu1 %vm328_vm2, %v2459_v4 }
 0xe1d   :  { %v7108_v5 = vpop.eup %7107  ;;  %6729 = vmatpush3.msra.mxu1 %v6068_v7 }
 0xe1e   :  { %v2460_v6 = vmul.f32 %v7108_v5, %v7104_v62  ;;  %6744 = vmatprep.subr.mxu1 %v2844_v0  ;;  %v2831_v62 = vld [vmem:[%s8204_s6 + $0x10] sm:$0xff] }
 0xe20   :  { %6726 = vmatmul.mubr.msk.f32.vlgmr.msra.gmra.mxu0 %vm328_vm2, %v2460_v6 }
 0xe21   :  { %6734 = vmatpush3.msra.mxu0 %v2725_v22 }
 0xe22   :  { %6735 = vmatprep.subr.mxu0 %v2724_v23 }
 0xe23   :  { %6736 = vmatpush3.msra.mxu0 %v2724_v23 }
 0xe24   :  { %6737 = vmatprep.subr.mxu0 %v2723_v24 }
 0xe25   :  { %6738 = vmatpush3.msra.mxu0 %v2723_v24 }
 0xe26   :  { %6739 = vmatprep.subr.mxu0 %v2722_v25 }
 0xe27   :  { %6740 = vmatpush3.msra.mxu0 %v2722_v25 }
 0xedc   :  { %v2530_v8 = vpop.f32.mrf.mxu1 }
 0xedd   :  { %6730 = vmatprep.mubr.msk.f32.mxu1 %vm328_vm2, %v2530_v8 }
 0xede   :  { %v6722_v9 = vpop.f32.mrf.mxu1 }
 0xee0   :  { %v2603_v10 = vpop.f32.mrf.mxu0 }
 0xee1   :  { %6731 = vmatmul.mubr.msk.f32.vlgmr.msra.gmra.mxu1 %vm328_vm2, %v2603_v10 }
 0xee2   :  { %v6727_v11 = vpop.f32.mrf.mxu0  ;;  %6745 = vmatpush3.msra.mxu1 %v2844_v0 }
 0xee3   :  { %6746 = vmatprep.subr.mxu1 %v2843_v37 }
 0xee4   :  { %6747 = vmatpush3.msra.mxu1 %v2843_v37 }
 0xee5   :  { %6748 = vmatprep.subr.mxu1 %v2842_v38 }
 0xee6   :  { %6749 = vmatpush3.msra.mxu1 %v2842_v38 }
 0xee7   :  { %6750 = vmatprep.subr.mxu1 %v2841_v52 }
 0xee8   :  { %6751 = vmatpush3.msra.mxu1 %v2841_v52 }
 0xee9   :  { %6752 = vmatprep.subr.mxu1 %v2840_v53 }
 0xeea   :  { %6753 = vmatpush3.msra.mxu1 %v2840_v53 }
 0xeeb   :  { %6754 = vmatprep.subr.mxu1 %v2839_v55 }
 0xeec   :  { %6755 = vmatpush3.msra.mxu1 %v2839_v55 }
 0xeed   :  { %6756 = vmatprep.subr.mxu1 %v2838_v56 }
 0xeee   :  { %6757 = vmatpush3.msra.mxu1 %v2838_v56 }
 0xeef   :  { %6758 = vmatprep.subr.mxu1 %v2837_v57 }
 0xef0   :  { %6759 = vmatpush3.msra.mxu1 %v2837_v57 }
 0xef1   :  { %6760 = vmatprep.subr.mxu1 %v2836_v58 }
 0xef2   :  { %6761 = vmatpush3.msra.mxu1 %v2836_v58 }
 0xef3   :  { %6762 = vmatprep.subr.mxu1 %v2835_v59 }
 0xef4   :  { %6763 = vmatpush3.msra.mxu1 %v2835_v59 }
 0xef5   :  { %6764 = vmatprep.subr.mxu1 %v2834_v60 }
 0xef6   :  { %6765 = vmatpush3.msra.mxu1 %v2834_v60 }
 0xef7   :  { %6766 = vmatprep.subr.mxu1 %v2833_v50 }
 0xef8   :  { %6767 = vmatpush3.msra.mxu1 %v2833_v50 }
 0xef9   :  { %6768 = vmatprep.subr.mxu1 %v2832_v61 }
 0xefa   :  { %6769 = vmatpush3.msra.mxu1 %v2832_v61 }
 0xefb   :  { %6770 = vmatprep.subr.mxu1 %v2831_v62 }
 0xefc   :  { %6771 = vmatpush3.msra.mxu1 %v2831_v62 }
 0xefd   :  { %6772 = vmatprep.subr.mxu1 %v2830_v63 }
 0xefe   :  { %6773 = vmatpush3.msra.mxu1 %v2830_v63 }
 0xeff   :  { %6774 = vmatprep.subr.mxu1 %v2829_v54 }
 0xf00   :  { %6775 = vmatpush3.msra.mxu1 %v2829_v54 }
 0xf01   :  { %6817 = vmatprep.subr.mxu1 %v7189_v40 }
 0xfa1   :  { %v6732_v12 = vpop.f32.mrf.mxu1 }
 0xfa2   :  { %v7626_v13 = vadd.f32 %v6732_v12, %v2038_v42 }
 0xfa3   :  { %v2681_v14 = vpop.f32.mrf.mxu1 }
 0xfa4   :  { %v7628_v15 = vadd.f32 %v2681_v14, %v2037_v44  ;;  %v2695_v16 = vsel %vm38_vm0, %v7626_v13, 0.0  ;;  %v2701_v17 = vmul.f32 %v7626_v13, %v7626_v13 }
 0xfa5   :  { %2696 = vadd.xlane.f32.xlu1 %v2695_v16 }
 0xfa6   :  { %v2692_v18 = vsel %vm38_vm0, %v7628_v15, 0.0  ;;  %v2700_v19 = vmul.f32 %v7628_v15, %v7628_v15  ;;  %v2705_v20 = vsel %vm38_vm0, %v2701_v17, 0.0 }
 0xfa7   :  { %2693 = vadd.xlane.f32.xlu0 %v2692_v18 }
 0xfa8   :  { %v2702_v21 = vsel %vm38_vm0, %v2700_v19, 0.0 }
 0xfa9   :  { %2706 = vadd.xlane.f32.xlu1 %v2705_v20 }
 0xfab   :  { %2703 = vadd.xlane.f32.xlu0 %v2702_v21 }
0x102e   :  { %v2697_v26 = vpop.xlane.xlu1 %2696 }
0x102f   :  { %v2699_v27 = vmul.f32 0.03125, %v2697_v26 }
0x1030   :  { %v2694_v28 = vpop.xlane.xlu0 %2693 }
0x1031   :  { %v2698_v30 = vmul.f32 0.03125, %v2694_v28  ;;  %v2711_v31 = vmul.f32 %v2699_v27, %v2699_v27  ;;  %v2715_v47 = vsub.f32 %v7626_v13, %v2699_v27  ;;  %v2924_v28 = vsub.s32 2, %v7498_v33 }
0x1032   :  { %v2707_v29 = vpop.xlane.xlu1 %2706 }
0x1033   :  { %v2709_v36 = vmul.f32 0.03125, %v2707_v29  ;;  %v2710_v41 = vmul.f32 %v2698_v30, %v2698_v30  ;;  %v2714_v49 = vsub.f32 %v7628_v15, %v2698_v30  ;;  %v2925_v30 = vrot.slane %v7506_v35, %v2924_v28 }
0x1034   :  { %v2704_v39 = vpop.xlane.xlu0 %2703 }
0x1035   :  { %v2713_v42 = vsub.f32 %v2709_v36, %v2711_v31  ;;  %v2708_v43 = vmul.f32 0.03125, %v2704_v39 }
0x1037   :  { %v2717_v44 = vadd.f32 1e-05, %v2713_v42  ;;  %v2712_v46 = vsub.f32 %v2708_v43, %v2710_v41 }
0x1039   :  { %v2716_v48 = vadd.f32 1e-05, %v2712_v46  ;;  %7109 = vrsqrt.f32 %v2717_v44 }
0x103b   :  { %7111 = vrsqrt.f32 %v2716_v48  ;;  %v6077_v48 = vld [vmem:[%s8200_s2 + $0x198] sm:$0xff] }
0x103c   :  { %6779 = vmatprep.subr.mxu0 %v6077_v48 }
0x1046   :  { %v7110_v32 = vpop.eup %7109 }
0x1047   :  { %v2721_v1 = vmul.f32 %v7110_v32, %v2715_v47  ;;  %v6076_v32 = vld [vmem:[%s8200_s2 + $0x190] sm:$0xff]  ;;  %v6085_v47 = vld [vmem:[%s8200_s2 + $0x218] sm:$0xff] }
0x1048   :  { %v7112_v45 = vpop.eup %7111 }
0x1049   :  { %v2720_v51 = vmul.f32 %v7112_v45, %v2714_v49  ;;  %v6075_v49 = vld [vmem:[%s8200_s2 + $0x188] sm:$0xff]  ;;  %v6074_v45 = vld [vmem:[%s8200_s2 + $0x180] sm:$0xff] }
0x104b   :  { %6741 = vmatprep.mubr.msk.f32.mxu0 %vm38_vm0, %v2720_v51 }
0x104c   :  { %6742 = vmatmul.mubr.msk.f32.vlgmr.msra.gmra.mxu0 %vm38_vm0, %v2721_v1 }
0x104d   :  { %6780 = vmatpush3.msra.mxu0 %v6077_v48 }
0x104e   :  { %6781 = vmatprep.subr.mxu0 %v6076_v32 }
0x104f   :  { %6782 = vmatpush3.msra.mxu0 %v6076_v32 }
0x1050   :  { %6783 = vmatprep.subr.mxu0 %v6075_v49 }
0x1051   :  { %6784 = vmatpush3.msra.mxu0 %v6075_v49 }
0x1052   :  { %6785 = vmatprep.subr.mxu0 %v6074_v45 }
0x1053   :  { %6786 = vmatpush3.msra.mxu0 %v6074_v45 }
0x1054   :  { %6790 = vmatprep.subr.mxu0 %v6085_v47 }
0x110c   :  { %v6743_v4 = vpop.f32.mrf.mxu0 }
0x110d   :  { %v2808_v5 = vadd.f32 %v6743_v4, %v2729_v3 }
0x110e   :  { %v2802_v6 = vpop.f32.mrf.mxu0 }
0x110f   :  { %v2812_v7 = vmul.f32 %v2808_v5, %v2808_v5  ;;  %v2803_v8 = vadd.f32 %v2802_v6, %v2729_v3  ;;  %v6083_v6 = vld [vmem:[%s8200_s2 + $0x208] sm:$0xff] }
0x1111   :  { %v2814_v9 = vmul.f32 %v2812_v7, %v2808_v5  ;;  %v2811_v10 = vmul.f32 %v2803_v8, %v2803_v8  ;;  %v6082_v7 = vld [vmem:[%s8200_s2 + $0x200] sm:$0xff] }
0x1113   :  { %v2816_v11 = vmul.f32 0.044715, %v2814_v9  ;;  %v2813_v12 = vmul.f32 %v2811_v10, %v2803_v8  ;;  %v6090_v9 = vld [vmem:[%s8200_s2 + $0x290] sm:$0xff]  ;;  %v6089_v10 = vld [vmem:[%s8200_s2 + $0x288] sm:$0xff] }
0x1115   :  { %v2818_v14 = vadd.f32 %v2816_v11, %v2808_v5  ;;  %v2815_v16 = vmul.f32 0.044715, %v2813_v12  ;;  %v6088_v11 = vld [vmem:[%s8200_s2 + $0x280] sm:$0xff] }
0x1117   :  { %v2820_v17 = vmul.f32 0.7978846, %v2818_v14  ;;  %v2817_v18 = vadd.f32 %v2815_v16, %v2803_v8  ;;  %v6079_v16 = vld [vmem:[%s8201_s3 + $0x4] ss:$0 sm:$0xff] }
0x1119   :  { %7113 = vtanh.f32 %v2820_v17  ;;  %v2819_v19 = vmul.f32 0.7978846, %v2817_v18 }
0x111b   :  { %7115 = vtanh.f32 %v2819_v19 }
0x1126   :  { %v7114_v20 = vpop.eup %7113 }
0x1127   :  { %v2824_v21 = vadd.f32 1.0, %v7114_v20 }
0x1128   :  { %v7116_v22 = vpop.eup %7115 }
0x1129   :  { %v2823_v23 = vadd.f32 1.0, %v7116_v22  ;;  %v2826_v24 = vmul.f32 0.5, %v2824_v21 }
0x112b   :  { %v2825_v25 = vmul.f32 0.5, %v2823_v23  ;;  %v2828_v27 = vmul.f32 %v2826_v24, %v2808_v5  ;;  %v6084_v5 = vld [vmem:[%s8200_s2 + $0x210] sm:$0xff]  ;;  %v7804_v24 = vld [vmem:[%s8199_s1 + $0x8] sm:$0xff] }
0x112d   :  { %v2827_v26 = vmul.f32 %v2825_v25, %v2803_v8  ;;  %v6091_v8 = vld [vmem:[%s8200_s2 + $0x298] sm:$0xff] }
0x112f   :  { %6776 = vmatprep.mubr.f32.mxu1 %v2827_v26 }
0x1130   :  { %6777 = vmatmul.mubr.f32.vlgmr.msra.gmra.mxu1 %v2828_v27 }
0x1131   :  { %6819 = vmatprep.mubr.msk.f32.mxu1 %vm7190_vm1, %v7189_v40 }
0x11f0   :  { %v6778_v29 = vpop.f32.mrf.mxu1 }
0x11f1   :  { %v2921_v31 = vadd.f32 %v6778_v29, %v7626_v13 }
0x11f2   :  { %v2911_v36 = vpop.f32.mrf.mxu1 }
0x11f3   :  { %v7716_v39 = vadd.f32 %v2925_v30, %v2921_v31  ;;  %v2920_v41 = vadd.f32 %v2911_v36, %v7628_v15 }
0x11f5   :  { %v7719_v42 = vadd.f32 %v2925_v30, %v2920_v41  ;;  %v2933_v43 = vsel %vm38_vm0, %v7716_v39, 0.0  ;;  %v2939_v44 = vmul.f32 %v7716_v39, %v7716_v39  ;;  %v7810_v30 = vld [vmem:[%s8199_s1] sm:$0xff] }
0x11f6   :  { %2934 = vadd.xlane.f32.xlu1 %v2933_v43 }
0x11f7   :  { %v2930_v35 = vsel %vm38_vm0, %v7719_v42, 0.0  ;;  %v2938_v13 = vmul.f32 %v7719_v42, %v7719_v42  ;;  %v2943_v46 = vsel %vm38_vm0, %v2939_v44, 0.0 }
0x11f8   :  { %2931 = vadd.xlane.f32.xlu0 %v2930_v35 }
0x11f9   :  { %v2940_v15 = vsel %vm38_vm0, %v2938_v13, 0.0 }
0x11fa   :  { %2944 = vadd.xlane.f32.xlu1 %v2943_v46 }
0x11fc   :  { %2941 = vadd.xlane.f32.xlu0 %v2940_v15 }
0x127f   :  { %v2935_v51 = vpop.xlane.xlu1 %2934 }
0x1280   :  { %v2937_v1 = vmul.f32 0.03125, %v2935_v51 }
0x1281   :  { %v2932_v0 = vpop.xlane.xlu0 %2931 }
0x1282   :  { %v2936_v37 = vmul.f32 0.03125, %v2932_v0  ;;  %v2949_v52 = vmul.f32 %v2937_v1, %v2937_v1  ;;  %v2953_v54 = vsub.f32 %v7716_v39, %v2937_v1 }
0x1283   :  { %v2945_v38 = vpop.xlane.xlu1 %2944 }
0x1284   :  { %v2947_v53 = vmul.f32 0.03125, %v2945_v38  ;;  %v2948_v56 = vmul.f32 %v2936_v37, %v2936_v37  ;;  %v2952_v62 = vsub.f32 %v7719_v42, %v2936_v37 }
0x1285   :  { %v2942_v55 = vpop.xlane.xlu0 %2941 }
0x1286   :  { %v2951_v57 = vsub.f32 %v2947_v53, %v2949_v52  ;;  %v2946_v58 = vmul.f32 0.03125, %v2942_v55  ;;  %v6105_v52 = vld [vmem:[%s8200_s2 + $0x1b0] sm:$0xff]  ;;  %v6104_v55 = vld [vmem:[%s8200_s2 + $0x1a8] sm:$0xff] }
0x1288   :  { %v2955_v59 = vadd.f32 1e-05, %v2951_v57  ;;  %v2950_v60 = vsub.f32 %v2946_v58, %v2948_v56  ;;  %v6103_v56 = vld [vmem:[%s8200_s2 + $0x1a0] sm:$0xff]  ;;  %v6120_v57 = vld [vmem:[%s8200_s2 + $0x2b8] sm:$0xff]  ;;  %v6119_v58 = vld [vmem:[%s8200_s2 + $0x2b0] sm:$0xff] }
0x128a   :  { %v2954_v50 = vadd.f32 1e-05, %v2950_v60  ;;  %7117 = vrsqrt.f32 %v2955_v59  ;;  %v6118_v59 = vld [vmem:[%s8200_s2 + $0x2a8] sm:$0xff]  ;;  %v6117_v60 = vld [vmem:[%s8200_s2 + $0x2a0] sm:$0xff] }
0x128c   :  { %7119 = vrsqrt.f32 %v2954_v50  ;;  %v6100_v50 = vld [vmem:[%s8202_s4 + $0x20] sm:$0xff] }
0x1297   :  { %v7118_v61 = vpop.eup %7117 }
0x1298   :  { %v7750_v4 = vmul.f32 %v7118_v61, %v2953_v54  ;;  %v6114_v61 = vld [vmem:[%s8200_s2 + $0x238] sm:$0xff] }
0x1299   :  { %v7120_v63 = vpop.eup %7119 }
0x129a   :  { %v7748_v3 = vmul.f32 %v7120_v63, %v2952_v62 }
0x129c   :  { %6787 = vmatprep.mubr.msk.f32.mxu0 %vm38_vm0, %v7748_v3 }
0x129d   :  { %6788 = vmatmul.mubr.msk.f32.vlgmr.msra.gmra.mxu0 %vm38_vm0, %v7750_v4 }
0x129e   :  { %6791 = vmatpush3.msra.mxu0 %v6085_v47  ;;  %6798 = vmatprep.mubr.msk.f32.mxu0 %vm38_vm0, %v7748_v3  ;;  %v6106_v47 = vld [vmem:[%s8200_s2 + $0x1b8] sm:$0xff] }
0x129f   :  { %6792 = vmatprep.subr.mxu0 %v6084_v5 }
0x12a0   :  { %6793 = vmatpush3.msra.mxu0 %v6084_v5  ;;  %v6113_v5 = vld [vmem:[%s8200_s2 + $0x230] sm:$0xff] }
0x12a1   :  { %6794 = vmatprep.subr.mxu0 %v6083_v6 }
0x12a2   :  { %6795 = vmatpush3.msra.mxu0 %v6083_v6 }
0x12a3   :  { %6796 = vmatprep.subr.mxu0 %v6082_v7 }
0x12a4   :  { %6797 = vmatpush3.msra.mxu0 %v6082_v7  ;;  %v6112_v7 = vld [vmem:[%s8200_s2 + $0x228] sm:$0xff] }
0x12a5   :  { %6799 = vmatmul.mubr.msk.f32.vlgmr.msra.gmra.mxu0 %vm38_vm0, %v7750_v4  ;;  %6801 = vmatprep.subr.mxu0 %v6091_v8 }
0x12a6   :  { %6802 = vmatpush3.msra.mxu0 %v6091_v8  ;;  %6809 = vmatprep.mubr.msk.f32.mxu0 %vm38_vm0, %v7748_v3  ;;  %v6111_v8 = vld [vmem:[%s8200_s2 + $0x220] sm:$0xff] }
0x12a7   :  { %6803 = vmatprep.subr.mxu0 %v6090_v9 }
0x12a8   :  { %6804 = vmatpush3.msra.mxu0 %v6090_v9 }
0x12a9   :  { %6805 = vmatprep.subr.mxu0 %v6089_v10 }
0x12aa   :  { %6806 = vmatpush3.msra.mxu0 %v6089_v10 }
0x12ab   :  { %6807 = vmatprep.subr.mxu0 %v6088_v11 }
0x12ac   :  { %6808 = vmatpush3.msra.mxu0 %v6088_v11 }
0x12ad   :  { %6810 = vmatmul.mubr.msk.f32.vlgmr.msra.gmra.mxu0 %vm38_vm0, %v7750_v4  ;;  %6812 = vmatprep.subr.mxu0 %v7189_v40 }
0x12ae   :  { %6814 = vmatprep.mubr.msk.f32.mxu0 %vm7190_vm1, %v7189_v40 }
0x135d   :  { %v6789_v12 = vpop.f32.mrf.mxu0 }
0x135e   :  { %v3057_v18 = vadd.f32 %v6789_v12, %v6079_v16 }
0x135f   :  { %v3051_v14 = vpop.f32.mrf.mxu0 }
0x1360   :  { %v3052_v20 = vadd.f32 %v6079_v16, %v3051_v14 }
0x1365   :  { %v6800_v17 = vpop.f32.mrf.mxu0 }
0x1366   :  { %6818 = vmatpush3.xpose.msk.msra.mxu1 %vm328_vm2, %v6800_v17 }
0x1367   :  { %v3131_v19 = vpop.f32.mrf.mxu0  ;;  %6827 = vmatprep.subr.mxu1 %v7189_v40 }
0x1368   :  { %6813 = vmatpush3.xpose.msk.msra.mxu0 %vm328_vm2, %v3131_v19  ;;  %v6108_v19 = vld [vmem:[%s8201_s3 + $0x5] ss:$0 sm:$0xff] }
0x1369   :  { %6820 = vmatmul.mubr.msk.f32.vlgmr.msra.gmra.mxu1 %vm328_vm2, %v3057_v18  ;;  %6822 = vmatprep.subr.mxu0 %v7189_v40 }
0x136a   :  { %6829 = vmatprep.mubr.msk.f32.mxu1 %vm7190_vm1, %v7189_v40 }
0x136b   :  { %6815 = vmatmul.mubr.msk.f32.vlgmr.msra.gmra.mxu0 %vm328_vm2, %v3052_v20 }
0x136c   :  { %6824 = vmatprep.mubr.msk.f32.mxu0 %vm7190_vm1, %v7189_v40 }
0x136d   :  { %v6811_v21 = vpop.f32.mrf.mxu0 }
0x136e   :  { %6828 = vmatpush3.msra.mxu1 %v6811_v21 }
0x136f   :  { %v3211_v22 = vpop.f32.mrf.mxu0  ;;  %6837 = vmatprep.subr.mxu1 %v6106_v47 }
0x1370   :  { %6823 = vmatpush3.msra.mxu0 %v3211_v22 }
0x1371   :  { %6832 = vmatprep.subr.mxu0 %v6100_v50 }
0x1429   :  { %v3368_v23 = vpop.f32.mrf.mxu1 }
0x142a   :  { %v3369_v25 = vadd.f32 %v7804_v24, %v3368_v23 }
0x142b   :  { %v3292_v26 = vpop.f32.mrf.mxu0  ;;  %v6821_v27 = vpop.f32.mrf.mxu1 }
0x142c   :  { %v3293_v29 = vadd.f32 %v7810_v30, %v3292_v26  ;;  %v3375_v31 = vsel %vm328_vm2, %v3369_v25, -inf }
0x142d   :  { %3376 = vmax.xlane.f32.xlu1 %v3375_v31  ;;  %v6816_v36 = vpop.f32.mrf.mxu0 }
0x142e   :  { %v3372_v41 = vsel %vm328_vm2, %v3293_v29, -inf }
0x142f   :  { %3373 = vmax.xlane.f32.xlu0 %v3372_v41 }
0x14b6   :  { %v3377_v43 = vpop.xlane.xlu1 %3376 }
0x14b7   :  { %v3379_v44 = vsub.f32 %v3369_v25, %v3377_v43 }
0x14b8   :  { %v3374_v35 = vpop.xlane.xlu0 %3373 }
0x14b9   :  { %v3382_v13 = vmul.f32 1.442695, %v3379_v44  ;;  %v3378_v46 = vsub.f32 %v3293_v29, %v3374_v35 }
0x14bb   :  { %7121 = vpow2.f32 %v3382_v13  ;;  %v3380_v15 = vmul.f32 1.442695, %v3378_v46 }
0x14bd   :  { %7123 = vpow2.f32 %v3380_v15 }
0x14c8   :  { %v7122_v48 = vpop.eup %7121 }
0x14c9   :  { %v3387_v32 = vsel %vm328_vm2, %v7122_v48, 0.0 }
0x14ca   :  { %v7124_v49 = vpop.eup %7123  ;;  %3388 = vadd.xlane.f32.xlu1 %v3387_v32 }
0x14cb   :  { %v3384_v45 = vsel %vm328_vm2, %v7124_v49, 0.0 }
0x14cc   :  { %3385 = vadd.xlane.f32.xlu0 %v3384_v45  ;;  %v6135_v45 = vld [vmem:[%s8200_s2 + $0x1d8] sm:$0xff] }
0x1553   :  { %v3389_v51 = vpop.xlane.xlu1 %3388 }
0x1554   :  { %7125 = vrcp.f32 %v3389_v51 }
0x1555   :  { %v3386_v1 = vpop.xlane.xlu0 %3385 }
0x1556   :  { %7127 = vrcp.f32 %v3386_v1 }
0x1561   :  { %v7126_v0 = vpop.eup %7125 }
0x1562   :  { %v3393_v37 = vmul.f32 %v7126_v0, %v7122_v48 }
0x1563   :  { %v7128_v38 = vpop.eup %7127 }
0x1564   :  { %6830 = vmatmul.mubr.msk.f32.vlgmr.msra.gmra.mxu1 %vm328_vm2, %v3393_v37  ;;  %v3392_v53 = vmul.f32 %v7128_v38, %v7124_v49 }
0x1565   :  { %6838 = vmatpush3.msra.mxu1 %v6106_v47  ;;  %6845 = vmatprep.mubr.msk.f32.mxu1 %vm38_vm0, %v7748_v3 }
0x1566   :  { %6839 = vmatprep.subr.mxu1 %v6105_v52  ;;  %6825 = vmatmul.mubr.msk.f32.vlgmr.msra.gmra.mxu0 %vm328_vm2, %v3392_v53  ;;  %v6133_v53 = vld [vmem:[%s8200_s2 + $0x1c8] sm:$0xff] }
0x1567   :  { %6840 = vmatpush3.msra.mxu1 %v6105_v52  ;;  %6833 = vmatpush3.msra.mxu0 %v6100_v50  ;;  %v6134_v52 = vld [vmem:[%s8200_s2 + $0x1d0] sm:$0xff]  ;;  %v6143_v50 = vld [vmem:[%s8200_s2 + $0x258] sm:$0xff] }
0x1568   :  { %6841 = vmatprep.subr.mxu1 %v6104_v55  ;;  %6848 = vmatprep.subr.mxu0 %v6114_v61 }
0x1569   :  { %6842 = vmatpush3.msra.mxu1 %v6104_v55  ;;  %v6132_v55 = vld [vmem:[%s8200_s2 + $0x1c0] sm:$0xff] }
0x156a   :  { %6843 = vmatprep.subr.mxu1 %v6103_v56 }
0x156b   :  { %6844 = vmatpush3.msra.mxu1 %v6103_v56  ;;  %v6149_v56 = vld [vmem:[%s8200_s2 + $0x2d8] sm:$0xff] }
0x156c   :  { %6846 = vmatmul.mubr.msk.f32.vlgmr.msra.gmra.mxu1 %vm38_vm0, %v7750_v4  ;;  %6859 = vmatprep.subr.mxu1 %v6120_v57 }
0x156d   :  { %6860 = vmatpush3.msra.mxu1 %v6120_v57  ;;  %6867 = vmatprep.mubr.msk.f32.mxu1 %vm38_vm0, %v7748_v3  ;;  %v6148_v57 = vld [vmem:[%s8200_s2 + $0x2d0] sm:$0xff] }
0x156e   :  { %6861 = vmatprep.subr.mxu1 %v6119_v58 }
0x156f   :  { %6862 = vmatpush3.msra.mxu1 %v6119_v58  ;;  %v6147_v58 = vld [vmem:[%s8200_s2 + $0x2c8] sm:$0xff] }
0x1570   :  { %6863 = vmatprep.subr.mxu1 %v6118_v59 }
0x1571   :  { %6864 = vmatpush3.msra.mxu1 %v6118_v59  ;;  %v6146_v59 = vld [vmem:[%s8200_s2 + $0x2c0] sm:$0xff] }
0x1572   :  { %6865 = vmatprep.subr.mxu1 %v6117_v60 }
0x1573   :  { %6866 = vmatpush3.msra.mxu1 %v6117_v60  ;;  %v6129_v60 = vld [vmem:[%s8202_s4 + $0x28] sm:$0xff] }
0x1574   :  { %6868 = vmatmul.mubr.msk.f32.vlgmr.msra.gmra.mxu1 %vm38_vm0, %v7750_v4  ;;  %6880 = vmatprep.subr.mxu1 %v7189_v40 }
0x1575   :  { %6882 = vmatprep.mubr.msk.f32.mxu1 %vm7190_vm1, %v7189_v40 }
0x1624   :  { %v3536_v62 = vpop.f32.mrf.mxu1 }
0x1626   :  { %v3463_v63 = vpop.f32.mrf.mxu0  ;;  %v6831_v54 = vpop.f32.mrf.mxu1 }
0x1627   :  { %6834 = vmatprep.mubr.msk.f32.mxu0 %vm328_vm2, %v3463_v63  ;;  %v6142_v54 = vld [vmem:[%s8200_s2 + $0x250] sm:$0xff] }
0x1628   :  { %v6826_v6 = vpop.f32.mrf.mxu0  ;;  %6835 = vmatmul.mubr.msk.f32.vlgmr.msra.gmra.mxu0 %vm328_vm2, %v3536_v62 }
0x1629   :  { %6849 = vmatpush3.msra.mxu0 %v6114_v61  ;;  %6856 = vmatprep.mubr.msk.f32.mxu0 %vm38_vm0, %v7748_v3  ;;  %v6141_v6 = vld [vmem:[%s8200_s2 + $0x248] sm:$0xff] }
0x162a   :  { %6850 = vmatprep.subr.mxu0 %v6113_v5 }
0x162b   :  { %6851 = vmatpush3.msra.mxu0 %v6113_v5 }
0x162c   :  { %6852 = vmatprep.subr.mxu0 %v6112_v7  ;;  %v6847_v9 = vpop.f32.mrf.mxu1 }
0x162d   :  { %6853 = vmatpush3.msra.mxu0 %v6112_v7  ;;  %v3710_v21 = vadd.f32 %v6847_v9, %v6108_v19  ;;  %v6140_v7 = vld [vmem:[%s8200_s2 + $0x240] sm:$0xff] }
0x162e   :  { %6854 = vmatprep.subr.mxu0 %v6111_v8  ;;  %v3704_v10 = vpop.f32.mrf.mxu1 }
0x162f   :  { %6855 = vmatpush3.msra.mxu0 %v6111_v8  ;;  %v3705_v20 = vadd.f32 %v6108_v19, %v3704_v10 }
0x1630   :  { %6857 = vmatmul.mubr.msk.f32.vlgmr.msra.gmra.mxu0 %vm38_vm0, %v7750_v4  ;;  %6870 = vmatprep.subr.mxu0 %v7189_v40 }
0x1631   :  { %6872 = vmatprep.mubr.msk.f32.mxu0 %vm7190_vm1, %v7189_v40 }
0x1634   :  { %v6869_v11 = vpop.f32.mrf.mxu1 }
0x1636   :  { %v3864_v12 = vpop.f32.mrf.mxu1 }
0x1637   :  { %6881 = vmatpush3.msra.mxu1 %v3864_v12  ;;  %v7965_v12 = vld [vmem:[%s8206_s8 + $0x4] sm:$0x7] }
0x1638   :  { %6890 = vmatprep.subr.mxu1 %v6129_v60 }
0x16e8   :  { %v7878_v14 = vpop.f32.mrf.mxu0 }
0x16ea   :  { %v7880_v16 = vpop.f32.mrf.mxu0 }
0x16f0   :  { %v6858_v17 = vpop.f32.mrf.mxu0 }
0x16f2   :  { %v3784_v18 = vpop.f32.mrf.mxu0 }
0x16f3   :  { %6871 = vmatpush3.xpose.msk.msra.mxu0 %vm328_vm2, %v3784_v18 }
0x16f4   :  { %6875 = vmatprep.subr.mxu0 %v7189_v40 }
0x16f6   :  { %6873 = vmatmul.mubr.msk.f32.vlgmr.msra.gmra.mxu0 %vm328_vm2, %v3705_v20 }
0x16f7   :  { %6876 = vmatpush3.xpose.msk.msra.mxu0 %vm328_vm2, %v6858_v17  ;;  %6877 = vmatprep.mubr.msk.f32.mxu0 %vm7190_vm1, %v7189_v40  ;;  %v2963_v17 = vrot.slane %v7965_v12, %v7501_v34 }
0x16f8   :  { %6885 = vmatprep.subr.mxu0 %v7189_v40 }
0x16f9   :  { %v2965_v18 = vadd.f32 %v2963_v17, %v7716_v39  ;;  %v2964_v20 = vadd.f32 %v2963_v17, %v7719_v42  ;;  %v6169_v17 = vld [vmem:[%s8200_s2 + $0x260] sm:$0xff] }
0x16fa   :  { %6878 = vmatmul.mubr.msk.f32.vlgmr.msra.gmra.mxu0 %vm328_vm2, %v3710_v21 }
0x16fb   :  { %6886 = vmatpush3.msra.mxu0 %v6869_v11  ;;  %6887 = vmatprep.mubr.msk.f32.mxu0 %vm7190_vm1, %v7189_v40  ;;  %v3624_v19 = vadd.f32 %v7878_v14, %v2965_v18 }
0x16fc   :  { %6895 = vmatprep.subr.mxu0 %v6135_v45 }
0x17b6   :  { %v3945_v22 = vpop.f32.mrf.mxu0 }
0x17b7   :  { %v3946_v23 = vadd.f32 %v7810_v30, %v3945_v22  ;;  %v3623_v22 = vadd.f32 %v7880_v16, %v2964_v20 }
0x17b8   :  { %v6874_v25 = vpop.f32.mrf.mxu0 }
0x17b9   :  { %v4025_v26 = vsel %vm328_vm2, %v3946_v23, -inf }
0x17ba   :  { %4026 = vmax.xlane.f32.xlu0 %v4025_v26  ;;  %v4021_v27 = vpop.f32.mrf.mxu0 }
0x17bb   :  { %v4022_v29 = vadd.f32 %v7804_v24, %v4021_v27 }
0x17bc   :  { %v6879_v31 = vpop.f32.mrf.mxu0 }
0x17bd   :  { %v4028_v36 = vsel %vm328_vm2, %v4022_v29, -inf  ;;  %v6137_v31 = vld [vmem:[%s8201_s3 + $0x6] ss:$0 sm:$0xff] }
0x17be   :  { %4029 = vmax.xlane.f32.xlu1 %v4028_v36 }
0x1843   :  { %v4027_v41 = vpop.xlane.xlu0 %4026 }
0x1844   :  { %v4031_v43 = vsub.f32 %v3946_v23, %v4027_v41 }
0x1846   :  { %v4033_v44 = vmul.f32 1.442695, %v4031_v43 }
0x1847   :  { %v4030_v35 = vpop.xlane.xlu1 %4029 }
0x1848   :  { %7129 = vpow2.f32 %v4033_v44  ;;  %v4032_v13 = vsub.f32 %v4022_v29, %v4030_v35 }
0x184a   :  { %v4035_v46 = vmul.f32 1.442695, %v4032_v13 }
0x184c   :  { %7131 = vpow2.f32 %v4035_v46 }
0x1855   :  { %v7130_v15 = vpop.eup %7129 }
0x1856   :  { %v4037_v48 = vsel %vm328_vm2, %v7130_v15, 0.0 }
0x1857   :  { %4038 = vadd.xlane.f32.xlu0 %v4037_v48 }
0x1859   :  { %v7132_v32 = vpop.eup %7131 }
0x185a   :  { %v4040_v49 = vsel %vm328_vm2, %v7132_v32, 0.0 }
0x185b   :  { %4041 = vadd.xlane.f32.xlu1 %v4040_v49 }
0x18e0   :  { %v4039_v47 = vpop.xlane.xlu0 %4038 }
0x18e1   :  { %7133 = vrcp.f32 %v4039_v47 }
0x18e4   :  { %v4042_v51 = vpop.xlane.xlu1 %4041 }
0x18e5   :  { %7135 = vrcp.f32 %v4042_v51 }
0x18ee   :  { %v7134_v1 = vpop.eup %7133 }
0x18ef   :  { %v4045_v0 = vmul.f32 %v7134_v1, %v7130_v15 }
0x18f1   :  { %6883 = vmatmul.mubr.msk.f32.vlgmr.msra.gmra.mxu1 %vm328_vm2, %v4045_v0 }
0x18f2   :  { %v7136_v37 = vpop.eup %7135  ;;  %6891 = vmatpush3.msra.mxu1 %v6129_v60  ;;  %v6161_v60 = vld [vmem:[%s8200_s2 + $0x1e0] sm:$0xff] }
0x18f3   :  { %v4046_v38 = vmul.f32 %v7136_v37, %v7132_v32  ;;  %6906 = vmatprep.subr.mxu1 %v6143_v50  ;;  %v6164_v37 = vld [vmem:[%s8200_s2 + $0x1f8] sm:$0xff] }
0x18f5   :  { %6888 = vmatmul.mubr.msk.f32.vlgmr.msra.gmra.mxu0 %vm328_vm2, %v4046_v38 }
0x18f6   :  { %6896 = vmatpush3.msra.mxu0 %v6135_v45  ;;  %6903 = vmatprep.mubr.msk.f32.mxu0 %vm38_vm0, %v7748_v3 }
0x18f7   :  { %6897 = vmatprep.subr.mxu0 %v6134_v52 }
0x18f8   :  { %6898 = vmatpush3.msra.mxu0 %v6134_v52 }
0x18f9   :  { %6899 = vmatprep.subr.mxu0 %v6133_v53 }
0x18fa   :  { %6900 = vmatpush3.msra.mxu0 %v6133_v53 }
0x18fb   :  { %6901 = vmatprep.subr.mxu0 %v6132_v55 }
0x18fc   :  { %6902 = vmatpush3.msra.mxu0 %v6132_v55 }
0x18fd   :  { %6904 = vmatmul.mubr.msk.f32.vlgmr.msra.gmra.mxu0 %vm38_vm0, %v7750_v4  ;;  %6917 = vmatprep.subr.mxu0 %v6149_v56 }
0x18fe   :  { %6918 = vmatpush3.msra.mxu0 %v6149_v56  ;;  %6925 = vmatprep.mubr.msk.f32.mxu0 %vm38_vm0, %v7748_v3 }
0x18ff   :  { %6919 = vmatprep.subr.mxu0 %v6148_v57 }
0x1900   :  { %6920 = vmatpush3.msra.mxu0 %v6148_v57 }
0x1901   :  { %6921 = vmatprep.subr.mxu0 %v6147_v58 }
0x1902   :  { %6922 = vmatpush3.msra.mxu0 %v6147_v58  ;;  %v6163_v58 = vld [vmem:[%s8200_s2 + $0x1f0] sm:$0xff] }
0x1903   :  { %6923 = vmatprep.subr.mxu0 %v6146_v59 }
0x1904   :  { %6924 = vmatpush3.msra.mxu0 %v6146_v59  ;;  %v6162_v59 = vld [vmem:[%s8200_s2 + $0x1e8] sm:$0xff] }
0x1905   :  { %6926 = vmatmul.mubr.msk.f32.vlgmr.msra.gmra.mxu0 %vm38_vm0, %v7750_v4  ;;  %6938 = vmatprep.subr.mxu0 %v7189_v40 }
0x1906   :  { %6940 = vmatprep.mubr.msk.f32.mxu0 %vm7190_vm1, %v7189_v40 }
0x19b1   :  { %v4116_v61 = vpop.f32.mrf.mxu1 }
0x19b2   :  { %6892 = vmatprep.mubr.msk.f32.mxu1 %vm328_vm2, %v4116_v61  ;;  %v6177_v61 = vld [vmem:[%s8200_s2 + $0x2f0] sm:$0xff] }
0x19b3   :  { %v6884_v62 = vpop.f32.mrf.mxu1 }
0x19b4   :  { %v6176_v62 = vld [vmem:[%s8200_s2 + $0x2e8] sm:$0xff] }
0x19b5   :  { %v4189_v63 = vpop.f32.mrf.mxu0 }
0x19b6   :  { %6893 = vmatmul.mubr.msk.f32.vlgmr.msra.gmra.mxu1 %vm328_vm2, %v4189_v63  ;;  %v6175_v63 = vld [vmem:[%s8200_s2 + $0x2e0] sm:$0xff] }
0x19b7   :  { %6907 = vmatpush3.msra.mxu1 %v6143_v50  ;;  %v6889_v5 = vpop.f32.mrf.mxu0  ;;  %6914 = vmatprep.mubr.msk.f32.mxu1 %vm38_vm0, %v7748_v3  ;;  %v6178_v50 = vld [vmem:[%s8200_s2 + $0x2f8] sm:$0xff] }
0x19b8   :  { %6908 = vmatprep.subr.mxu1 %v6142_v54  ;;  %v6172_v5 = vld [vmem:[%s8200_s2 + $0x278] sm:$0xff] }
0x19b9   :  { %6909 = vmatpush3.msra.mxu1 %v6142_v54  ;;  %v6158_v54 = vld [vmem:[%s8202_s4 + $0x30] sm:$0xff] }
0x19ba   :  { %6910 = vmatprep.subr.mxu1 %v6141_v6 }
0x19bb   :  { %6911 = vmatpush3.msra.mxu1 %v6141_v6 }
0x19bc   :  { %6912 = vmatprep.subr.mxu1 %v6140_v7 }
0x19bd   :  { %6913 = vmatpush3.msra.mxu1 %v6140_v7  ;;  %v6905_v8 = vpop.f32.mrf.mxu0 }
0x19be   :  { %6915 = vmatmul.mubr.msk.f32.vlgmr.msra.gmra.mxu1 %vm38_vm0, %v7750_v4  ;;  %6928 = vmatprep.subr.mxu1 %v7189_v40  ;;  %v4363_v42 = vadd.f32 %v6905_v8, %v6137_v31 }
0x19bf   :  { %6930 = vmatprep.mubr.msk.f32.mxu1 %vm7190_vm1, %v7189_v40  ;;  %v4357_v9 = vpop.f32.mrf.mxu0 }
0x19c0   :  { %v4358_v39 = vadd.f32 %v6137_v31, %v4357_v9  ;;  %v6171_v9 = vld [vmem:[%s8200_s2 + $0x270] sm:$0xff] }
0x19c5   :  { %v6927_v10 = vpop.f32.mrf.mxu0 }
0x19c7   :  { %v4517_v11 = vpop.f32.mrf.mxu0 }
0x19c8   :  { %6939 = vmatpush3.msra.mxu0 %v4517_v11  ;;  %v6170_v11 = vld [vmem:[%s8200_s2 + $0x268] sm:$0xff]  ;;  %s7167_s2 = scalar_lea.vmem %s5951_s15, 256 }
0x19c9   :  { %6948 = vmatprep.subr.mxu0 %v6158_v54  ;;  %p7168_p0 = scmp.ne.s32.totalorder %s5951_s15, %s7167_s2  ;;  %p7173_p2 = scmp.lt.s32.totalorder %s7167_s2, %s7167_s2 }
0x19cb   :  { %p7174_p3 = por %p7173_p2, %p7172_p1 }
0x19cd   :  { %p7175_p4 = pnand %p7174_p3, %p7168_p0 }
0x1a76   :  { %v6894_v21 = vpop.f32.mrf.mxu1 }
0x1a77   :  { %v7973_v23 = vadd.f32 %v6894_v21, %v3624_v19 }
0x1a78   :  { %v4267_v25 = vpop.f32.mrf.mxu1 }
0x1a79   :  { %v7975_v26 = vadd.f32 %v4267_v25, %v3623_v22 }
0x1a7e   :  { %v6916_v27 = vpop.f32.mrf.mxu1 }
0x1a80   :  { %v4437_v29 = vpop.f32.mrf.mxu1 }
0x1a81   :  { %6929 = vmatpush3.xpose.msk.msra.mxu1 %vm328_vm2, %v4437_v29 }
0x1a82   :  { %6933 = vmatprep.subr.mxu1 %v7189_v40 }
0x1a84   :  { %6931 = vmatmul.mubr.msk.f32.vlgmr.msra.gmra.mxu1 %vm328_vm2, %v4358_v39 }
0x1a85   :  { %6934 = vmatpush3.xpose.msk.msra.mxu1 %vm328_vm2, %v6916_v27  ;;  %6935 = vmatprep.mubr.msk.f32.mxu1 %vm7190_vm1, %v7189_v40 }
0x1a86   :  { %6943 = vmatprep.subr.mxu1 %v7189_v40 }
0x1a88   :  { %6936 = vmatmul.mubr.msk.f32.vlgmr.msra.gmra.mxu1 %vm328_vm2, %v4363_v42 }
0x1a89   :  { %6944 = vmatpush3.msra.mxu1 %v6927_v10  ;;  %6945 = vmatprep.mubr.msk.f32.mxu1 %vm7190_vm1, %v7189_v40 }
0x1a8a   :  { %6953 = vmatprep.subr.mxu1 %v6164_v37 }
0x1b44   :  { %v4598_v14 = vpop.f32.mrf.mxu1 }
0x1b45   :  { %v4599_v16 = vadd.f32 %v7810_v30, %v4598_v14 }
0x1b46   :  { %v6932_v36 = vpop.f32.mrf.mxu1 }
0x1b47   :  { %v4678_v41 = vsel %vm328_vm2, %v4599_v16, -inf }
0x1b48   :  { %4679 = vmax.xlane.f32.xlu0 %v4678_v41  ;;  %v4674_v43 = vpop.f32.mrf.mxu1 }
0x1b49   :  { %v4675_v44 = vadd.f32 %v7804_v24, %v4674_v43 }
0x1b4a   :  { %v6937_v35 = vpop.f32.mrf.mxu1 }
0x1b4b   :  { %v4681_v13 = vsel %vm328_vm2, %v4675_v44, -inf }
0x1b4c   :  { %4682 = vmax.xlane.f32.xlu1 %v4681_v13 }
0x1bd1   :  { %v4680_v46 = vpop.xlane.xlu0 %4679 }
0x1bd2   :  { %v4684_v15 = vsub.f32 %v4599_v16, %v4680_v46 }
0x1bd4   :  { %v4686_v48 = vmul.f32 1.442695, %v4684_v15 }
0x1bd5   :  { %v4683_v32 = vpop.xlane.xlu1 %4682 }
0x1bd6   :  { %7137 = vpow2.f32 %v4686_v48  ;;  %v4685_v49 = vsub.f32 %v4675_v44, %v4683_v32 }
0x1bd8   :  { %v4688_v45 = vmul.f32 1.442695, %v4685_v49 }
0x1bda   :  { %7139 = vpow2.f32 %v4688_v45 }
0x1be3   :  { %v7138_v47 = vpop.eup %7137 }
0x1be4   :  { %v4690_v51 = vsel %vm328_vm2, %v7138_v47, 0.0 }
0x1be5   :  { %4691 = vadd.xlane.f32.xlu0 %v4690_v51 }
0x1be7   :  { %v7140_v1 = vpop.eup %7139 }
0x1be8   :  { %v4693_v0 = vsel %vm328_vm2, %v7140_v1, 0.0 }
0x1be9   :  { %4694 = vadd.xlane.f32.xlu1 %v4693_v0 }
0x1c6e   :  { %v4692_v38 = vpop.xlane.xlu0 %4691 }
0x1c6f   :  { %7141 = vrcp.f32 %v4692_v38  ;;  %v6187_v38 = vld [vmem:[%s8202_s4 + $0x38] sm:$0xff] }
0x1c72   :  { %v4695_v52 = vpop.xlane.xlu1 %4694 }
0x1c73   :  { %7143 = vrcp.f32 %v4695_v52 }
0x1c7c   :  { %v7142_v53 = vpop.eup %7141 }
0x1c7d   :  { %v4698_v55 = vmul.f32 %v7142_v53, %v7138_v47 }
0x1c7f   :  { %6941 = vmatmul.mubr.msk.f32.vlgmr.msra.gmra.mxu0 %vm328_vm2, %v4698_v55 }
0x1c80   :  { %v7144_v56 = vpop.eup %7143  ;;  %6949 = vmatpush3.msra.mxu0 %v6158_v54 }
0x1c81   :  { %v4699_v57 = vmul.f32 %v7144_v56, %v7140_v1  ;;  %6964 = vmatprep.subr.mxu0 %v6172_v5 }
0x1c83   :  { %6946 = vmatmul.mubr.msk.f32.vlgmr.msra.gmra.mxu1 %vm328_vm2, %v4699_v57 }
0x1c84   :  { %6954 = vmatpush3.msra.mxu1 %v6164_v37  ;;  %6961 = vmatprep.mubr.msk.f32.mxu1 %vm38_vm0, %v7748_v3 }
0x1c85   :  { %6955 = vmatprep.subr.mxu1 %v6163_v58 }
0x1c86   :  { %6956 = vmatpush3.msra.mxu1 %v6163_v58 }
0x1c87   :  { %6957 = vmatprep.subr.mxu1 %v6162_v59 }
0x1c88   :  { %6958 = vmatpush3.msra.mxu1 %v6162_v59 }
0x1c89   :  { %6959 = vmatprep.subr.mxu1 %v6161_v60 }
0x1c8a   :  { %6960 = vmatpush3.msra.mxu1 %v6161_v60 }
0x1c8b   :  { %6962 = vmatmul.mubr.msk.f32.vlgmr.msra.gmra.mxu1 %vm38_vm0, %v7750_v4  ;;  %6975 = vmatprep.subr.mxu1 %v6178_v50 }
0x1c8c   :  { %6976 = vmatpush3.msra.mxu1 %v6178_v50  ;;  %6983 = vmatprep.mubr.msk.f32.mxu1 %vm38_vm0, %v7748_v3 }
0x1c8d   :  { %6977 = vmatprep.subr.mxu1 %v6177_v61 }
0x1c8e   :  { %6978 = vmatpush3.msra.mxu1 %v6177_v61 }
0x1c8f   :  { %6979 = vmatprep.subr.mxu1 %v6176_v62 }
0x1c90   :  { %6980 = vmatpush3.msra.mxu1 %v6176_v62 }
0x1c91   :  { %6981 = vmatprep.subr.mxu1 %v6175_v63 }
0x1c92   :  { %6982 = vmatpush3.msra.mxu1 %v6175_v63 }
0x1c93   :  { %6984 = vmatmul.mubr.msk.f32.vlgmr.msra.gmra.mxu1 %vm38_vm0, %v7750_v4  ;;  %6996 = vmatprep.subr.mxu1 %v7189_v40 }
0x1c94   :  { %6998 = vmatprep.mubr.msk.f32.mxu1 %vm7190_vm1, %v7189_v40 }
0x1d3f   :  { %v4769_v6 = vpop.f32.mrf.mxu0 }
0x1d40   :  { %6950 = vmatprep.mubr.msk.f32.mxu0 %vm328_vm2, %v4769_v6  ;;  %v6193_v6 = vld [vmem:[%s8203_s5 + $0x38] sm:$0xff] }
0x1d41   :  { %v6942_v7 = vpop.f32.mrf.mxu0 }
0x1d42   :  { %v6192_v7 = vld [vmem:[%s8203_s5 + $0x30] sm:$0xff] }
0x1d43   :  { %v4842_v8 = vpop.f32.mrf.mxu1 }
0x1d44   :  { %6951 = vmatmul.mubr.msk.f32.vlgmr.msra.gmra.mxu0 %vm328_vm2, %v4842_v8  ;;  %v6191_v8 = vld [vmem:[%s8203_s5 + $0x28] sm:$0xff] }
0x1d45   :  { %6965 = vmatpush3.msra.mxu0 %v6172_v5  ;;  %v6947_v10 = vpop.f32.mrf.mxu1  ;;  %6972 = vmatprep.mubr.msk.f32.mxu0 %vm38_vm0, %v7748_v3 }
0x1d46   :  { %6966 = vmatprep.subr.mxu0 %v6171_v9 }
0x1d47   :  { %6967 = vmatpush3.msra.mxu0 %v6171_v9  ;;  %v6190_v9 = vld [vmem:[%s8203_s5 + $0x20] sm:$0xff] }
0x1d48   :  { %6968 = vmatprep.subr.mxu0 %v6170_v11 }
0x1d49   :  { %6969 = vmatpush3.msra.mxu0 %v6170_v11 }
0x1d4a   :  { %6970 = vmatprep.subr.mxu0 %v6169_v17 }
0x1d4b   :  { %6971 = vmatpush3.msra.mxu0 %v6169_v17  ;;  %v6963_v3 = vpop.f32.mrf.mxu1 }
0x1d4c   :  { %6973 = vmatmul.mubr.msk.f32.vlgmr.msra.gmra.mxu0 %vm38_vm0, %v7750_v4  ;;  %6986 = vmatprep.subr.mxu0 %v7189_v40  ;;  %v6166_v4 = vld [vmem:[%s8201_s3 + $0x7] ss:$0 sm:$0xff] }
0x1d4d   :  { %6988 = vmatprep.mubr.msk.f32.mxu0 %vm7190_vm1, %v7189_v40  ;;  %v5010_v18 = vpop.f32.mrf.mxu1 }
0x1d4e   :  { %v5011_v39 = vadd.f32 %v6166_v4, %v5010_v18 }
0x1d53   :  { %v6985_v19 = vpop.f32.mrf.mxu1 }
0x1d55   :  { %v5170_v20 = vpop.f32.mrf.mxu1 }
0x1d56   :  { %6997 = vmatpush3.msra.mxu1 %v5170_v20 }
0x1d57   :  { %7006 = vmatprep.subr.mxu1 %v6187_v38 }
0x1e04   :  { %v6952_v21 = vpop.f32.mrf.mxu0 }
0x1e05   :  { %v4930_v22 = vadd.f32 %v6952_v21, %v7973_v23  ;;  %v5016_v23 = vadd.f32 %v6963_v3, %v6166_v4 }
0x1e06   :  { %v4920_v25 = vpop.f32.mrf.mxu0 }
0x1e07   :  { %v4929_v27 = vadd.f32 %v4920_v25, %v7975_v26 }
0x1e0c   :  { %v6974_v29 = vpop.f32.mrf.mxu0 }
0x1e0e   :  { %v5090_v31 = vpop.f32.mrf.mxu0 }
0x1e0f   :  { %6987 = vmatpush3.xpose.msk.msra.mxu0 %vm328_vm2, %v5090_v31 }
0x1e10   :  { %6991 = vmatprep.subr.mxu0 %v7189_v40 }
0x1e12   :  { %6989 = vmatmul.mubr.msk.f32.vlgmr.msra.gmra.mxu0 %vm328_vm2, %v5011_v39 }
0x1e13   :  { %6992 = vmatpush3.xpose.msk.msra.mxu0 %vm328_vm2, %v6974_v29  ;;  %6993 = vmatprep.mubr.msk.f32.mxu0 %vm7190_vm1, %v7189_v40 }
0x1e14   :  { %7001 = vmatprep.subr.mxu0 %v7189_v40 }
0x1e16   :  { %6994 = vmatmul.mubr.msk.f32.vlgmr.msra.gmra.mxu0 %vm328_vm2, %v5016_v23 }
0x1e17   :  { %7002 = vmatpush3.msra.mxu0 %v6985_v19  ;;  %7003 = vmatprep.mubr.msk.f32.mxu0 %vm7190_vm1, %v7189_v40 }
0x1e18   :  { %7011 = vmatprep.subr.mxu0 %v6193_v6 }
0x1ed2   :  { %v5251_v26 = vpop.f32.mrf.mxu0 }
0x1ed3   :  { %v5252_v42 = vadd.f32 %v7810_v30, %v5251_v26 }
0x1ed4   :  { %v6990_v14 = vpop.f32.mrf.mxu0 }
0x1ed5   :  { %v5331_v16 = vsel %vm328_vm2, %v5252_v42, -inf }
0x1ed6   :  { %5332 = vmax.xlane.f32.xlu0 %v5331_v16  ;;  %v5327_v36 = vpop.f32.mrf.mxu0 }
0x1ed7   :  { %v5328_v41 = vadd.f32 %v7804_v24, %v5327_v36  ;;  %v6211_v36 = vld [vmem:[%s8204_s6 + $0xf8] sm:$0xff] }
0x1ed8   :  { %v6995_v43 = vpop.f32.mrf.mxu0 }
0x1ed9   :  { %v5334_v44 = vsel %vm328_vm2, %v5328_v41, -inf  ;;  %v6209_v43 = vld [vmem:[%s8204_s6 + $0xe8] sm:$0xff] }
0x1eda   :  { %5335 = vmax.xlane.f32.xlu1 %v5334_v44  ;;  %v6208_v44 = vld [vmem:[%s8204_s6 + $0xe0] sm:$0xff] }
0x1f5f   :  { %v5333_v35 = vpop.xlane.xlu0 %5332 }
0x1f60   :  { %v5337_v13 = vsub.f32 %v5252_v42, %v5333_v35  ;;  %v6207_v35 = vld [vmem:[%s8204_s6 + $0xd8] sm:$0xff] }
0x1f62   :  { %v5339_v46 = vmul.f32 1.442695, %v5337_v13  ;;  %v6206_v13 = vld [vmem:[%s8204_s6 + $0xd0] sm:$0xff] }
0x1f63   :  { %v5336_v15 = vpop.xlane.xlu1 %5335 }
0x1f64   :  { %7145 = vpow2.f32 %v5339_v46  ;;  %v5338_v40 = vsub.f32 %v5328_v41, %v5336_v15  ;;  %v6210_v41 = vld [vmem:[%s8204_s6 + $0xf0] sm:$0xff]  ;;  %v6205_v46 = vld [vmem:[%s8204_s6 + $0xc8] sm:$0xff]  ;;  %v6204_v15 = vld [vmem:[%s8204_s6 + $0xc0] sm:$0xff] }
0x1f66   :  { %v5341_v48 = vmul.f32 1.442695, %v5338_v40  ;;  %v6203_v40 = vld [vmem:[%s8204_s6 + $0xb8] sm:$0xff] }
0x1f68   :  { %7147 = vpow2.f32 %v5341_v48  ;;  %v6202_v48 = vld [vmem:[%s8204_s6 + $0xb0] sm:$0xff] }
0x1f71   :  { %v7146_v30 = vpop.eup %7145 }
0x1f72   :  { %v5343_v32 = vsel %vm328_vm2, %v7146_v30, 0.0 }
0x1f73   :  { %5344 = vadd.xlane.f32.xlu0 %v5343_v32  ;;  %v6200_v32 = vld [vmem:[%s8204_s6 + $0xa0] sm:$0xff] }
0x1f75   :  { %v7148_v49 = vpop.eup %7147 }
0x1f76   :  { %v5346_v45 = vsel %vm328_vm2, %v7148_v49, 0.0 }
0x1f77   :  { %5347 = vadd.xlane.f32.xlu1 %v5346_v45  ;;  %v6198_v45 = vld [vmem:[%s8204_s6 + $0x90] sm:$0xff] }
0x1ffc   :  { %v5345_v24 = vpop.xlane.xlu0 %5344 }
0x1ffd   :  { %7149 = vrcp.f32 %v5345_v24  ;;  %v6197_v24 = vld [vmem:[%s8204_s6 + $0x88] sm:$0xff] }
0x2000   :  { %v5348_v47 = vpop.xlane.xlu1 %5347 }
0x2001   :  { %7151 = vrcp.f32 %v5348_v47  ;;  %v6196_v47 = vld [vmem:[%s8204_s6 + $0x80] sm:$0xff] }
0x200a   :  { %v7150_v51 = vpop.eup %7149 }
0x200b   :  { %v5351_v1 = vmul.f32 %v7150_v51, %v7146_v30  ;;  %v6201_v30 = vld [vmem:[%s8204_s6 + $0xa8] sm:$0xff]  ;;  %v5622_v51 = vrot.slane %v7965_v12, %v2728_v2 }
0x200d   :  { %6999 = vmatmul.mubr.msk.f32.vlgmr.msra.gmra.mxu1 %vm328_vm2, %v5351_v1 }
0x200e   :  { %v7152_v0 = vpop.eup %7151  ;;  %7007 = vmatpush3.msra.mxu1 %v6187_v38 }
0x200f   :  { %v5352_v37 = vmul.f32 %v7152_v0, %v7148_v49  ;;  %7022 = vmatprep.subr.mxu1 %v6211_v36  ;;  %v6199_v49 = vld [vmem:[%s8204_s6 + $0x98] sm:$0xff] }
0x2011   :  { %7004 = vmatmul.mubr.msk.f32.vlgmr.msra.gmra.mxu0 %vm328_vm2, %v5352_v37 }
0x2012   :  { %7012 = vmatpush3.msra.mxu0 %v6193_v6 }
0x2013   :  { %7013 = vmatprep.subr.mxu0 %v6192_v7 }
0x2014   :  { %7014 = vmatpush3.msra.mxu0 %v6192_v7 }
0x2015   :  { %7015 = vmatprep.subr.mxu0 %v6191_v8 }
0x2016   :  { %7016 = vmatpush3.msra.mxu0 %v6191_v8 }
0x2017   :  { %7017 = vmatprep.subr.mxu0 %v6190_v9 }
0x2018   :  { %7018 = vmatpush3.msra.mxu0 %v6190_v9 }
0x20cd   :  { %v5422_v52 = vpop.f32.mrf.mxu1 }
0x20ce   :  { %7008 = vmatprep.mubr.msk.f32.mxu1 %vm328_vm2, %v5422_v52 }
0x20cf   :  { %v7000_v53 = vpop.f32.mrf.mxu1 }
0x20d1   :  { %v5495_v55 = vpop.f32.mrf.mxu0 }
0x20d2   :  { %7009 = vmatmul.mubr.msk.f32.vlgmr.msra.gmra.mxu1 %vm328_vm2, %v5495_v55 }
0x20d3   :  { %v7005_v56 = vpop.f32.mrf.mxu0  ;;  %7023 = vmatpush3.msra.mxu1 %v6211_v36 }
0x20d4   :  { %7024 = vmatprep.subr.mxu1 %v6210_v41 }
0x20d5   :  { %7025 = vmatpush3.msra.mxu1 %v6210_v41 }
0x20d6   :  { %7026 = vmatprep.subr.mxu1 %v6209_v43 }
0x20d7   :  { %7027 = vmatpush3.msra.mxu1 %v6209_v43 }
0x20d8   :  { %7028 = vmatprep.subr.mxu1 %v6208_v44 }
0x20d9   :  { %7029 = vmatpush3.msra.mxu1 %v6208_v44 }
0x20da   :  { %7030 = vmatprep.subr.mxu1 %v6207_v35 }
0x20db   :  { %7031 = vmatpush3.msra.mxu1 %v6207_v35 }
0x20dc   :  { %7032 = vmatprep.subr.mxu1 %v6206_v13 }
0x20dd   :  { %7033 = vmatpush3.msra.mxu1 %v6206_v13 }
0x20de   :  { %7034 = vmatprep.subr.mxu1 %v6205_v46 }
0x20df   :  { %7035 = vmatpush3.msra.mxu1 %v6205_v46 }
0x20e0   :  { %7036 = vmatprep.subr.mxu1 %v6204_v15 }
0x20e1   :  { %7037 = vmatpush3.msra.mxu1 %v6204_v15 }
0x20e2   :  { %7038 = vmatprep.subr.mxu1 %v6203_v40 }
0x20e3   :  { %7039 = vmatpush3.msra.mxu1 %v6203_v40 }
0x20e4   :  { %7040 = vmatprep.subr.mxu1 %v6202_v48 }
0x20e5   :  { %7041 = vmatpush3.msra.mxu1 %v6202_v48 }
0x20e6   :  { %7042 = vmatprep.subr.mxu1 %v6201_v30 }
0x20e7   :  { %7043 = vmatpush3.msra.mxu1 %v6201_v30 }
0x20e8   :  { %7044 = vmatprep.subr.mxu1 %v6200_v32 }
0x20e9   :  { %7045 = vmatpush3.msra.mxu1 %v6200_v32 }
0x20ea   :  { %7046 = vmatprep.subr.mxu1 %v6199_v49 }
0x20eb   :  { %7047 = vmatpush3.msra.mxu1 %v6199_v49 }
0x20ec   :  { %7048 = vmatprep.subr.mxu1 %v6198_v45 }
0x20ed   :  { %7049 = vmatpush3.msra.mxu1 %v6198_v45  ;;  %v6212_v45 = vld [vmem:[%s8206_s8 + $0x8] sm:$0x7] }
0x20ee   :  { %7050 = vmatprep.subr.mxu1 %v6197_v24 }
0x20ef   :  { %7051 = vmatpush3.msra.mxu1 %v6197_v24  ;;  %v5861_v24 = vrot.slane %v6212_v45, %v7501_v34 }
0x20f0   :  { %7052 = vmatprep.subr.mxu1 %v6196_v47 }
0x20f1   :  { %7053 = vmatpush3.msra.mxu1 %v6196_v47 }
0x2192   :  { %v7010_v57 = vpop.f32.mrf.mxu1 }
0x2193   :  { %v8085_v58 = vadd.f32 %v7010_v57, %v4930_v22 }
0x2194   :  { %v5573_v59 = vpop.f32.mrf.mxu1 }
0x2195   :  { %v8087_v60 = vadd.f32 %v5573_v59, %v4929_v27  ;;  %v5587_v50 = vsel %vm38_vm0, %v8085_v58, 0.0  ;;  %v5593_v61 = vmul.f32 %v8085_v58, %v8085_v58 }
0x2196   :  { %5588 = vadd.xlane.f32.xlu1 %v5587_v50 }
0x2197   :  { %v5584_v62 = vsel %vm38_vm0, %v8087_v60, 0.0  ;;  %v5592_v63 = vmul.f32 %v8087_v60, %v8087_v60  ;;  %v5597_v54 = vsel %vm38_vm0, %v5593_v61, 0.0 }
0x2198   :  { %5585 = vadd.xlane.f32.xlu0 %v5584_v62 }
0x2199   :  { %v5594_v5 = vsel %vm38_vm0, %v5592_v63, 0.0 }
0x219a   :  { %5598 = vadd.xlane.f32.xlu1 %v5597_v54 }
0x219c   :  { %5595 = vadd.xlane.f32.xlu0 %v5594_v5 }
0x221f   :  { %v5589_v10 = vpop.xlane.xlu1 %5588 }
0x2220   :  { %v5591_v11 = vmul.f32 0.03125, %v5589_v10 }
0x2221   :  { %v5586_v17 = vpop.xlane.xlu0 %5585 }
0x2222   :  { %v5590_v3 = vmul.f32 0.03125, %v5586_v17  ;;  %v5603_v19 = vmul.f32 %v5591_v11, %v5591_v11  ;;  %v5607_v42 = vsub.f32 %v8085_v58, %v5591_v11  ;;  %v5819_v11 = vrot.slane %v7965_v12, %v2924_v28  ;;  %v5855_v12 = vld [vmem:[%s8205_s7 + $0x18] sm:$0xff] }
0x2223   :  { %v5599_v18 = vpop.xlane.xlu1 %5598  ;;  %7057 = vmatprep.subr.mxu0 %v5855_v12 }
0x2224   :  { %v5601_v20 = vmul.f32 0.03125, %v5599_v18  ;;  %v5602_v22 = vmul.f32 %v5590_v3, %v5590_v3  ;;  %v5606_v23 = vsub.f32 %v8087_v60, %v5590_v3 }
0x2225   :  { %v5596_v21 = vpop.xlane.xlu0 %5595 }
0x2226   :  { %v5605_v25 = vsub.f32 %v5601_v20, %v5603_v19  ;;  %v5600_v27 = vmul.f32 0.03125, %v5596_v21 }
0x2228   :  { %v5609_v29 = vadd.f32 1e-05, %v5605_v25  ;;  %v5604_v31 = vsub.f32 %v5600_v27, %v5602_v22 }
0x222a   :  { %v5608_v4 = vadd.f32 1e-05, %v5604_v31  ;;  %7153 = vrsqrt.f32 %v5609_v29  ;;  %v5852_v31 = vld [vmem:[%s8205_s7] sm:$0xff] }
0x222c   :  { %7155 = vrsqrt.f32 %v5608_v4 }
0x2237   :  { %v7154_v39 = vpop.eup %7153 }
0x2238   :  { %v5613_v16 = vmul.f32 %v7154_v39, %v5607_v42 }
0x2239   :  { %v7156_v26 = vpop.eup %7155 }
0x223a   :  { %v5612_v14 = vmul.f32 %v7156_v26, %v5606_v23 }
0x223c   :  { %7019 = vmatprep.mubr.msk.f32.mxu0 %vm38_vm0, %v5612_v14 }
0x223d   :  { %7020 = vmatmul.mubr.msk.f32.vlgmr.msra.gmra.mxu0 %vm38_vm0, %v5613_v16 }
0x223e   :  { %7058 = vmatpush3.msra.mxu0 %v5855_v12 }
0x22fd   :  { %v7021_v1 = vpop.f32.mrf.mxu0 }
0x22fe   :  { %v5701_v0 = vadd.f32 %v7021_v1, %v5622_v51 }
0x22ff   :  { %v5695_v37 = vpop.f32.mrf.mxu0 }
0x2300   :  { %v5705_v38 = vmul.f32 %v5701_v0, %v5701_v0  ;;  %v5696_v52 = vadd.f32 %v5695_v37, %v5622_v51 }
0x2302   :  { %v5707_v53 = vmul.f32 %v5705_v38, %v5701_v0  ;;  %v5704_v55 = vmul.f32 %v5696_v52, %v5696_v52 }
0x2304   :  { %v5709_v56 = vmul.f32 0.044715, %v5707_v53  ;;  %v5706_v57 = vmul.f32 %v5704_v55, %v5696_v52 }
0x2306   :  { %v5711_v59 = vadd.f32 %v5709_v56, %v5701_v0  ;;  %v5708_v50 = vmul.f32 0.044715, %v5706_v57 }
0x2308   :  { %v5713_v61 = vmul.f32 0.7978846, %v5711_v59  ;;  %v5710_v62 = vadd.f32 %v5708_v50, %v5696_v52 }
0x230a   :  { %7157 = vtanh.f32 %v5713_v61  ;;  %v5712_v63 = vmul.f32 0.7978846, %v5710_v62 }
0x230c   :  { %7159 = vtanh.f32 %v5712_v63 }
0x2317   :  { %v7158_v54 = vpop.eup %7157 }
0x2318   :  { %v5717_v5 = vadd.f32 1.0, %v7158_v54 }
0x2319   :  { %v7160_v6 = vpop.eup %7159 }
0x231a   :  { %v5716_v2 = vadd.f32 1.0, %v7160_v6  ;;  %v5719_v7 = vmul.f32 0.5, %v5717_v5 }
0x231c   :  { %v5718_v8 = vmul.f32 0.5, %v5716_v2  ;;  %v5721_v10 = vmul.f32 %v5719_v7, %v5701_v0 }
0x231e   :  { %v5720_v9 = vmul.f32 %v5718_v8, %v5696_v52 }
0x2320   :  { %7054 = vmatprep.mubr.f32.mxu1 %v5720_v9 }
0x2321   :  { %7055 = vmatmul.mubr.f32.vlgmr.msra.gmra.mxu1 %v5721_v10 }
0x23e1   :  { %v7056_v17 = vpop.f32.mrf.mxu1 }
0x23e2   :  { %v5815_v3 = vadd.f32 %v7056_v17, %v8085_v58  ;;  %v5854_v58 = vld [vmem:[%s8205_s7 + $0x10] sm:$0xff] }
0x23e3   :  { %v5805_v18 = vpop.f32.mrf.mxu1  ;;  %7059 = vmatprep.subr.mxu0 %v5854_v58 }
0x23e4   :  { %v5821_v19 = vadd.f32 %v5819_v11, %v5815_v3  ;;  %v5814_v20 = vadd.f32 %v5805_v18, %v8087_v60  ;;  %v5853_v60 = vld [vmem:[%s8205_s7 + $0x8] sm:$0xff]  ;;  %7060 = vmatpush3.msra.mxu0 %v5854_v58 }
0x23e5   :  { %7061 = vmatprep.subr.mxu0 %v5853_v60 }
0x23e6   :  { %v5820_v21 = vadd.f32 %v5819_v11, %v5814_v20  ;;  %v5825_v22 = vsel %vm38_vm0, %v5821_v19, 0.0  ;;  %v5831_v25 = vmul.f32 %v5821_v19, %v5821_v19  ;;  %7062 = vmatpush3.msra.mxu0 %v5853_v60 }
0x23e7   :  { %5826 = vadd.xlane.f32.xlu1 %v5825_v22  ;;  %7063 = vmatprep.subr.mxu0 %v5852_v31 }
0x23e8   :  { %v5822_v27 = vsel %vm38_vm0, %v5820_v21, 0.0  ;;  %v5830_v29 = vmul.f32 %v5820_v21, %v5820_v21  ;;  %v5835_v33 = vsel %vm38_vm0, %v5831_v25, 0.0  ;;  %7064 = vmatpush3.msra.mxu0 %v5852_v31 }
0x23e9   :  { %5823 = vadd.xlane.f32.xlu0 %v5822_v27 }
0x23ea   :  { %v5832_v28 = vsel %vm38_vm0, %v5830_v29, 0.0 }
0x23eb   :  { %5836 = vadd.xlane.f32.xlu1 %v5835_v33 }
0x23ed   :  { %5833 = vadd.xlane.f32.xlu0 %v5832_v28 }
0x2470   :  { %v5827_v4 = vpop.xlane.xlu1 %5826 }
0x2471   :  { %v5829_v39 = vmul.f32 0.03125, %v5827_v4 }
0x2472   :  { %v5824_v23 = vpop.xlane.xlu0 %5823 }
0x2473   :  { %v5828_v26 = vmul.f32 0.03125, %v5824_v23  ;;  %v5841_v14 = vmul.f32 %v5829_v39, %v5829_v39  ;;  %v5845_v30 = vsub.f32 %v5821_v19, %v5829_v39 }
0x2474   :  { %v5837_v42 = vpop.xlane.xlu1 %5836 }
0x2475   :  { %v5839_v16 = vmul.f32 0.03125, %v5837_v42  ;;  %v5840_v41 = vmul.f32 %v5828_v26, %v5828_v26  ;;  %v5844_v40 = vsub.f32 %v5820_v21, %v5828_v26 }
0x2476   :  { %v5834_v36 = vpop.xlane.xlu0 %5833 }
0x2477   :  { %v5843_v43 = vsub.f32 %v5839_v16, %v5841_v14  ;;  %v5838_v44 = vmul.f32 0.03125, %v5834_v36 }
0x2479   :  { %v5847_v35 = vadd.f32 1e-05, %v5843_v43  ;;  %v5842_v13 = vsub.f32 %v5838_v44, %v5840_v41 }
0x247b   :  { %v5846_v46 = vadd.f32 1e-05, %v5842_v13  ;;  %7161 = vrsqrt.f32 %v5847_v35 }
0x247d   :  { %7163 = vrsqrt.f32 %v5846_v46 }
0x2488   :  { %v7162_v15 = vpop.eup %7161 }
0x2489   :  { %v5851_v49 = vmul.f32 %v7162_v15, %v5845_v30 }
0x248a   :  { %v7164_v48 = vpop.eup %7163 }
0x248b   :  { %v5850_v32 = vmul.f32 %v7164_v48, %v5844_v40 }
0x248d   :  { %7065 = vmatprep.mubr.msk.f32.mxu0 %vm38_vm0, %v5850_v32 }
0x248e   :  { %7066 = vmatmul.mubr.msk.f32.vlgmr.msra.gmra.mxu0 %vm38_vm0, %v5851_v49 }
0x254e   :  { %v7067_v47 = vpop.f32.mrf.mxu0 }
0x254f   :  { %v5940_v51 = vadd.f32 %v7067_v47, %v5861_v24 }
0x2550   :  { %v5934_v1 = vpop.f32.mrf.mxu0 }
0x2551   :  { %5944 = vst.msk [vmem:[#allocation2 + $0x8] sm:$0xff] %vm38_vm0, %v5940_v51  ;;  %v5935_v0 = vadd.f32 %v5934_v1, %v5861_v24 }
0x2553   :  { %5943 = vst.msk [vmem:[#allocation2] sm:$0xff] %vm38_vm0, %v5935_v0 }
0x2554   :  { %7178 = shalt.err (!%p7175_p4)
}
0x2555   :  { %s7192_s8 = smov 128   ;;  %s7193_s16 = smov 8  }
0x2556   :  { %5956 = dma.vmem_to_hbm [thread:$0]  %s5951_s15, 256, %s8207_s9, [#allocation3], %s7192_s8, %s7192_s8, %s7193_s16  }
0x2557   :  { %7187 = dma.done.wait [#allocation3], 256  }
0x2558   :  { %7188 = vsyncadd [#allocation3], 4294967040 }
0x2559   :  { %5960 = vsyncpa [#allocation3], 1 }

</bundles_post_ra>
